<compile_context>
chip_gen: v5e
topology: v5e:2x2
jax: 0.10.0
libtpu: 0.0.40
codegen_flags: <defaults>
</compile_context>

<pallas_src>
import functools

import jax
import jax.numpy as jnp
from jax.experimental import pallas as pl
from jax.experimental.pallas import tpu as pltpu


IN_DIM = 6      # true input features
HID = 150       # true hidden features
IN_PAD = 8      # sublane-aligned padded input dim
HID_PAD = 256   # lane-dense padded hidden dim (multiple of 128 and 256)


def koopman_kernel(x_ref,
                   w0_ref, b0_ref,
                   w1_ref, b1_ref,
                   w2_ref, b2_ref,
                   w3_ref, b3_ref,
                   out_ref,
                   *, use_bf16=False):
    """Fused 4-layer MLP on one batch tile.  All dims are pre-padded."""
    in_dtype = jnp.bfloat16 if use_bf16 else jnp.float32

    def layer(h, w_ref, b_ref):
        y = jnp.dot(h.astype(in_dtype), w_ref[...].astype(in_dtype),
                    preferred_element_type=jnp.float32)
        return jnp.tanh(y + b_ref[...])

    h = x_ref[...].astype(jnp.float32)
    h = layer(h, w0_ref, b0_ref)   # [bt, 8]   @ [8, 256]   -> tanh
    h = layer(h, w1_ref, b1_ref)   # [bt, 256] @ [256, 256] -> tanh
    h = layer(h, w2_ref, b2_ref)
    h = layer(h, w3_ref, b3_ref)
    out_ref[...] = h.astype(out_ref.dtype)


def _pad2(a, rows, cols):
    r, c = a.shape
    return jnp.pad(a, ((0, rows - r), (0, cols - c)))


def koopman_dnn_forward(x, params, *, batch_tile=256, use_bf16=False):
    """x: [B, 6] float32.  params: dict of transposed weights ([in,out]) / biases ([1,out])."""
    B = x.shape[0]
    n_tiles = pl.cdiv(B, batch_tile)
    B_pad = n_tiles * batch_tile

    # Zero-pad: batch rows to a tile multiple, feature dims to lane/sublane-dense
    # sizes.  Zero padding keeps padded lanes exactly zero through every layer
    # (0 @ W = 0, bias pad = 0, tanh(0) = 0), so the real outputs are unchanged.
    x_p = _pad2(x.astype(jnp.float32), B_pad, IN_PAD)
    w0 = _pad2(params["w0"], IN_PAD, HID_PAD)
    b0 = _pad2(params["b0"], 1, HID_PAD)
    w1 = _pad2(params["w1"], HID_PAD, HID_PAD)
    b1 = _pad2(params["b1"], 1, HID_PAD)
    w2 = _pad2(params["w2"], HID_PAD, HID_PAD)
    b2 = _pad2(params["b2"], 1, HID_PAD)
    w3 = _pad2(params["w3"], HID_PAD, HID_PAD)
    b3 = _pad2(params["b3"], 1, HID_PAD)

    def full(shape):
        # Weights / biases: same (whole) block every grid step -> resident, not re-DMA'd.
        return pl.BlockSpec(shape, lambda i: (0, 0))

    # Advisory cost hint (real, unpadded work).
    cost = pl.CostEstimate(
        flops=2 * B * (IN_DIM * HID + 3 * HID * HID),
        transcendentals=4 * B * HID,
        bytes_accessed=(B * (IN_DIM + HID) * 4
                        + (IN_DIM * HID + 3 * HID * HID + 4 * HID) * 4),
    )

    kernel = functools.partial(koopman_kernel, use_bf16=use_bf16)

    out_padded = pl.pallas_call(
        kernel,
        out_shape=jax.ShapeDtypeStruct((B_pad, HID_PAD), jnp.float32),
        grid_spec=pltpu.PrefetchScalarGridSpec(
            num_scalar_prefetch=0,
            grid=(n_tiles,),
            in_specs=[
                pl.BlockSpec((batch_tile, IN_PAD), lambda i: (i, 0)),  # x tile
                full((IN_PAD, HID_PAD)),  full((1, HID_PAD)),          # layer 0
                full((HID_PAD, HID_PAD)), full((1, HID_PAD)),          # layer 1
                full((HID_PAD, HID_PAD)), full((1, HID_PAD)),          # layer 2
                full((HID_PAD, HID_PAD)), full((1, HID_PAD)),          # layer 3
            ],
            out_specs=pl.BlockSpec((batch_tile, HID_PAD), lambda i: (i, 0)),
        ),
        compiler_params=pltpu.CompilerParams(
            dimension_semantics=("parallel",),
        ),
        cost_estimate=cost,
    )(x_p, w0, b0, w1, b1, w2, b2, w3, b3)

    # Drop batch padding and the zero-padded hidden lanes.
    return out_padded[:B, :HID]


def init_params(key):
    """Deterministic init mimicking nn.Linear's uniform(-1/sqrt(fan_in), +)."""
    def linear(key, fan_in, fan_out):
        kw, kb = jax.random.split(key)
        bound = 1.0 / jnp.sqrt(fan_in)
        # Weight stored already transposed: [in, out]  (y = x @ W + b).
        w = jax.random.uniform(kw, (fan_in, fan_out), jnp.float32, -bound, bound)
        b = jax.random.uniform(kb, (1, fan_out), jnp.float32, -bound, bound)
        return w, b

    k0, k1, k2, k3 = jax.random.split(key, 4)
    w0, b0 = linear(k0, IN_DIM, HID)
    w1, b1 = linear(k1, HID, HID)
    w2, b2 = linear(k2, HID, HID)
    w3, b3 = linear(k3, HID, HID)
    return dict(w0=w0, b0=b0, w1=w1, b1=b1, w2=w2, b2=b2, w3=w3, b3=b3)


def reference_forward(x, params):
    h = jnp.tanh(x @ params["w0"] + params["b0"])
    h = jnp.tanh(h @ params["w1"] + params["b1"])
    h = jnp.tanh(h @ params["w2"] + params["b2"])
    h = jnp.tanh(h @ params["w3"] + params["b3"])
    return h


if __name__ == "__main__":
    key = jax.random.PRNGKey(0)
    kx, kp = jax.random.split(key)

    # B deliberately NOT a multiple of batch_tile to exercise the cdiv/padding
    # path; with batch_tile=256 this still gives a 2-step grid (megacore-friendly).
    B = 300
    x = jax.random.normal(kx, (B, IN_DIM), jnp.float32)
    params = init_params(kp)

    out = koopman_dnn_forward(x, params, batch_tile=256, use_bf16=False)
    out = jax.block_until_ready(out)

    ref = reference_forward(x, params)
    assert out.shape == (B, HID)
    assert jnp.allclose(out, ref, atol=1e-5, rtol=1e-5), "mismatch vs reference"

    print("KERNEL_OK")
</pallas_src>

<mosaic_0001>
module attributes {stable_mosaic.version = 11 : i64} {
  func.func @koopman_kernel(%arg0: i32, %arg1: memref<256x8xf32, #tpu.memory_space<vmem>>, %arg2: memref<8x256xf32, #tpu.memory_space<vmem>>, %arg3: memref<1x256xf32, #tpu.memory_space<vmem>>, %arg4: memref<256x256xf32, #tpu.memory_space<vmem>>, %arg5: memref<1x256xf32, #tpu.memory_space<vmem>>, %arg6: memref<256x256xf32, #tpu.memory_space<vmem>>, %arg7: memref<1x256xf32, #tpu.memory_space<vmem>>, %arg8: memref<256x256xf32, #tpu.memory_space<vmem>>, %arg9: memref<1x256xf32, #tpu.memory_space<vmem>>, %arg10: memref<256x256xf32, #tpu.memory_space<vmem>>) attributes {dimension_semantics = [#tpu.dimension_semantics<parallel>], iteration_bounds = array<i64: 2>, scalar_prefetch = 0 : i64, scratch_operands = 0 : i64, tpu.core_type = #tpu.core_type<tc>, window_params = [{transform_indices = @transform_0, window_bounds = array<i64: 256, 8>}, {pipeline_mode = #tpu.pipeline_mode<synchronous>, transform_indices = @transform_1, window_bounds = array<i64: 8, 256>}, {pipeline_mode = #tpu.pipeline_mode<synchronous>, transform_indices = @transform_2, window_bounds = array<i64: 1, 256>}, {pipeline_mode = #tpu.pipeline_mode<synchronous>, transform_indices = @transform_3, window_bounds = array<i64: 256, 256>}, {pipeline_mode = #tpu.pipeline_mode<synchronous>, transform_indices = @transform_4, window_bounds = array<i64: 1, 256>}, {pipeline_mode = #tpu.pipeline_mode<synchronous>, transform_indices = @transform_5, window_bounds = array<i64: 256, 256>}, {pipeline_mode = #tpu.pipeline_mode<synchronous>, transform_indices = @transform_6, window_bounds = array<i64: 1, 256>}, {pipeline_mode = #tpu.pipeline_mode<synchronous>, transform_indices = @transform_7, window_bounds = array<i64: 256, 256>}, {pipeline_mode = #tpu.pipeline_mode<synchronous>, transform_indices = @transform_8, window_bounds = array<i64: 1, 256>}, {transform_indices = @transform_9, window_bounds = array<i64: 256, 256>}]} {
    %c0 = arith.constant 0 : index
    %c0_0 = arith.constant 0 : index
    %0 = vector.load %arg1[%c0, %c0_0] : memref<256x8xf32, #tpu.memory_space<vmem>>, vector<256x8xf32>
    %c0_1 = arith.constant 0 : index
    %c0_2 = arith.constant 0 : index
    %1 = vector.load %arg2[%c0_1, %c0_2] : memref<8x256xf32, #tpu.memory_space<vmem>>, vector<8x256xf32>
    %cst = arith.constant dense<0.000000e+00> : vector<256x256xf32>
    %2 = tpu.matmul %0, %1, %cst {dimension_numbers = #tpu.dot_dimension_numbers<[1], [0], [0], [1], [0, 0, 1, 1], [], []>} : vector<256x8xf32>, vector<8x256xf32>, vector<256x256xf32> -> vector<256x256xf32>
    %c0_3 = arith.constant 0 : index
    %c0_4 = arith.constant 0 : index
    %3 = vector.load %arg3[%c0_3, %c0_4] : memref<1x256xf32, #tpu.memory_space<vmem>>, vector<1x256xf32>
    %4 = vector.broadcast %3 : vector<1x256xf32> to vector<256x256xf32>
    %5 = arith.addf %2, %4 : vector<256x256xf32>
    %6 = math.tanh %5 : vector<256x256xf32>
    %c0_5 = arith.constant 0 : index
    %c0_6 = arith.constant 0 : index
    %7 = vector.load %arg4[%c0_5, %c0_6] : memref<256x256xf32, #tpu.memory_space<vmem>>, vector<256x256xf32>
    %cst_7 = arith.constant dense<0.000000e+00> : vector<256x256xf32>
    %8 = tpu.matmul %6, %7, %cst_7 {dimension_numbers = #tpu.dot_dimension_numbers<[1], [0], [0], [1], [0, 0, 1, 1], [], []>} : vector<256x256xf32>, vector<256x256xf32>, vector<256x256xf32> -> vector<256x256xf32>
    %c0_8 = arith.constant 0 : index
    %c0_9 = arith.constant 0 : index
    %9 = vector.load %arg5[%c0_8, %c0_9] : memref<1x256xf32, #tpu.memory_space<vmem>>, vector<1x256xf32>
    %10 = vector.broadcast %9 : vector<1x256xf32> to vector<256x256xf32>
    %11 = arith.addf %8, %10 : vector<256x256xf32>
    %12 = math.tanh %11 : vector<256x256xf32>
    %c0_10 = arith.constant 0 : index
    %c0_11 = arith.constant 0 : index
    %13 = vector.load %arg6[%c0_10, %c0_11] : memref<256x256xf32, #tpu.memory_space<vmem>>, vector<256x256xf32>
    %cst_12 = arith.constant dense<0.000000e+00> : vector<256x256xf32>
    %14 = tpu.matmul %12, %13, %cst_12 {dimension_numbers = #tpu.dot_dimension_numbers<[1], [0], [0], [1], [0, 0, 1, 1], [], []>} : vector<256x256xf32>, vector<256x256xf32>, vector<256x256xf32> -> vector<256x256xf32>
    %c0_13 = arith.constant 0 : index
    %c0_14 = arith.constant 0 : index
    %15 = vector.load %arg7[%c0_13, %c0_14] : memref<1x256xf32, #tpu.memory_space<vmem>>, vector<1x256xf32>
    %16 = vector.broadcast %15 : vector<1x256xf32> to vector<256x256xf32>
    %17 = arith.addf %14, %16 : vector<256x256xf32>
    %18 = math.tanh %17 : vector<256x256xf32>
    %c0_15 = arith.constant 0 : index
    %c0_16 = arith.constant 0 : index
    %19 = vector.load %arg8[%c0_15, %c0_16] : memref<256x256xf32, #tpu.memory_space<vmem>>, vector<256x256xf32>
    %cst_17 = arith.constant dense<0.000000e+00> : vector<256x256xf32>
    %20 = tpu.matmul %18, %19, %cst_17 {dimension_numbers = #tpu.dot_dimension_numbers<[1], [0], [0], [1], [0, 0, 1, 1], [], []>} : vector<256x256xf32>, vector<256x256xf32>, vector<256x256xf32> -> vector<256x256xf32>
    %c0_18 = arith.constant 0 : index
    %c0_19 = arith.constant 0 : index
    %21 = vector.load %arg9[%c0_18, %c0_19] : memref<1x256xf32, #tpu.memory_space<vmem>>, vector<1x256xf32>
    %22 = vector.broadcast %21 : vector<1x256xf32> to vector<256x256xf32>
    %23 = arith.addf %20, %22 : vector<256x256xf32>
    %24 = math.tanh %23 : vector<256x256xf32>
    %c0_20 = arith.constant 0 : index
    %c0_21 = arith.constant 0 : index
    %25 = vector.load %arg10[%c0_20, %c0_21] : memref<256x256xf32, #tpu.memory_space<vmem>>, vector<256x256xf32>
    tpu.vector_store %arg10[%c0_20, %c0_21], %24 {strides = array<i32>} : memref<256x256xf32, #tpu.memory_space<vmem>>, vector<256x256xf32>,
    return
  }
  func.func @transform_0(%arg0: i32) -> (i32, i32) {
    %c0_i32 = arith.constant 0 : i32
    %c0_i32_0 = arith.constant 0 : i32
    return %arg0, %c0_i32 : i32, i32
  }
  func.func @transform_1(%arg0: i32) -> (i32, i32) {
    %c0_i32 = arith.constant 0 : i32
    %c0_i32_0 = arith.constant 0 : i32
    %c0_i32_1 = arith.constant 0 : i32
    return %c0_i32, %c0_i32_0 : i32, i32
  }
  func.func @transform_2(%arg0: i32) -> (i32, i32) {
    %c0_i32 = arith.constant 0 : i32
    %c0_i32_0 = arith.constant 0 : i32
    %c0_i32_1 = arith.constant 0 : i32
    return %c0_i32, %c0_i32_0 : i32, i32
  }
  func.func @transform_3(%arg0: i32) -> (i32, i32) {
    %c0_i32 = arith.constant 0 : i32
    %c0_i32_0 = arith.constant 0 : i32
    %c0_i32_1 = arith.constant 0 : i32
    return %c0_i32, %c0_i32_0 : i32, i32
  }
  func.func @transform_4(%arg0: i32) -> (i32, i32) {
    %c0_i32 = arith.constant 0 : i32
    %c0_i32_0 = arith.constant 0 : i32
    %c0_i32_1 = arith.constant 0 : i32
    return %c0_i32, %c0_i32_0 : i32, i32
  }
  func.func @transform_5(%arg0: i32) -> (i32, i32) {
    %c0_i32 = arith.constant 0 : i32
    %c0_i32_0 = arith.constant 0 : i32
    %c0_i32_1 = arith.constant 0 : i32
    return %c0_i32, %c0_i32_0 : i32, i32
  }
  func.func @transform_6(%arg0: i32) -> (i32, i32) {
    %c0_i32 = arith.constant 0 : i32
    %c0_i32_0 = arith.constant 0 : i32
    %c0_i32_1 = arith.constant 0 : i32
    return %c0_i32, %c0_i32_0 : i32, i32
  }
  func.func @transform_7(%arg0: i32) -> (i32, i32) {
    %c0_i32 = arith.constant 0 : i32
    %c0_i32_0 = arith.constant 0 : i32
    %c0_i32_1 = arith.constant 0 : i32
    return %c0_i32, %c0_i32_0 : i32, i32
  }
  func.func @transform_8(%arg0: i32) -> (i32, i32) {
    %c0_i32 = arith.constant 0 : i32
    %c0_i32_0 = arith.constant 0 : i32
    %c0_i32_1 = arith.constant 0 : i32
    return %c0_i32, %c0_i32_0 : i32, i32
  }
  func.func @transform_9(%arg0: i32) -> (i32, i32) {
    %c0_i32 = arith.constant 0 : i32
    %c0_i32_0 = arith.constant 0 : i32
    return %arg0, %c0_i32 : i32, i32
  }
}

</mosaic_0001>

<bundles_post_ra>
// kernel: tpu_custom_call.1
= control target key start
LH: loop header
LB: loop body
LE: loop exit
PB: predicated region body
PF: predicated region fallthrough
CT: control target
= control target key end

     0   :  { %14 = vsyncpa [#allocation3], 0  ;;  %s5082_s0 = inlined_call_operand.vmem [shape: f32[512,8], index: 0, kind: input, shape index: {}]   ;;  %s5083_s1 = inlined_call_operand.vmem [shape: f32[8,256], index: 1, kind: input, shape index: {}]   ;;  %s5084_s2 = inlined_call_operand.vmem [shape: f32[1,256], index: 2, kind: input, shape index: {}]   ;;  %s5085_s3 = inlined_call_operand.vmem [shape: f32[256,256], index: 3, kind: input, shape index: {}]   ;;  %s5086_s4 = inlined_call_operand.vmem [shape: f32[1,256], index: 4, kind: input, shape index: {}]   ;;  %s5087_s5 = inlined_call_operand.hbm [shape: f32[256,256], index: 5, kind: input, shape index: {}]   ;;  %s5088_s6 = inlined_call_operand.vmem [shape: f32[1,256], index: 6, kind: input, shape index: {}]   ;;  %s5089_s7 = inlined_call_operand.hbm [shape: f32[256,256], index: 7, kind: input, shape index: {}]   ;;  %s5090_s8 = inlined_call_operand.vmem [shape: f32[1,256], index: 8, kind: input, shape index: {}]   ;;  %s5091_s9 = inlined_call_operand.hbm [shape: f32[512,256], index: 9, kind: output, shape index: {}]  }
   0x1   :  { %15 = vsyncpa [#allocation6], 0 }
   0x2   :  { %16 = vsyncpa [#allocation4], 0 }
   0x3   :  { %18 = vsyncpa [#allocation4 + $0x1], 0  ;;  %s3585_s30 = smov 0   ;;  %s3587_s10 = smov 0  }
   0x4   :  { %s3589_s11 = smov 0   ;;  %s3591_s12 = smov 0  }
   0x5 LB: > { %s3606_s13 = sadd.s32 4294967295, %s3527_s12   ;;  %s2718_s14 = sadd.s32 4294967294, %s3527_s12   ;;  %s3527_s12 = sphi %s3591_s12, %s5115_s12   ;;  %s3523_s11 = sphi %s3589_s11, %s5114_s11   ;;  %s3519_s10 = sphi %s3587_s10, %s5113_s10   ;;  %s3515_s30 = sphi %s3585_s30, %s5112_s30  }
   0x6   : > { %s3610_s15 = sadd.s32 1, %s3527_s12   ;;  %s225_s16 = sadd.s32 1, %s3523_s11 }
   0x7   : > { %s222_s17 = ssub.s32 %s3527_s12, %s3610_s15  ;;  %p235_p0 = scmp.ne.s32.totalorder %s3523_s11, %s3519_s10 }
   0x8   : > { %p223_p1 = scmp.eq.s32.totalorder %s222_s17, 0  ;;  %p236_p2 = scmp.eq.s32.totalorder %s3606_s13, 1 }
   0x9   : > { %p241_p3 = scmp.ne.s32.totalorder %s3519_s10, %s3515_s30  ;;  %p242_p4 = scmp.eq.s32.totalorder %s2718_s14, 1 }
   0xa   : > { %s3621_s18 = scalar_select %p223_p1, %s3523_s11, %s225_s16  }
   0xb   : > { %p3623_p5 = por %p236_p2, %p235_p0  ;;  %p3627_p6 = por %p242_p4, %p241_p3 }
   0xc   : > { %p2719_p7 = scmp.ge.s32.totalorder %s3527_s12, 1  ;;  %p249_p8 = scmp.lt.s32.totalorder %s3527_s12, 3 }
   0xd   : > { %p2840_p9 = scmp.eq.s32.totalorder %s3606_s13, 0  ;;  %s272_s24 = sshll.u32 %s5087_s5, 4  ;;  %s273_s24 = int_to_ptr.hbm [resolvable:$true] %s272_s24 }
   0xe   : > { %p3634_p10 = pnand %p2719_p7, %p249_p8  ;;  %s3529_s25 = smov [#allocation2]  }
   0xf   : > { %s274_s26 = sshll.u32 %s3529_s25, 4  ;;  %s289_s29 = sshll.u32 %s5089_s7, 4  ;;  %s275_s26 = int_to_ptr.vmem [resolvable:$true] %s274_s26  ;;  %s290_s29 = int_to_ptr.hbm [resolvable:$true] %s289_s29 }
  0x10   : > { %p2829_p11 = pneg %p3634_p10  ;;  %s3530_s14 = smov 256  }
  0x11   : > { %s3531_s16 = smov 16   ;;  %s3532_s17 = smov [#allocation5]  }
  0x12   : > { %p2830_p12 = pnand %p2840_p9, %p2829_p11  ;;  %s291_s22 = sshll.u32 %s3532_s17, 4  ;;  %s292_s22 = int_to_ptr.vmem [resolvable:$true] %s291_s22 }
  0x13   : > { %319 = sbr.rel (%p3634_p10) target bundleno = 1084 (0x43c), region = 56 }
  0x14   : > { %2832 = dma.hbm_to_vmem [thread:$0]  (!%p2830_p12), %s273_s24, 8192, %s275_s26, [#allocation3], %s3530_s14, %s3530_s14, %s3531_s16  }
  0x15   : > { %2835 = dma.hbm_to_vmem [thread:$0]  (!%p2830_p12), %s290_s29, 8192, %s292_s22, [#allocation6], %s3530_s14, %s3530_s14, %s3531_s16  }
  0x18   : > { %3502 = dma.done.wait (%p2840_p9), [#allocation3], 8192  }
  0x19   : > { %3504 = vsyncadd (%p2840_p9), [#allocation3], 4294959104 }
  0x1a   : > { %3506 = dma.done.wait (%p2840_p9), [#allocation6], 8192  }
  0x1b   : > { %3508 = vsyncadd (%p2840_p9), [#allocation6], 4294959104  ;;  %s2727_s23 = sshll.u32 %s3606_s13, 5  ;;  %vm408_vm0 = vcmask 64512   ;;  %v400_v0 = vld [vmem:[%s5083_s1] sm:$0xff]  ;;  %v401_v1 = vld [vmem:[%s5083_s1 + $0x8] sm:$0xff] }
  0x1c   : > { %p362_p13 = scmp.lt.s32.totalorder %s2727_s23, 63  ;;  %520 = vmatpush.msra.mxu0 %v400_v0  ;;  %633 = vmatpush.msra.mxu1 %v401_v1  ;;  %v825_v5 = vld [vmem:[%s5085_s3 + $0xf0] sm:$0xff]  ;;  %v826_v7 = vld [vmem:[%s5085_s3 + $0xf8] sm:$0xff]  ;;  %v823_v8 = vld [vmem:[%s5085_s3 + $0xe0] sm:$0xff]  ;;  %s2800_s21 = sshll.u32 %s3606_s13, 9 }
  0x1d   : > { %v857_v6 = vld [vmem:[%s5085_s3 + $0x1f0] sm:$0xff]  ;;  %2802 = vmatpush.msra.mxu3 %v401_v1  ;;  %2801 = vmatpush.msra.mxu2 %v400_v0  ;;  %v858_v9 = vld [vmem:[%s5085_s3 + $0x1f8] sm:$0xff]  ;;  %v855_v10 = vld [vmem:[%s5085_s3 + $0x1e0] sm:$0xff] }
  0x1e   : > { %s5117_s23 = smov (!%p362_p13, %s2727_s23), 63  ;;  %v824_v11 = vld [vmem:[%s5085_s3 + $0xe8] sm:$0xff]  ;;  %1091 = vmatpush.msrb.mxu0 %v826_v7  ;;  %1204 = vmatpush.msrb.mxu1 %v858_v9  ;;  %v821_v12 = vld [vmem:[%s5085_s3 + $0xd0] sm:$0xff]  ;;  %v819_v16 = vld [vmem:[%s5085_s3 + $0xc0] sm:$0xff] }
  0x1f   : > { %s2728_s24 = sshll.u32 %s5117_s23, 3  ;;  %865 = vmatpush.msrb.mxu2 %v825_v5  ;;  %978 = vmatpush.msrb.mxu3 %v857_v6  ;;  %v856_v13 = vld [vmem:[%s5085_s3 + $0x1e8] sm:$0xff]  ;;  %v853_v14 = vld [vmem:[%s5085_s3 + $0x1d0] sm:$0xff]  ;;  %v822_v17 = vld [vmem:[%s5085_s3 + $0xd8] sm:$0xff]  ;;  %s358_s23 = sand.u32 1, %s3519_s10  }
  0x20   : > { %s3662_s26 = scalar_lea.vmem %s5082_s0, %s2728_s24  ;;  %1092 = vmatpush.msrb.mxu0 %v824_v11  ;;  %1205 = vmatpush.msrb.mxu1 %v856_v13  ;;  %v854_v19 = vld [vmem:[%s5085_s3 + $0x1d8] sm:$0xff]  ;;  %v851_v20 = vld [vmem:[%s5085_s3 + $0x1c0] sm:$0xff]  ;;  %v817_v21 = vld [vmem:[%s5085_s3 + $0xb0] sm:$0xff]  ;;  %s2726_s24 = sshll.u32 %s358_s23, 9 }
  0x21   : > { %v368_v2 = vld [vmem:[%s3662_s26] sm:$0xff]  ;;  %v385_v4 = vld [vmem:[%s3662_s26 + $0x88] sm:$0xff]  ;;  %866 = vmatpush.msrb.mxu2 %v823_v8  ;;  %979 = vmatpush.msrb.mxu3 %v855_v10  ;;  %v386_v18 = vld [vmem:[%s3662_s26 + $0x90] sm:$0xff]  ;;  %s4871_s25 = scalar_lea.vmem [#allocation7], %s2726_s24  ;;  %s2618_s13 = scalar_lea.sflag [#allocation4], %s358_s23 }
  0x22   : > { %v3672_v3 = vld [vmem:[%s3662_s26 + $0x80] sm:$0xff]  ;;  %2729 = vmatmul.msk.f32.vlgmr.msra.gmra.mxu0 %vm408_vm0, %v368_v2  ;;  %2761 = vmatmul.msk.f32.vlgmr.msra.gmra.mxu1 %vm408_vm0, %v368_v2  ;;  %v369_v15 = vld [vmem:[%s3662_s26 + $0x8] sm:$0xff]  ;;  %v370_v24 = vld [vmem:[%s3662_s26 + $0x10] sm:$0xff]  ;;  %s2631_s29 = sshll.u32 %s4871_s25, 4  ;;  %s2632_s29 = int_to_ptr.vmem [resolvable:$true] %s2631_s29 }
  0x23   : > { %2777 = vmatmul.msk.f32.vlgmr.msra.gmra.mxu3 %vm408_vm0, %v3672_v3  ;;  %2746 = vmatmul.msk.f32.vlgmr.msra.gmra.mxu2 %vm408_vm0, %v385_v4  ;;  %v820_v22 = vld [vmem:[%s5085_s3 + $0xc8] sm:$0xff]  ;;  %v387_v25 = vld [vmem:[%s3662_s26 + $0x98] sm:$0xff]  ;;  %v849_v26 = vld [vmem:[%s5085_s3 + $0x1b0] sm:$0xff] }
  0x24   : > { %867 = vmatpush.msrb.mxu2 %v821_v12  ;;  %980 = vmatpush.msrb.mxu3 %v853_v14  ;;  %v852_v23 = vld [vmem:[%s5085_s3 + $0x1c8] sm:$0xff]  ;;  %v815_v27 = vld [vmem:[%s5085_s3 + $0xa0] sm:$0xff]  ;;  %v818_v28 = vld [vmem:[%s5085_s3 + $0xb8] sm:$0xff] }
  0x25   : > { %1093 = vmatpush.msrb.mxu0 %v822_v17  ;;  %1206 = vmatpush.msrb.mxu1 %v854_v19  ;;  %v850_v29 = vld [vmem:[%s5085_s3 + $0x1b8] sm:$0xff]  ;;  %v388_v31 = vld [vmem:[%s3662_s26 + $0xa0] sm:$0xff]  ;;  %v813_v33 = vld [vmem:[%s5085_s3 + $0x90] sm:$0xff] }
  0x26   : > { %868 = vmatpush.msrb.mxu2 %v819_v16  ;;  %981 = vmatpush.msrb.mxu3 %v851_v20  ;;  %v371_v30 = vld [vmem:[%s3662_s26 + $0x18] sm:$0xff]  ;;  %v847_v32 = vld [vmem:[%s5085_s3 + $0x1a0] sm:$0xff]  ;;  %v848_v34 = vld [vmem:[%s5085_s3 + $0x1a8] sm:$0xff] }
  0x27   : > { %1094 = vmatpush.msrb.mxu0 %v820_v22  ;;  %1207 = vmatpush.msrb.mxu1 %v852_v23  ;;  %v372_v35 = vld [vmem:[%s3662_s26 + $0x20] sm:$0xff]  ;;  %v389_v36 = vld [vmem:[%s3662_s26 + $0xa8] sm:$0xff]  ;;  %v845_v38 = vld [vmem:[%s5085_s3 + $0x190] sm:$0xff] }
  0x28   : > { %869 = vmatpush.msrb.mxu2 %v817_v21  ;;  %982 = vmatpush.msrb.mxu3 %v849_v26  ;;  %v816_v37 = vld [vmem:[%s5085_s3 + $0xa8] sm:$0xff]  ;;  %v811_v39 = vld [vmem:[%s5085_s3 + $0x80] sm:$0xff]  ;;  %v846_v40 = vld [vmem:[%s5085_s3 + $0x198] sm:$0xff] }
  0x29   : > { %1095 = vmatpush.msrb.mxu0 %v818_v28  ;;  %1208 = vmatpush.msrb.mxu1 %v850_v29  ;;  %v373_v41 = vld [vmem:[%s3662_s26 + $0x28] sm:$0xff]  ;;  %v390_v42 = vld [vmem:[%s3662_s26 + $0xb0] sm:$0xff]  ;;  %v814_v43 = vld [vmem:[%s5085_s3 + $0x98] sm:$0xff] }
  0x2a   : > { %2730 = vmatmul.msk.f32.gmra.mxu0 %vm408_vm0, %v369_v15  ;;  %2762 = vmatmul.msk.f32.gmra.mxu1 %vm408_vm0, %v369_v15  ;;  %v843_v44 = vld [vmem:[%s5085_s3 + $0x180] sm:$0xff]  ;;  %v809_v45 = vld [vmem:[%s5085_s3 + $0x70] sm:$0xff]  ;;  %v844_v46 = vld [vmem:[%s5085_s3 + $0x188] sm:$0xff] }
  0x2b   : > { %2778 = vmatmul.msk.f32.gmra.mxu3 %vm408_vm0, %v385_v4  ;;  %2747 = vmatmul.msk.f32.gmra.mxu2 %vm408_vm0, %v386_v18  ;;  %v374_v47 = vld [vmem:[%s3662_s26 + $0x30] sm:$0xff]  ;;  %v391_v48 = vld [vmem:[%s3662_s26 + $0xb8] sm:$0xff]  ;;  %v812_v50 = vld [vmem:[%s5085_s3 + $0x88] sm:$0xff] }
  0x2c   : > { %870 = vmatpush.msrb.mxu2 %v815_v27  ;;  %983 = vmatpush.msrb.mxu3 %v847_v32  ;;  %v841_v49 = vld [vmem:[%s5085_s3 + $0x170] sm:$0xff]  ;;  %v807_v51 = vld [vmem:[%s5085_s3 + $0x60] sm:$0xff]  ;;  %v842_v52 = vld [vmem:[%s5085_s3 + $0x178] sm:$0xff] }
  0x2d   : > { %1209 = vmatpush.msrb.mxu1 %v848_v34  ;;  %1096 = vmatpush.msrb.mxu0 %v816_v37  ;;  %v375_v53 = vld [vmem:[%s3662_s26 + $0x38] sm:$0xff]  ;;  %v392_v54 = vld [vmem:[%s3662_s26 + $0xc0] sm:$0xff]  ;;  %v805_v57 = vld [vmem:[%s5085_s3 + $0x50] sm:$0xff] }
  0x2e   : > { %871 = vmatpush.msrb.mxu2 %v813_v33  ;;  %984 = vmatpush.msrb.mxu3 %v845_v38  ;;  %v839_v55 = vld [vmem:[%s5085_s3 + $0x160] sm:$0xff]  ;;  %v810_v56 = vld [vmem:[%s5085_s3 + $0x78] sm:$0xff]  ;;  %v840_v58 = vld [vmem:[%s5085_s3 + $0x168] sm:$0xff] }
  0x2f   : > { %1210 = vmatpush.msrb.mxu1 %v846_v40  ;;  %1097 = vmatpush.msrb.mxu0 %v814_v43  ;;  %v376_v59 = vld [vmem:[%s3662_s26 + $0x40] sm:$0xff]  ;;  %v393_v60 = vld [vmem:[%s3662_s26 + $0xc8] sm:$0xff]  ;;  %v837_v61 = vld [vmem:[%s5085_s3 + $0x150] sm:$0xff] }
  0x30   : > { %872 = vmatpush.msrb.mxu2 %v811_v39  ;;  %985 = vmatpush.msrb.mxu3 %v843_v44  ;;  %v803_v62 = vld [vmem:[%s5085_s3 + $0x40] sm:$0xff]  ;;  %v808_v63 = vld [vmem:[%s5085_s3 + $0x68] sm:$0xff]  ;;  %v838_v0 = vld [vmem:[%s5085_s3 + $0x158] sm:$0xff] }
  0x31   : > { %1211 = vmatpush.msrb.mxu1 %v844_v46  ;;  %1098 = vmatpush.msrb.mxu0 %v812_v50  ;;  %v377_v1 = vld [vmem:[%s3662_s26 + $0x48] sm:$0xff]  ;;  %v394_v2 = vld [vmem:[%s3662_s26 + $0xd0] sm:$0xff]  ;;  %v835_v5 = vld [vmem:[%s5085_s3 + $0x140] sm:$0xff] }
  0x32   : > { %2731 = vmatmul.msk.f32.gmra.mxu0 %vm408_vm0, %v370_v24  ;;  %2763 = vmatmul.msk.f32.gmra.mxu1 %vm408_vm0, %v370_v24  ;;  %v801_v4 = vld [vmem:[%s5085_s3 + $0x30] sm:$0xff]  ;;  %v806_v6 = vld [vmem:[%s5085_s3 + $0x58] sm:$0xff]  ;;  %v836_v7 = vld [vmem:[%s5085_s3 + $0x148] sm:$0xff] }
  0x33   : > { %2779 = vmatmul.msk.f32.gmra.mxu3 %vm408_vm0, %v386_v18  ;;  %2748 = vmatmul.msk.f32.gmra.mxu2 %vm408_vm0, %v387_v25  ;;  %v378_v8 = vld [vmem:[%s3662_s26 + $0x50] sm:$0xff]  ;;  %v395_v9 = vld [vmem:[%s3662_s26 + $0xd8] sm:$0xff]  ;;  %v799_v10 = vld [vmem:[%s5085_s3 + $0x20] sm:$0xff] }
  0x34   : > { %873 = vmatpush.msrb.mxu2 %v809_v45  ;;  %986 = vmatpush.msrb.mxu3 %v841_v49  ;;  %v833_v11 = vld [vmem:[%s5085_s3 + $0x130] sm:$0xff]  ;;  %v804_v12 = vld [vmem:[%s5085_s3 + $0x48] sm:$0xff]  ;;  %v834_v13 = vld [vmem:[%s5085_s3 + $0x138] sm:$0xff] }
  0x35   : > { %1212 = vmatpush.msrb.mxu1 %v842_v52  ;;  %1099 = vmatpush.msrb.mxu0 %v810_v56  ;;  %v379_v14 = vld [vmem:[%s3662_s26 + $0x58] sm:$0xff]  ;;  %v396_v15 = vld [vmem:[%s3662_s26 + $0xe0] sm:$0xff]  ;;  %v797_v16 = vld [vmem:[%s5085_s3 + $0x10] sm:$0xff] }
  0x36   : > { %874 = vmatpush.msrb.mxu2 %v807_v51  ;;  %987 = vmatpush.msrb.mxu3 %v839_v55  ;;  %v831_v17 = vld [vmem:[%s5085_s3 + $0x120] sm:$0xff]  ;;  %v802_v18 = vld [vmem:[%s5085_s3 + $0x38] sm:$0xff]  ;;  %v397_v20 = vld [vmem:[%s3662_s26 + $0xe8] sm:$0xff] }
  0x37   : > { %1213 = vmatpush.msrb.mxu1 %v840_v58  ;;  %1100 = vmatpush.msrb.mxu0 %v808_v63  ;;  %v380_v19 = vld [vmem:[%s3662_s26 + $0x60] sm:$0xff]  ;;  %v832_v21 = vld [vmem:[%s5085_s3 + $0x128] sm:$0xff]  ;;  %v829_v23 = vld [vmem:[%s5085_s3 + $0x110] sm:$0xff] }
  0x38   : > { %875 = vmatpush.msrb.mxu2 %v805_v57  ;;  %988 = vmatpush.msrb.mxu3 %v837_v61  ;;  %v795_v22 = vld [vmem:[%s5085_s3] sm:$0xff]  ;;  %v800_v24 = vld [vmem:[%s5085_s3 + $0x28] sm:$0xff]  ;;  %v798_v27 = vld [vmem:[%s5085_s3 + $0x18] sm:$0xff] }
  0x39   : > { %1214 = vmatpush.msrb.mxu1 %v838_v0  ;;  %1101 = vmatpush.msrb.mxu0 %v806_v6  ;;  %v381_v26 = vld [vmem:[%s3662_s26 + $0x68] sm:$0xff]  ;;  %v827_v28 = vld [vmem:[%s5085_s3 + $0x100] sm:$0xff]  ;;  %v1411_v32 = vld [vmem:[#allocation2 + $0xf0] sm:$0xff] }
  0x3a   : > { %2732 = vmatmul.msk.f32.gmra.mxu0 %vm408_vm0, %v371_v30  ;;  %2764 = vmatmul.msk.f32.gmra.mxu1 %vm408_vm0, %v371_v30  ;;  %v828_v29 = vld [vmem:[%s5085_s3 + $0x108] sm:$0xff]  ;;  %v398_v30 = vld [vmem:[%s3662_s26 + $0xf0] sm:$0xff]  ;;  %v399_v34 = vld [vmem:[%s3662_s26 + $0xf8] sm:$0xff] }
  0x3b   : > { %2780 = vmatmul.msk.f32.gmra.mxu3 %vm408_vm0, %v387_v25  ;;  %2749 = vmatmul.msk.f32.gmra.mxu2 %vm408_vm0, %v388_v31  ;;  %v830_v25 = vld [vmem:[%s5085_s3 + $0x118] sm:$0xff]  ;;  %v382_v33 = vld [vmem:[%s3662_s26 + $0x70] sm:$0xff]  ;;  %v402_v37 = vld [vmem:[%s5084_s2] sm:$0x3] }
  0x3c   : > { %876 = vmatpush.msrb.mxu2 %v803_v62  ;;  %989 = vmatpush.msrb.mxu3 %v835_v5  ;;  %v1409_v38 = vld [vmem:[#allocation2 + $0xe0] sm:$0xff]  ;;  %v1444_v39 = vld [vmem:[#allocation2 + $0x1f8] sm:$0xff]  ;;  %v3962_v40 = vperm.slane %v402_v37, 0  ;;  %v1442_v56 = vld [vmem:[#allocation2 + $0x1e8] sm:$0xff] }
  0x3d   : > { %1215 = vmatpush.msrb.mxu1 %v836_v7  ;;  %1102 = vmatpush.msrb.mxu0 %v804_v12  ;;  %v1412_v46 = vld [vmem:[#allocation2 + $0xf8] sm:$0xff]  ;;  %v1405_v12 = vld [vmem:[#allocation2 + $0xc0] sm:$0xff] }
  0x3e   : > { %877 = vmatpush.msrb.mxu2 %v801_v4  ;;  %990 = vmatpush.msrb.mxu3 %v833_v11 }
  0x3f   : > { %1216 = vmatpush.msrb.mxu1 %v834_v13  ;;  %1103 = vmatpush.msrb.mxu0 %v802_v18  ;;  %v1440_v13 = vld [vmem:[#allocation2 + $0x1d8] sm:$0xff] }
  0x40   : > { %878 = vmatpush.msrb.mxu2 %v799_v10  ;;  %991 = vmatpush.msrb.mxu3 %v831_v17 }
  0x41   : > { %1217 = vmatpush.msrb.mxu1 %v832_v21  ;;  %1104 = vmatpush.msrb.mxu0 %v800_v24 }
  0x42   : > { %2733 = vmatmul.msk.f32.gmra.mxu0 %vm408_vm0, %v372_v35  ;;  %2765 = vmatmul.msk.f32.gmra.mxu1 %vm408_vm0, %v372_v35  ;;  %v1443_v35 = vld [vmem:[#allocation2 + $0x1f0] sm:$0xff] }
  0x43   : > { %2781 = vmatmul.msk.f32.gmra.mxu3 %vm408_vm0, %v388_v31  ;;  %2750 = vmatmul.msk.f32.gmra.mxu2 %vm408_vm0, %v389_v36  ;;  %v796_v31 = vld [vmem:[%s5085_s3 + $0x8] sm:$0xff] }
  0x44   : > { %879 = vmatpush.msrb.mxu2 %v797_v16  ;;  %992 = vmatpush.msrb.mxu3 %v829_v23  ;;  %v1437_v23 = vld [vmem:[#allocation2 + $0x1c0] sm:$0xff] }
  0x45   : > { %1218 = vmatpush.msrb.mxu1 %v830_v25  ;;  %1105 = vmatpush.msrb.mxu0 %v798_v27 }
  0x46   : > { %880 = vmatpush.msrb.mxu2 %v795_v22  ;;  %993 = vmatpush.msrb.mxu3 %v827_v28  ;;  %v1408_v22 = vld [vmem:[#allocation2 + $0xd8] sm:$0xff] }
  0x47   : > { %1219 = vmatpush.msrb.mxu1 %v828_v29  ;;  %1106 = vmatpush.msrb.mxu0 %v796_v31 }
  0x48   : > { %1451 = vmatpush.msra.mxu2 %v1411_v32  ;;  %1564 = vmatpush.msra.mxu3 %v1443_v35  ;;  %v1403_v32 = vld [vmem:[#allocation2 + $0xb0] sm:$0xff] }
  0x49   : > { %1790 = vmatpush.msra.mxu1 %v1444_v39  ;;  %1677 = vmatpush.msra.mxu0 %v1412_v46 }
  0x4a   : > { %2734 = vmatmul.msk.f32.gmra.mxu0 %vm408_vm0, %v373_v41  ;;  %2766 = vmatmul.msk.f32.gmra.mxu1 %vm408_vm0, %v373_v41  ;;  %v3964_v41 = vperm.slane %v402_v37, 1 }
  0x4b   : > { %2782 = vmatmul.msk.f32.gmra.mxu3 %vm408_vm0, %v389_v36  ;;  %2751 = vmatmul.msk.f32.gmra.mxu2 %vm408_vm0, %v390_v42  ;;  %v383_v36 = vld [vmem:[%s3662_s26 + $0x78] sm:$0xff]  ;;  %s2630_s26 = scalar_lea.hbm %s5091_s9, %s2800_s21  ;;  %s3477_s21 = scalar_lea.hbm %s5091_s9, 1024 }
  0x4c   : > { %1452 = vmatpush.msra.mxu2 %v1409_v38  ;;  %1791 = vmatpush.msra.mxu1 %v1442_v56  ;;  %v1436_v56 = vld [vmem:[#allocation2 + $0x1b8] sm:$0xff]  ;;  %s2633_s14 = sshll.u32 %s2630_s26, 4  ;;  %s2634_s14 = int_to_ptr.hbm [resolvable:$true] %s2633_s14 }
  0x4d   : > { %s3471_s16 = sshra.s32 %s2634_s14, 4  ;;  %s3472_s16 = int_to_ptr.hbm [resolvable:$true] %s3471_s16 }
  0x4e   : > { %1792 = vmatpush.msra.mxu1 %v1440_v13  ;;  %s3473_s17 = scalar_lea.hbm %s3472_s16, 512  ;;  %p3478_p3 = scmp.lt.s32.totalorder %s3472_s16, %s5091_s9 }
  0x4f   : > { %p3474_p0 = scmp.ne.s32.totalorder %s3472_s16, %s3473_s17  ;;  %p3479_p4 = scmp.lt.s32.totalorder %s3477_s21, %s3473_s17 }
  0x51   : > { %p3475_p1 = pnand %p3474_p0, %p3623_p5  ;;  %p3480_p7 = por %p3479_p4, %p3478_p3 }
  0x52   : > { %2735 = vmatmul.msk.f32.gmra.mxu0 %vm408_vm0, %v374_v47  ;;  %2767 = vmatmul.msk.f32.gmra.mxu1 %vm408_vm0, %v374_v47  ;;  %v1441_v47 = vld [vmem:[#allocation2 + $0x1e0] sm:$0xff] }
  0x53   : > { %2783 = vmatmul.msk.f32.gmra.mxu3 %vm408_vm0, %v390_v42  ;;  %2752 = vmatmul.msk.f32.gmra.mxu2 %vm408_vm0, %v391_v48  ;;  %p3476_p2 = pneg %p3475_p1 }
  0x54   : > { %1565 = vmatpush.msra.mxu3 %v1441_v47 }
  0x55   : > { %p3481_p8 = pnand %p3480_p7, %p3476_p2 }
  0x5a   : > { %2736 = vmatmul.msk.f32.gmra.mxu0 %vm408_vm0, %v375_v53  ;;  %2768 = vmatmul.msk.f32.gmra.mxu1 %vm408_vm0, %v375_v53 }
  0x5b   : > { %2784 = vmatmul.msk.f32.gmra.mxu3 %vm408_vm0, %v391_v48  ;;  %2753 = vmatmul.msk.f32.gmra.mxu2 %vm408_vm0, %v392_v54 }
  0x62   : > { %2737 = vmatmul.msk.f32.gmra.mxu0 %vm408_vm0, %v376_v59  ;;  %2769 = vmatmul.msk.f32.gmra.mxu1 %vm408_vm0, %v376_v59 }
  0x63   : > { %2785 = vmatmul.msk.f32.gmra.mxu3 %vm408_vm0, %v392_v54  ;;  %2754 = vmatmul.msk.f32.gmra.mxu2 %vm408_vm0, %v393_v60 }
  0x6a   : > { %2738 = vmatmul.msk.f32.gmra.mxu0 %vm408_vm0, %v377_v1  ;;  %2770 = vmatmul.msk.f32.gmra.mxu1 %vm408_vm0, %v377_v1  ;;  %v1410_v1 = vld [vmem:[#allocation2 + $0xe8] sm:$0xff] }
  0x6b   : > { %2786 = vmatmul.msk.f32.gmra.mxu3 %vm408_vm0, %v393_v60  ;;  %2755 = vmatmul.msk.f32.gmra.mxu2 %vm408_vm0, %v394_v2 }
  0x6c   : > { %1678 = vmatpush.msra.mxu0 %v1410_v1 }
  0x6e   : > { %1679 = vmatpush.msra.mxu0 %v1408_v22 }
  0x72   : > { %2739 = vmatmul.msk.f32.gmra.mxu0 %vm408_vm0, %v378_v8  ;;  %2771 = vmatmul.msk.f32.gmra.mxu1 %vm408_vm0, %v378_v8 }
  0x73   : > { %2787 = vmatmul.msk.f32.gmra.mxu3 %vm408_vm0, %v394_v2  ;;  %2756 = vmatmul.msk.f32.gmra.mxu2 %vm408_vm0, %v395_v9  ;;  %v1439_v2 = vld [vmem:[#allocation2 + $0x1d0] sm:$0xff] }
  0x74   : > { %1566 = vmatpush.msra.mxu3 %v1439_v2 }
  0x76   : > { %1567 = vmatpush.msra.mxu3 %v1437_v23 }
  0x7a   : > { %2740 = vmatmul.msk.f32.gmra.mxu0 %vm408_vm0, %v379_v14  ;;  %2772 = vmatmul.msk.f32.gmra.mxu1 %vm408_vm0, %v379_v14 }
  0x7b   : > { %2788 = vmatmul.msk.f32.gmra.mxu3 %vm408_vm0, %v395_v9  ;;  %2757 = vmatmul.msk.f32.gmra.mxu2 %vm408_vm0, %v396_v15 }
  0x82   : > { %2741 = vmatmul.msk.f32.gmra.mxu0 %vm408_vm0, %v380_v19  ;;  %2773 = vmatmul.msk.f32.gmra.mxu1 %vm408_vm0, %v380_v19 }
  0x83   : > { %2789 = vmatmul.msk.f32.gmra.mxu3 %vm408_vm0, %v396_v15  ;;  %2758 = vmatmul.msk.f32.gmra.mxu2 %vm408_vm0, %v397_v20 }
  0x8a   : > { %2742 = vmatmul.msk.f32.gmra.mxu0 %vm408_vm0, %v381_v26  ;;  %2774 = vmatmul.msk.f32.gmra.mxu1 %vm408_vm0, %v381_v26 }
  0x8b   : > { %2790 = vmatmul.msk.f32.gmra.mxu3 %vm408_vm0, %v397_v20  ;;  %2759 = vmatmul.msk.f32.gmra.mxu2 %vm408_vm0, %v398_v30 }
  0x92   : > { %2743 = vmatmul.msk.f32.gmra.mxu0 %vm408_vm0, %v382_v33  ;;  %2775 = vmatmul.msk.f32.gmra.mxu1 %vm408_vm0, %v382_v33  ;;  %v1438_v33 = vld [vmem:[#allocation2 + $0x1c8] sm:$0xff] }
  0x93   : > { %2791 = vmatmul.msk.f32.gmra.mxu3 %vm408_vm0, %v398_v30  ;;  %2760 = vmatmul.msk.f32.gmra.mxu2 %vm408_vm0, %v399_v34 }
  0x94   : > { %1793 = vmatpush.msra.mxu1 %v1438_v33 }
  0x96   : > { %1794 = vmatpush.msra.mxu1 %v1436_v56  ;;  %v1400_v56 = vld [vmem:[#allocation2 + $0x98] sm:$0xff] }
  0x9a   : > { %2744 = vmatmul.msk.f32.gmra.mxu0 %vm408_vm0, %v383_v36  ;;  %2776 = vmatmul.msk.f32.gmra.mxu1 %vm408_vm0, %v383_v36 }
  0x9b   : > { %2792 = vmatmul.msk.f32.gmra.mxu3 %vm408_vm0, %v399_v34 }
  0x9f   : > { %v522_v42 = vpop.f32.mrf.mxu0  ;;  %v635_v43 = vpop.f32.mrf.mxu1 }
  0xa0   : > { %v523_v44 = vadd.f32 %v522_v42, %v3962_v40  ;;  %v636_v45 = vadd.f32 %v635_v43, %v3964_v41 }
  0xa2   : > { %2883 = vtanh.f32 %v523_v44  ;;  %2745 = vmatmul.msk.f32.gmra.mxu0 %vm408_vm0, %v3672_v3  ;;  %v1407_v3 = vld [vmem:[#allocation2 + $0xd0] sm:$0xff]  ;;  %v1406_v44 = vld [vmem:[#allocation2 + $0xc8] sm:$0xff] }
  0xa3   : > { %2885 = vtanh.f32 %v636_v45  ;;  %1453 = vmatpush.msra.mxu2 %v1407_v3  ;;  %v1435_v45 = vld [vmem:[#allocation2 + $0x1b0] sm:$0xff]  ;;  %1680 = vmatpush.msra.mxu0 %v1406_v44  ;;  %v1401_v3 = vld [vmem:[#allocation2 + $0xa0] sm:$0xff] }
  0xa4   : > { %1568 = vmatpush.msra.mxu3 %v1435_v45  ;;  %v1397_v44 = vld [vmem:[#allocation2 + $0x80] sm:$0xff]  ;;  %v1432_v45 = vld [vmem:[#allocation2 + $0x198] sm:$0xff] }
  0xa5   : > { %1454 = vmatpush.msra.mxu2 %v1405_v12 }
  0xa6   : > { %v3973_v53 = vpop.f32.mrf.mxu3  ;;  %v3975_v54 = vpop.f32.mrf.mxu2 }
  0xa7   : > { %v525_v48 = vpop.f32.mrf.mxu0  ;;  %v638_v49 = vpop.f32.mrf.mxu1  ;;  %1455 = vmatpush.msra.mxu2 %v1403_v32 }
  0xa8   : > { %v2884_v50 = vpop.eup %2883  ;;  %v526_v51 = vadd.f32 %v525_v48, %v3962_v40  ;;  %v639_v52 = vadd.f32 %v638_v49, %v3964_v41 }
  0xa9   : > { %v2886_v55 = vpop.eup %2885  ;;  %881 = vmatmul.f32.vlgmr.msrb.gmra.mxu2 %v2884_v50 }
  0xaa   : > { %2887 = vtanh.f32 %v526_v51  ;;  %994 = vmatmul.f32.vlgmr.msrb.gmra.mxu3 %v2886_v55  ;;  %1220 = vmatmul.f32.vlgmr.msrb.gmra.mxu1 %v2886_v55 }
  0xab   : > { %2889 = vtanh.f32 %v639_v52  ;;  %1107 = vmatmul.f32.vlgmr.msrb.gmra.mxu0 %v2884_v50  ;;  %1456 = vmatpush.msra.mxu2 %v1401_v3 }
  0xae   : > { %v3979_v62 = vpop.f32.mrf.mxu3  ;;  %v3981_v63 = vpop.f32.mrf.mxu2 }
  0xaf   : > { %v528_v57 = vpop.f32.mrf.mxu0  ;;  %v641_v58 = vpop.f32.mrf.mxu1 }
  0xb0   : > { %v2888_v59 = vpop.eup %2887  ;;  %v529_v60 = vadd.f32 %v528_v57, %v3962_v40  ;;  %v642_v61 = vadd.f32 %v641_v58, %v3964_v41 }
  0xb1   : > { %v2890_v0 = vpop.eup %2889  ;;  %884 = vmatmul.f32.gmra.mxu2 %v2888_v59 }
  0xb2   : > { %2891 = vtanh.f32 %v529_v60  ;;  %997 = vmatmul.f32.gmra.mxu3 %v2890_v0  ;;  %1223 = vmatmul.f32.gmra.mxu1 %v2890_v0 }
  0xb3   : > { %2893 = vtanh.f32 %v642_v61  ;;  %1110 = vmatmul.f32.gmra.mxu0 %v2888_v59 }
  0xb6   : > { %v3985_v9 = vpop.f32.mrf.mxu3  ;;  %v3987_v10 = vpop.f32.mrf.mxu2 }
  0xb7   : > { %v531_v4 = vpop.f32.mrf.mxu0  ;;  %v644_v5 = vpop.f32.mrf.mxu1 }
  0xb8   : > { %v2892_v6 = vpop.eup %2891  ;;  %v532_v7 = vadd.f32 %v531_v4, %v3962_v40  ;;  %v645_v8 = vadd.f32 %v644_v5, %v3964_v41  ;;  %v1404_v4 = vld [vmem:[#allocation2 + $0xb8] sm:$0xff]  ;;  %v1433_v5 = vld [vmem:[#allocation2 + $0x1a0] sm:$0xff] }
  0xb9   : > { %v2894_v11 = vpop.eup %2893  ;;  %887 = vmatmul.f32.gmra.mxu2 %v2892_v6  ;;  %1681 = vmatpush.msra.mxu0 %v1404_v4 }
  0xba   : > { %2895 = vtanh.f32 %v532_v7  ;;  %1000 = vmatmul.f32.gmra.mxu3 %v2894_v11  ;;  %1226 = vmatmul.f32.gmra.mxu1 %v2894_v11 }
  0xbb   : > { %2897 = vtanh.f32 %v645_v8  ;;  %1113 = vmatmul.f32.gmra.mxu0 %v2892_v6  ;;  %1569 = vmatpush.msra.mxu3 %v1433_v5 }
  0xbe   : > { %v3991_v19 = vpop.f32.mrf.mxu3  ;;  %v3993_v20 = vpop.f32.mrf.mxu2 }
  0xbf   : > { %v534_v14 = vpop.f32.mrf.mxu0  ;;  %v647_v15 = vpop.f32.mrf.mxu1 }
  0xc0   : > { %v2896_v16 = vpop.eup %2895  ;;  %v535_v17 = vadd.f32 %v534_v14, %v3962_v40  ;;  %v648_v18 = vadd.f32 %v647_v15, %v3964_v41 }
  0xc1   : > { %v2898_v21 = vpop.eup %2897  ;;  %890 = vmatmul.f32.gmra.mxu2 %v2896_v16 }
  0xc2   : > { %2899 = vtanh.f32 %v535_v17  ;;  %1003 = vmatmul.f32.gmra.mxu3 %v2898_v21  ;;  %1229 = vmatmul.f32.gmra.mxu1 %v2898_v21  ;;  %v1434_v17 = vld [vmem:[#allocation2 + $0x1a8] sm:$0xff] }
  0xc3   : > { %2901 = vtanh.f32 %v648_v18  ;;  %1116 = vmatmul.f32.gmra.mxu0 %v2896_v16  ;;  %v1399_v16 = vld [vmem:[#allocation2 + $0x90] sm:$0xff]  ;;  %1795 = vmatpush.msra.mxu1 %v1434_v17 }
  0xc4   : > { %1457 = vmatpush.msra.mxu2 %v1399_v16 }
  0xc5   : > { %1796 = vmatpush.msra.mxu1 %v1432_v45  ;;  %v684_v45 = vadd.f32 %v3973_v53, %v3964_v41  ;;  %v574_v53 = vadd.f32 %v3975_v54, %v3962_v40 }
  0xc6   : > { %v3997_v29 = vpop.f32.mrf.mxu3  ;;  %v3999_v30 = vpop.f32.mrf.mxu2  ;;  %1458 = vmatpush.msra.mxu2 %v1397_v44  ;;  %v1428_v44 = vld [vmem:[#allocation2 + $0x178] sm:$0xff] }
  0xc7   : > { %v537_v24 = vpop.f32.mrf.mxu0  ;;  %v650_v25 = vpop.f32.mrf.mxu1 }
  0xc8   : > { %v2900_v26 = vpop.eup %2899  ;;  %v538_v27 = vadd.f32 %v537_v24, %v3962_v40  ;;  %v651_v28 = vadd.f32 %v650_v25, %v3964_v41 }
  0xc9   : > { %v2902_v31 = vpop.eup %2901  ;;  %893 = vmatmul.f32.gmra.mxu2 %v2900_v26 }
  0xca   : > { %2903 = vtanh.f32 %v538_v27  ;;  %1006 = vmatmul.f32.gmra.mxu3 %v2902_v31  ;;  %1232 = vmatmul.f32.gmra.mxu1 %v2902_v31  ;;  %v1431_v31 = vld [vmem:[#allocation2 + $0x190] sm:$0xff] }
  0xcb   : > { %2905 = vtanh.f32 %v651_v28  ;;  %1119 = vmatmul.f32.gmra.mxu0 %v2900_v26  ;;  %v1402_v28 = vld [vmem:[#allocation2 + $0xa8] sm:$0xff]  ;;  %1570 = vmatpush.msra.mxu3 %v1431_v31 }
  0xcc   : > { %1682 = vmatpush.msra.mxu0 %v1402_v28 }
  0xce   : > { %v4003_v39 = vpop.f32.mrf.mxu3  ;;  %v4005_v42 = vpop.f32.mrf.mxu2  ;;  %1683 = vmatpush.msra.mxu0 %v1400_v56  ;;  %v1396_v56 = vld [vmem:[#allocation2 + $0x78] sm:$0xff] }
  0xcf   : > { %v540_v34 = vpop.f32.mrf.mxu0  ;;  %v653_v35 = vpop.f32.mrf.mxu1 }
  0xd0   : > { %v2904_v36 = vpop.eup %2903  ;;  %v541_v37 = vadd.f32 %v540_v34, %v3962_v40  ;;  %v654_v38 = vadd.f32 %v653_v35, %v3964_v41 }
  0xd1   : > { %v2906_v43 = vpop.eup %2905  ;;  %896 = vmatmul.f32.gmra.mxu2 %v2904_v36 }
  0xd2   : > { %2907 = vtanh.f32 %v541_v37  ;;  %1009 = vmatmul.f32.gmra.mxu3 %v2906_v43  ;;  %1235 = vmatmul.f32.gmra.mxu1 %v2906_v43 }
  0xd3   : > { %2909 = vtanh.f32 %v654_v38  ;;  %1122 = vmatmul.f32.gmra.mxu0 %v2904_v36 }
  0xd6   : > { %v4009_v51 = vpop.f32.mrf.mxu3  ;;  %v4011_v52 = vpop.f32.mrf.mxu2 }
  0xd7   : > { %v543_v46 = vpop.f32.mrf.mxu0  ;;  %v656_v47 = vpop.f32.mrf.mxu1 }
  0xd8   : > { %v2908_v48 = vpop.eup %2907  ;;  %v544_v49 = vadd.f32 %v543_v46, %v3962_v40  ;;  %v657_v50 = vadd.f32 %v656_v47, %v3964_v41 }
  0xd9   : > { %v2910_v55 = vpop.eup %2909  ;;  %899 = vmatmul.f32.gmra.mxu2 %v2908_v48 }
  0xda   : > { %2911 = vtanh.f32 %v544_v49  ;;  %1012 = vmatmul.f32.gmra.mxu3 %v2910_v55  ;;  %1238 = vmatmul.f32.gmra.mxu1 %v2910_v55 }
  0xdb   : > { %2913 = vtanh.f32 %v657_v50  ;;  %1125 = vmatmul.f32.gmra.mxu0 %v2908_v48 }
  0xde   : > { %v4015_v0 = vpop.f32.mrf.mxu3  ;;  %v4017_v1 = vpop.f32.mrf.mxu2 }
  0xdf   : > { %v546_v57 = vpop.f32.mrf.mxu0  ;;  %v659_v58 = vpop.f32.mrf.mxu1 }
  0xe0   : > { %v2912_v59 = vpop.eup %2911  ;;  %v547_v60 = vadd.f32 %v546_v57, %v3962_v40  ;;  %v660_v61 = vadd.f32 %v659_v58, %v3964_v41  ;;  %v1429_v57 = vld [vmem:[#allocation2 + $0x180] sm:$0xff] }
  0xe1   : > { %v2914_v2 = vpop.eup %2913  ;;  %902 = vmatmul.f32.gmra.mxu2 %v2912_v59  ;;  %1571 = vmatpush.msra.mxu3 %v1429_v57  ;;  %v1425_v57 = vld [vmem:[#allocation2 + $0x160] sm:$0xff] }
  0xe2   : > { %2915 = vtanh.f32 %v547_v60  ;;  %1015 = vmatmul.f32.gmra.mxu3 %v2914_v2  ;;  %1241 = vmatmul.f32.gmra.mxu1 %v2914_v2 }
  0xe3   : > { %2917 = vtanh.f32 %v660_v61  ;;  %1128 = vmatmul.f32.gmra.mxu0 %v2912_v59 }
  0xe6   : > { %v4021_v13 = vpop.f32.mrf.mxu3  ;;  %v4023_v14 = vpop.f32.mrf.mxu2 }
  0xe7   : > { %v549_v6 = vpop.f32.mrf.mxu0  ;;  %v662_v7 = vpop.f32.mrf.mxu1 }
  0xe8   : > { %v2916_v8 = vpop.eup %2915  ;;  %v550_v11 = vadd.f32 %v549_v6, %v3962_v40  ;;  %v663_v12 = vadd.f32 %v662_v7, %v3964_v41  ;;  %v1395_v7 = vld [vmem:[#allocation2 + $0x70] sm:$0xff] }
  0xe9   : > { %v2918_v15 = vpop.eup %2917  ;;  %905 = vmatmul.f32.gmra.mxu2 %v2916_v8 }
  0xea   : > { %2919 = vtanh.f32 %v550_v11  ;;  %1018 = vmatmul.f32.gmra.mxu3 %v2918_v15  ;;  %1244 = vmatmul.f32.gmra.mxu1 %v2918_v15 }
  0xeb   : > { %2921 = vtanh.f32 %v663_v12  ;;  %1131 = vmatmul.f32.gmra.mxu0 %v2916_v8  ;;  %v1430_v8 = vld [vmem:[#allocation2 + $0x188] sm:$0xff]  ;;  %1459 = vmatpush.msra.mxu2 %v1395_v7 }
  0xec   : > { %1797 = vmatpush.msra.mxu1 %v1430_v8 }
  0xee   : > { %v4027_v25 = vpop.f32.mrf.mxu3  ;;  %v4029_v26 = vpop.f32.mrf.mxu2  ;;  %1798 = vmatpush.msra.mxu1 %v1428_v44 }
  0xef   : > { %v552_v18 = vpop.f32.mrf.mxu0  ;;  %v665_v21 = vpop.f32.mrf.mxu1 }
  0xf0   : > { %v2920_v22 = vpop.eup %2919  ;;  %v553_v23 = vadd.f32 %v552_v18, %v3962_v40  ;;  %v666_v24 = vadd.f32 %v665_v21, %v3964_v41 }
  0xf1   : > { %v2922_v27 = vpop.eup %2921  ;;  %908 = vmatmul.f32.gmra.mxu2 %v2920_v22 }
  0xf2   : > { %2923 = vtanh.f32 %v553_v23  ;;  %1021 = vmatmul.f32.gmra.mxu3 %v2922_v27  ;;  %1247 = vmatmul.f32.gmra.mxu1 %v2922_v27  ;;  %v1398_v23 = vld [vmem:[#allocation2 + $0x88] sm:$0xff] }
  0xf3   : > { %2925 = vtanh.f32 %v666_v24  ;;  %1134 = vmatmul.f32.gmra.mxu0 %v2920_v22  ;;  %v1427_v24 = vld [vmem:[#allocation2 + $0x170] sm:$0xff] }
  0xf4   : > { %1684 = vmatpush.msra.mxu0 %v1398_v23  ;;  %1572 = vmatpush.msra.mxu3 %v1427_v24 }
  0xf6   : > { %v4033_v37 = vpop.f32.mrf.mxu3  ;;  %v4035_v43 = vpop.f32.mrf.mxu2  ;;  %1685 = vmatpush.msra.mxu0 %v1396_v56  ;;  %1573 = vmatpush.msra.mxu3 %v1425_v57  ;;  %v1389_v56 = vld [vmem:[#allocation2 + $0x40] sm:$0xff]  ;;  %v583_v57 = vadd.f32 %v3993_v20, %v3962_v40 }
  0xf7   : > { %v555_v32 = vpop.f32.mrf.mxu0  ;;  %v668_v33 = vpop.f32.mrf.mxu1 }
  0xf8   : > { %v2924_v34 = vpop.eup %2923  ;;  %v556_v35 = vadd.f32 %v555_v32, %v3962_v40  ;;  %v669_v36 = vadd.f32 %v668_v33, %v3964_v41 }
  0xf9   : > { %v2926_v38 = vpop.eup %2925  ;;  %911 = vmatmul.f32.gmra.mxu2 %v2924_v34 }
  0xfa   : > { %2927 = vtanh.f32 %v556_v35  ;;  %1024 = vmatmul.f32.gmra.mxu3 %v2926_v38  ;;  %1250 = vmatmul.f32.gmra.mxu1 %v2926_v38  ;;  %v1393_v38 = vld [vmem:[#allocation2 + $0x60] sm:$0xff] }
  0xfb   : > { %2929 = vtanh.f32 %v669_v36  ;;  %1137 = vmatmul.f32.gmra.mxu0 %v2924_v34  ;;  %1460 = vmatpush.msra.mxu2 %v1393_v38 }
  0xfe   : > { %v4039_v55 = vpop.f32.mrf.mxu3  ;;  %v4041_v58 = vpop.f32.mrf.mxu2 }
  0xff   : > { %v558_v46 = vpop.f32.mrf.mxu0  ;;  %v671_v47 = vpop.f32.mrf.mxu1 }
 0x100   : > { %v2928_v48 = vpop.eup %2927  ;;  %v559_v49 = vadd.f32 %v558_v46, %v3962_v40  ;;  %v672_v50 = vadd.f32 %v671_v47, %v3964_v41 }
 0x101   : > { %v2930_v3 = vpop.eup %2929  ;;  %914 = vmatmul.f32.gmra.mxu2 %v2928_v48 }
 0x102   : > { %2931 = vtanh.f32 %v559_v49  ;;  %1027 = vmatmul.f32.gmra.mxu3 %v2930_v3  ;;  %1253 = vmatmul.f32.gmra.mxu1 %v2930_v3 }
 0x103   : > { %2933 = vtanh.f32 %v672_v50  ;;  %1140 = vmatmul.f32.gmra.mxu0 %v2928_v48 }
 0x106   : > { %v4045_v5 = vpop.f32.mrf.mxu3  ;;  %v4047_v11 = vpop.f32.mrf.mxu2 }
 0x107   : > { %v561_v59 = vpop.f32.mrf.mxu0  ;;  %v674_v60 = vpop.f32.mrf.mxu1 }
 0x108   : > { %v2932_v61 = vpop.eup %2931  ;;  %v562_v2 = vadd.f32 %v561_v59, %v3962_v40  ;;  %v675_v4 = vadd.f32 %v674_v60, %v3964_v41  ;;  %v687_v59 = vadd.f32 %v3979_v62, %v3964_v41 }
 0x109   : > { %v2934_v6 = vpop.eup %2933  ;;  %917 = vmatmul.f32.gmra.mxu2 %v2932_v61 }
 0x10a   : > { %2935 = vtanh.f32 %v562_v2  ;;  %1030 = vmatmul.f32.gmra.mxu3 %v2934_v6  ;;  %1256 = vmatmul.f32.gmra.mxu1 %v2934_v6  ;;  %v4075_v2 = vld [vmem:[%s5086_s4] sm:$0x3] }
 0x10b   : > { %2937 = vtanh.f32 %v675_v4  ;;  %1143 = vmatmul.f32.gmra.mxu0 %v2932_v61  ;;  %v4080_v7 = vperm.slane %v4075_v2, 0 }
 0x10e   : > { %v4051_v21 = vpop.f32.mrf.mxu3  ;;  %v4055_v34 = vpop.f32.mrf.mxu2 }
 0x10f   : > { %v564_v12 = vpop.f32.mrf.mxu0  ;;  %v677_v15 = vpop.f32.mrf.mxu1 }
 0x110   : > { %v2936_v16 = vpop.eup %2935  ;;  %v565_v17 = vadd.f32 %v564_v12, %v3962_v40  ;;  %v678_v18 = vadd.f32 %v677_v15, %v3964_v41  ;;  %v1391_v12 = vld [vmem:[#allocation2 + $0x50] sm:$0xff]  ;;  %v1426_v15 = vld [vmem:[#allocation2 + $0x168] sm:$0xff] }
 0x111   : > { %v2938_v22 = vpop.eup %2937  ;;  %920 = vmatmul.f32.gmra.mxu2 %v2936_v16  ;;  %1799 = vmatpush.msra.mxu1 %v1426_v15  ;;  %v1392_v15 = vld [vmem:[#allocation2 + $0x58] sm:$0xff] }
 0x112   : > { %2939 = vtanh.f32 %v565_v17  ;;  %1033 = vmatmul.f32.gmra.mxu3 %v2938_v22  ;;  %1259 = vmatmul.f32.gmra.mxu1 %v2938_v22  ;;  %v690_v17 = vadd.f32 %v3985_v9, %v3964_v41  ;;  %v1423_v9 = vld [vmem:[#allocation2 + $0x150] sm:$0xff] }
 0x113   : > { %2941 = vtanh.f32 %v678_v18  ;;  %1146 = vmatmul.f32.gmra.mxu0 %v2936_v16  ;;  %v577_v16 = vadd.f32 %v3981_v63, %v3962_v40  ;;  %1461 = vmatpush.msra.mxu2 %v1391_v12 }
 0x114   : > { %1574 = vmatpush.msra.mxu3 %v1423_v9 }
 0x115   : > { %1462 = vmatpush.msra.mxu2 %v1389_v56 }
 0x116   : > { %v4057_v36 = vpop.f32.mrf.mxu3  ;;  %v4062_v50 = vpop.f32.mrf.mxu2 }
 0x117   : > { %v567_v27 = vpop.f32.mrf.mxu0  ;;  %v680_v28 = vpop.f32.mrf.mxu1 }
 0x118   : > { %v2940_v31 = vpop.eup %2939  ;;  %v568_v32 = vadd.f32 %v567_v27, %v3962_v40  ;;  %v681_v33 = vadd.f32 %v680_v28, %v3964_v41 }
 0x119   : > { %v2942_v35 = vpop.eup %2941  ;;  %923 = vmatmul.f32.gmra.mxu2 %v2940_v31 }
 0x11a   : > { %2943 = vtanh.f32 %v568_v32  ;;  %1036 = vmatmul.f32.gmra.mxu3 %v2942_v35  ;;  %1262 = vmatmul.f32.gmra.mxu1 %v2942_v35  ;;  %v1394_v32 = vld [vmem:[#allocation2 + $0x68] sm:$0xff]  ;;  %v693_v35 = vadd.f32 %v3991_v19, %v3964_v41  ;;  %v1424_v19 = vld [vmem:[#allocation2 + $0x158] sm:$0xff] }
 0x11b   : > { %2945 = vtanh.f32 %v681_v33  ;;  %1149 = vmatmul.f32.gmra.mxu0 %v2940_v31  ;;  %v580_v33 = vadd.f32 %v3987_v10, %v3962_v40  ;;  %1800 = vmatpush.msra.mxu1 %v1424_v19 }
 0x11c   : > { %1686 = vmatpush.msra.mxu0 %v1394_v32 }
 0x11e   : > { %v4064_v3 = vpop.f32.mrf.mxu3  ;;  %1687 = vmatpush.msra.mxu0 %v1392_v15 }
 0x11f   : > { %v570_v46 = vpop.f32.mrf.mxu0 }
 0x120   : > { %v2944_v47 = vpop.eup %2943  ;;  %v571_v48 = vadd.f32 %v570_v46, %v3962_v40 }
 0x121   : > { %v2946_v49 = vpop.eup %2945  ;;  %926 = vmatmul.f32.gmra.mxu2 %v2944_v47 }
 0x122   : > { %2947 = vtanh.f32 %v571_v48  ;;  %1039 = vmatmul.f32.gmra.mxu3 %v2946_v49  ;;  %1265 = vmatmul.f32.gmra.mxu1 %v2946_v49 }
 0x123   : > { %2949 = vtanh.f32 %v684_v45  ;;  %1152 = vmatmul.f32.gmra.mxu0 %v2944_v47 }
 0x124   : > { %2951 = vtanh.f32 %v574_v53  ;;  %v696_v53 = vadd.f32 %v3997_v29, %v3964_v41  ;;  %v1421_v29 = vld [vmem:[#allocation2 + $0x140] sm:$0xff] }
 0x125   : > { %2953 = vtanh.f32 %v687_v59  ;;  %1575 = vmatpush.msra.mxu3 %v1421_v29 }
 0x126   : > { %2955 = vtanh.f32 %v577_v16  ;;  %v586_v16 = vadd.f32 %v3999_v30, %v3962_v40 }
 0x127   : > { %v4070_v60 = vpop.f32.mrf.mxu1  ;;  %2957 = vtanh.f32 %v690_v17  ;;  %v699_v17 = vadd.f32 %v4003_v39, %v3964_v41  ;;  %v1422_v39 = vld [vmem:[#allocation2 + $0x148] sm:$0xff] }
 0x128   : > { %v2948_v61 = vpop.eup %2947  ;;  %v4077_v4 = vpop.f32.mrf.mxu0  ;;  %2959 = vtanh.f32 %v580_v33  ;;  %v1387_v33 = vld [vmem:[#allocation2 + $0x30] sm:$0xff]  ;;  %1801 = vmatpush.msra.mxu1 %v1422_v39 }
 0x129   : > { %v2950_v6 = vpop.eup %2949  ;;  %929 = vmatmul.f32.gmra.mxu2 %v2948_v61  ;;  %2961 = vtanh.f32 %v693_v35  ;;  %v589_v35 = vadd.f32 %v4005_v42, %v3962_v40 }
 0x12a   : > { %1042 = vmatmul.f32.gmra.mxu3 %v2950_v6  ;;  %1268 = vmatmul.f32.gmra.mxu1 %v2950_v6  ;;  %v2952_v23 = vpop.eup %2951  ;;  %2963 = vtanh.f32 %v583_v57 }
 0x12b   : > { %1155 = vmatmul.f32.gmra.mxu0 %v2948_v61  ;;  %v2954_v27 = vpop.eup %2953  ;;  %2965 = vtanh.f32 %v696_v53  ;;  %1463 = vmatpush.msra.mxu2 %v1387_v33  ;;  %v1390_v53 = vld [vmem:[#allocation2 + $0x48] sm:$0xff] }
 0x12c   : > { %v882_v54 = vpop.f32.mrf.mxu2  ;;  %v2956_v45 = vpop.eup %2955  ;;  %2967 = vtanh.f32 %v586_v16  ;;  %1688 = vmatpush.msra.mxu0 %v1390_v53 }
 0x12d   : > { %v883_v62 = vadd.f32 %v882_v54, %v4080_v7  ;;  %v995_v8 = vpop.f32.mrf.mxu3  ;;  %v2958_v47 = vpop.eup %2957  ;;  %2969 = vtanh.f32 %v699_v17 }
 0x12e   : > { %v2960_v6 = vpop.eup %2959  ;;  %2971 = vtanh.f32 %v589_v35 }
 0x12f   : > { %v4087_v18 = vadd.f32 %v995_v8, %v883_v62  ;;  %v4089_v22 = vpop.f32.mrf.mxu1  ;;  %v2962_v62 = vpop.eup %2961 }
 0x130   : > { %v4091_v24 = vpop.f32.mrf.mxu0 }
 0x131   : > { %932 = vmatmul.f32.gmra.mxu2 %v2952_v23 }
 0x132   : > { %1045 = vmatmul.f32.gmra.mxu3 %v2954_v27  ;;  %1271 = vmatmul.f32.gmra.mxu1 %v2954_v27 }
 0x133   : > { %1158 = vmatmul.f32.gmra.mxu0 %v2952_v23 }
 0x134   : > { %v885_v63 = vpop.f32.mrf.mxu2 }
 0x135   : > { %v886_v28 = vadd.f32 %v885_v63, %v4080_v7  ;;  %v998_v31 = vpop.f32.mrf.mxu3  ;;  %v2964_v63 = vpop.eup %2963 }
 0x137   : > { %v4098_v38 = vadd.f32 %v998_v31, %v886_v28  ;;  %v4100_v44 = vpop.f32.mrf.mxu1  ;;  %v2966_v31 = vpop.eup %2965 }
 0x138   : > { %v4102_v46 = vpop.f32.mrf.mxu0 }
 0x139   : > { %935 = vmatmul.f32.gmra.mxu2 %v2956_v45 }
 0x13a   : > { %1048 = vmatmul.f32.gmra.mxu3 %v2958_v47  ;;  %1274 = vmatmul.f32.gmra.mxu1 %v2958_v47 }
 0x13b   : > { %1161 = vmatmul.f32.gmra.mxu0 %v2956_v45  ;;  %v702_v45 = vadd.f32 %v4009_v51, %v3964_v41  ;;  %v1419_v51 = vld [vmem:[#allocation2 + $0x130] sm:$0xff] }
 0x13c   : > { %v888_v10 = vpop.f32.mrf.mxu2  ;;  %1576 = vmatpush.msra.mxu3 %v1419_v51 }
 0x13d   : > { %v889_v48 = vadd.f32 %v888_v10, %v4080_v7  ;;  %v1001_v49 = vpop.f32.mrf.mxu3  ;;  %2973 = vtanh.f32 %v702_v45 }
 0x13f   : > { %v4109_v59 = vadd.f32 %v1001_v49, %v889_v48  ;;  %v4111_v61 = vpop.f32.mrf.mxu1  ;;  %v2968_v48 = vpop.eup %2967 }
 0x140   : > { %v4113_v54 = vpop.f32.mrf.mxu0  ;;  %v2970_v56 = vpop.eup %2969 }
 0x141   : > { %938 = vmatmul.f32.gmra.mxu2 %v2960_v6 }
 0x142   : > { %1051 = vmatmul.f32.gmra.mxu3 %v2962_v62  ;;  %1277 = vmatmul.f32.gmra.mxu1 %v2962_v62  ;;  %v705_v62 = vadd.f32 %v4015_v0, %v3964_v41  ;;  %v1420_v0 = vld [vmem:[#allocation2 + $0x138] sm:$0xff] }
 0x143   : > { %1164 = vmatmul.f32.gmra.mxu0 %v2960_v6  ;;  %v592_v6 = vadd.f32 %v4011_v52, %v3962_v40  ;;  %1802 = vmatpush.msra.mxu1 %v1420_v0 }
 0x144   : > { %v891_v20 = vpop.f32.mrf.mxu2 }
 0x145   : > { %v892_v8 = vadd.f32 %v891_v20, %v4080_v7  ;;  %v1004_v12 = vpop.f32.mrf.mxu3  ;;  %2975 = vtanh.f32 %v592_v6 }
 0x146   : > { %2977 = vtanh.f32 %v705_v62 }
 0x147   : > { %v4120_v23 = vadd.f32 %v1004_v12, %v892_v8  ;;  %v4122_v27 = vpop.f32.mrf.mxu1  ;;  %v2972_v12 = vpop.eup %2971 }
 0x148   : > { %v4124_v28 = vpop.f32.mrf.mxu0  ;;  %v2974_v29 = vpop.eup %2973 }
 0x149   : > { %941 = vmatmul.f32.gmra.mxu2 %v2964_v63 }
 0x14a   : > { %1054 = vmatmul.f32.gmra.mxu3 %v2966_v31  ;;  %1280 = vmatmul.f32.gmra.mxu1 %v2966_v31  ;;  %v595_v31 = vadd.f32 %v4017_v1, %v3962_v40 }
 0x14b   : > { %1167 = vmatmul.f32.gmra.mxu0 %v2964_v63  ;;  %v1385_v63 = vld [vmem:[#allocation2 + $0x20] sm:$0xff]  ;;  %v2976_v33 = vpop.eup %2975 }
 0x14c   : > { %v894_v30 = vpop.f32.mrf.mxu2  ;;  %1464 = vmatpush.msra.mxu2 %v1385_v63  ;;  %v2978_v35 = vpop.eup %2977  ;;  %2979 = vtanh.f32 %v595_v31 }
 0x14d   : > { %v895_v32 = vadd.f32 %v894_v30, %v4080_v7  ;;  %v1007_v9 = vpop.f32.mrf.mxu3  ;;  %v708_v30 = vadd.f32 %v4021_v13, %v3964_v41  ;;  %v1417_v13 = vld [vmem:[#allocation2 + $0x120] sm:$0xff] }
 0x14e   : > { %1577 = vmatpush.msra.mxu3 %v1417_v13 }
 0x14f   : > { %v4131_v47 = vadd.f32 %v1007_v9, %v895_v32  ;;  %v4133_v10 = vpop.f32.mrf.mxu1  ;;  %2981 = vtanh.f32 %v708_v30 }
 0x150   : > { %v4135_v49 = vpop.f32.mrf.mxu0 }
 0x151   : > { %944 = vmatmul.f32.gmra.mxu2 %v2968_v48 }
 0x152   : > { %1057 = vmatmul.f32.gmra.mxu3 %v2970_v56  ;;  %1283 = vmatmul.f32.gmra.mxu1 %v2970_v56  ;;  %v1388_v56 = vld [vmem:[#allocation2 + $0x38] sm:$0xff]  ;;  %v2980_v51 = vpop.eup %2979 }
 0x153   : > { %1170 = vmatmul.f32.gmra.mxu0 %v2968_v48 }
 0x154   : > { %v897_v42 = vpop.f32.mrf.mxu2  ;;  %1689 = vmatpush.msra.mxu0 %v1388_v56  ;;  %v717_v56 = vadd.f32 %v4039_v55, %v3964_v41  ;;  %v1416_v55 = vld [vmem:[#allocation2 + $0x118] sm:$0xff] }
 0x155   : > { %v898_v19 = vadd.f32 %v897_v42, %v4080_v7  ;;  %v1010_v57 = vpop.f32.mrf.mxu3  ;;  %v598_v42 = vadd.f32 %v4023_v14, %v3962_v40  ;;  %v2982_v62 = vpop.eup %2981 }
 0x157   : > { %v4142_v20 = vadd.f32 %v1010_v57, %v898_v19  ;;  %v4144_v8 = vpop.f32.mrf.mxu1  ;;  %v711_v19 = vadd.f32 %v4027_v25, %v3964_v41  ;;  %2983 = vtanh.f32 %v598_v42  ;;  %v1418_v25 = vld [vmem:[#allocation2 + $0x128] sm:$0xff] }
 0x158   : > { %v4146_v15 = vpop.f32.mrf.mxu0  ;;  %1803 = vmatpush.msra.mxu1 %v1418_v25  ;;  %v720_v25 = vadd.f32 %v4045_v5, %v3964_v41  ;;  %v1413_v5 = vld [vmem:[#allocation2 + $0x100] sm:$0xff] }
 0x159   : > { %947 = vmatmul.f32.gmra.mxu2 %v2972_v12  ;;  %2985 = vtanh.f32 %v711_v19 }
 0x15a   : > { %1060 = vmatmul.f32.gmra.mxu3 %v2974_v29  ;;  %1286 = vmatmul.f32.gmra.mxu1 %v2974_v29 }
 0x15b   : > { %1173 = vmatmul.f32.gmra.mxu0 %v2972_v12  ;;  %1804 = vmatpush.msra.mxu1 %v1416_v55 }
 0x15c   : > { %v900_v52 = vpop.f32.mrf.mxu2 }
 0x15d   : > { %v901_v16 = vadd.f32 %v900_v52, %v4080_v7  ;;  %v1013_v17 = vpop.f32.mrf.mxu3  ;;  %v1383_v52 = vld [vmem:[#allocation2 + $0x10] sm:$0xff]  ;;  %v2984_v31 = vpop.eup %2983 }
 0x15e   : > { %1465 = vmatpush.msra.mxu2 %v1383_v52  ;;  %v607_v52 = vadd.f32 %v4041_v58, %v3962_v40 }
 0x15f   : > { %v4153_v32 = vadd.f32 %v1013_v17, %v901_v16  ;;  %v4155_v9 = vpop.f32.mrf.mxu1  ;;  %v601_v16 = vadd.f32 %v4029_v26, %v3962_v40  ;;  %v714_v17 = vadd.f32 %v4033_v37, %v3964_v41  ;;  %v1415_v37 = vld [vmem:[#allocation2 + $0x110] sm:$0xff] }
 0x160   : > { %v4157_v39 = vpop.f32.mrf.mxu0  ;;  %1578 = vmatpush.msra.mxu3 %v1415_v37  ;;  %v610_v37 = vadd.f32 %v4047_v11, %v3962_v40 }
 0x161   : > { %950 = vmatmul.f32.gmra.mxu2 %v2976_v33  ;;  %2987 = vtanh.f32 %v601_v16 }
 0x162   : > { %1063 = vmatmul.f32.gmra.mxu3 %v2978_v35  ;;  %1289 = vmatmul.f32.gmra.mxu1 %v2978_v35  ;;  %2989 = vtanh.f32 %v714_v17 }
 0x163   : > { %1176 = vmatmul.f32.gmra.mxu0 %v2976_v33  ;;  %v2986_v33 = vpop.eup %2985  ;;  %1579 = vmatpush.msra.mxu3 %v1413_v5 }
 0x164   : > { %v903_v1 = vpop.f32.mrf.mxu2 }
 0x165   : > { %v904_v45 = vadd.f32 %v903_v1, %v4080_v7  ;;  %v1016_v48 = vpop.f32.mrf.mxu3 }
 0x167   : > { %v4164_v57 = vadd.f32 %v1016_v48, %v904_v45  ;;  %v4166_v53 = vpop.f32.mrf.mxu1  ;;  %v1386_v45 = vld [vmem:[#allocation2 + $0x28] sm:$0xff]  ;;  %v604_v48 = vadd.f32 %v4035_v43, %v3962_v40  ;;  %v2988_v19 = vpop.eup %2987 }
 0x168   : > { %v4168_v6 = vpop.f32.mrf.mxu0  ;;  %1690 = vmatpush.msra.mxu0 %v1386_v45  ;;  %v1384_v45 = vld [vmem:[#allocation2 + $0x18] sm:$0xff] }
 0x169   : > { %953 = vmatmul.f32.gmra.mxu2 %v2980_v51  ;;  %2991 = vtanh.f32 %v604_v48  ;;  %v723_v48 = vadd.f32 %v4051_v21, %v3964_v41 }
 0x16a   : > { %1066 = vmatmul.f32.gmra.mxu3 %v2982_v62  ;;  %1292 = vmatmul.f32.gmra.mxu1 %v2982_v62  ;;  %v2990_v62 = vpop.eup %2989  ;;  %2993 = vtanh.f32 %v717_v56 }
 0x16b   : > { %1179 = vmatmul.f32.gmra.mxu0 %v2980_v51  ;;  %2995 = vtanh.f32 %v607_v52  ;;  %v1997_v52 = vld [vmem:[#allocation5 + $0xf0] sm:$0xff] }
 0x16c   : > { %v906_v14 = vpop.f32.mrf.mxu2  ;;  %2997 = vtanh.f32 %v720_v25  ;;  %1691 = vmatpush.msra.mxu0 %v1384_v45  ;;  %v613_v25 = vadd.f32 %v4055_v34, %v3962_v40 }
 0x16d   : > { %v907_v12 = vadd.f32 %v906_v14, %v4080_v7  ;;  %v1019_v29 = vpop.f32.mrf.mxu3  ;;  %2999 = vtanh.f32 %v610_v37 }
 0x16e   : > { %3001 = vtanh.f32 %v723_v48  ;;  %v2029_v48 = vld [vmem:[#allocation5 + $0x1f0] sm:$0xff] }
 0x16f   : > { %v4175_v63 = vadd.f32 %v1019_v29, %v907_v12  ;;  %v4177_v0 = vpop.f32.mrf.mxu1  ;;  %v1381_v29 = vld [vmem:[#allocation2] sm:$0xff]  ;;  %3003 = vtanh.f32 %v613_v25  ;;  %2150 = vmatpush.msrb.mxu3 %v2029_v48 }
 0x170   : > { %v4179_v30 = vpop.f32.mrf.mxu0  ;;  %1466 = vmatpush.msra.mxu2 %v1381_v29  ;;  %v1382_v29 = vld [vmem:[#allocation2 + $0x8] sm:$0xff] }
 0x171   : > { %956 = vmatmul.f32.gmra.mxu2 %v2984_v31  ;;  %1692 = vmatpush.msra.mxu0 %v1382_v29 }
 0x172   : > { %1069 = vmatmul.f32.gmra.mxu3 %v2986_v33  ;;  %1295 = vmatmul.f32.gmra.mxu1 %v2986_v33 }
 0x173   : > { %1182 = vmatmul.f32.gmra.mxu0 %v2984_v31  ;;  %v2992_v31 = vpop.eup %2991  ;;  %2037 = vmatpush.msrb.mxu2 %v1997_v52  ;;  %v2030_v52 = vld [vmem:[#allocation5 + $0x1f8] sm:$0xff] }
 0x174   : > { %v909_v26 = vpop.f32.mrf.mxu2 }
 0x175   : > { %v910_v35 = vadd.f32 %v909_v26, %v4080_v7  ;;  %v1022_v1 = vpop.f32.mrf.mxu3  ;;  %v2994_v26 = vpop.eup %2993 }
 0x177   : > { %v4186_v13 = vadd.f32 %v1022_v1, %v910_v35  ;;  %v4188_v42 = vpop.f32.mrf.mxu1 }
 0x178   : > { %v4190_v51 = vpop.f32.mrf.mxu0 }
 0x179   : > { %959 = vmatmul.f32.gmra.mxu2 %v2988_v19 }
 0x17a   : > { %1072 = vmatmul.f32.gmra.mxu3 %v2990_v62  ;;  %1298 = vmatmul.f32.gmra.mxu1 %v2990_v62  ;;  %v2996_v62 = vpop.eup %2995 }
 0x17b   : > { %1185 = vmatmul.f32.gmra.mxu0 %v2988_v19 }
 0x17c   : > { %v912_v43 = vpop.f32.mrf.mxu2 }
 0x17d   : > { %v913_v14 = vadd.f32 %v912_v43, %v4080_v7  ;;  %v1025_v12 = vpop.f32.mrf.mxu3 }
 0x17f   : > { %v4197_v16 = vadd.f32 %v1025_v12, %v913_v14  ;;  %v4199_v17 = vpop.f32.mrf.mxu1  ;;  %v1414_v14 = vld [vmem:[#allocation2 + $0x108] sm:$0xff]  ;;  %v2998_v12 = vpop.eup %2997 }
 0x180   : > { %v4201_v33 = vpop.f32.mrf.mxu0  ;;  %1805 = vmatpush.msra.mxu1 %v1414_v14  ;;  %v4231_v14 = vperm.slane %v4075_v2, 1  ;;  %v1995_v2 = vld [vmem:[#allocation5 + $0xe0] sm:$0xff] }
 0x181   : > { %962 = vmatmul.f32.gmra.mxu2 %v2992_v31 }
 0x182   : > { %1075 = vmatmul.f32.gmra.mxu3 %v2994_v26  ;;  %1301 = vmatmul.f32.gmra.mxu1 %v2994_v26 }
 0x183   : > { %1188 = vmatmul.f32.gmra.mxu0 %v2992_v31  ;;  %v726_v31 = vadd.f32 %v4057_v36, %v3964_v41  ;;  %v616_v36 = vadd.f32 %v4062_v50, %v3962_v40  ;;  %v1109_v40 = vadd.f32 %v4077_v4, %v4231_v14  ;;  %2038 = vmatpush.msrb.mxu2 %v1995_v2 }
 0x184   : > { %v915_v58 = vpop.f32.mrf.mxu2  ;;  %2376 = vmatpush.msrb.mxu1 %v2030_v52  ;;  %v1112_v4 = vadd.f32 %v4091_v24, %v4231_v14  ;;  %v1115_v24 = vadd.f32 %v4102_v46, %v4231_v14  ;;  %v1993_v52 = vld [vmem:[#allocation5 + $0xd0] sm:$0xff]  ;;  %v1118_v46 = vadd.f32 %v4113_v54, %v4231_v14  ;;  %v1121_v54 = vadd.f32 %v4124_v28, %v4231_v14 }
 0x185   : > { %v916_v35 = vadd.f32 %v915_v58, %v4080_v7  ;;  %v1028_v1 = vpop.f32.mrf.mxu3  ;;  %3005 = vtanh.f32 %v726_v31  ;;  %v1222_v25 = vadd.f32 %v4070_v60, %v1109_v40  ;;  %2039 = vmatpush.msrb.mxu2 %v1993_v52  ;;  %v1124_v28 = vadd.f32 %v4135_v49, %v4231_v14 }
 0x186   : > { %3007 = vtanh.f32 %v616_v36  ;;  %v1998_v36 = vld [vmem:[#allocation5 + $0xf8] sm:$0xff] }
 0x187   : > { %v4208_v56 = vadd.f32 %v1028_v1, %v916_v35  ;;  %v4210_v19 = vpop.f32.mrf.mxu1  ;;  %v3000_v35 = vpop.eup %2999  ;;  %2263 = vmatpush.msrb.mxu0 %v1998_v36 }
 0x188   : > { %v4212_v43 = vpop.f32.mrf.mxu0  ;;  %v3002_v45 = vpop.eup %3001 }
 0x189   : > { %965 = vmatmul.f32.gmra.mxu2 %v2996_v62 }
 0x18a   : > { %1078 = vmatmul.f32.gmra.mxu3 %v2998_v12  ;;  %1304 = vmatmul.f32.gmra.mxu1 %v2998_v12 }
 0x18b   : > { %1191 = vmatmul.f32.gmra.mxu0 %v2996_v62  ;;  %v729_v62 = vadd.f32 %v4064_v3, %v3964_v41 }
 0x18c   : > { %v918_v11 = vpop.f32.mrf.mxu2 }
 0x18d   : > { %v919_v21 = vadd.f32 %v918_v11, %v4080_v7  ;;  %v1031_v55 = vpop.f32.mrf.mxu3  ;;  %v3004_v11 = vpop.eup %3003  ;;  %3009 = vtanh.f32 %v729_v62  ;;  %v2027_v62 = vld [vmem:[#allocation5 + $0x1e0] sm:$0xff] }
 0x18e   : > { %3011 = vtanh.f32 %v4087_v18  ;;  %2151 = vmatpush.msrb.mxu3 %v2027_v62  ;;  %v1996_v62 = vld [vmem:[#allocation5 + $0xe8] sm:$0xff] }
 0x18f   : > { %v4219_v26 = vadd.f32 %v1031_v55, %v919_v21  ;;  %v4221_v58 = vpop.f32.mrf.mxu1  ;;  %v3006_v55 = vpop.eup %3005  ;;  %3013 = vtanh.f32 %v1222_v25  ;;  %v2028_v25 = vld [vmem:[#allocation5 + $0x1e8] sm:$0xff]  ;;  %2264 = vmatpush.msrb.mxu0 %v1996_v62 }
 0x190   : > { %v4223_v1 = vpop.f32.mrf.mxu0  ;;  %3015 = vtanh.f32 %v4098_v38  ;;  %2377 = vmatpush.msrb.mxu1 %v2028_v25  ;;  %v1991_v25 = vld [vmem:[#allocation5 + $0xc0] sm:$0xff] }
 0x191   : > { %968 = vmatmul.f32.gmra.mxu2 %v3000_v35 }
 0x192   : > { %1081 = vmatmul.f32.gmra.mxu3 %v3002_v45  ;;  %1307 = vmatmul.f32.gmra.mxu1 %v3002_v45  ;;  %v3008_v45 = vpop.eup %3007 }
 0x193   : > { %1194 = vmatmul.f32.gmra.mxu0 %v3000_v35  ;;  %2040 = vmatpush.msrb.mxu2 %v1991_v25 }
 0x194   : > { %v921_v5 = vpop.f32.mrf.mxu2 }
 0x195   : > { %v922_v34 = vadd.f32 %v921_v5, %v4080_v7  ;;  %v1034_v37 = vpop.f32.mrf.mxu3 }
 0x197   : > { %v4233_v12 = vadd.f32 %v1034_v37, %v922_v34  ;;  %v4235_v29 = vpop.f32.mrf.mxu1  ;;  %v3010_v34 = vpop.eup %3009 }
 0x198   : > { %v4237_v21 = vpop.f32.mrf.mxu0  ;;  %v3012_v40 = vpop.eup %3011 }
 0x199   : > { %971 = vmatmul.f32.gmra.mxu2 %v3004_v11 }
 0x19a   : > { %1084 = vmatmul.f32.gmra.mxu3 %v3006_v55  ;;  %1310 = vmatmul.f32.gmra.mxu1 %v3006_v55 }
 0x19b   : > { %1197 = vmatmul.f32.gmra.mxu0 %v3004_v11  ;;  %v1225_v11 = vadd.f32 %v4089_v22, %v1112_v4 }
 0x19c   : > { %v924_v41 = vpop.f32.mrf.mxu2 }
 0x19d   : > { %v925_v50 = vadd.f32 %v924_v41, %v4080_v7  ;;  %v1037_v3 = vpop.f32.mrf.mxu3  ;;  %3017 = vtanh.f32 %v1225_v11  ;;  %v2025_v11 = vld [vmem:[#allocation5 + $0x1d0] sm:$0xff] }
 0x19e   : > { %3019 = vtanh.f32 %v4109_v59  ;;  %2152 = vmatpush.msrb.mxu3 %v2025_v11  ;;  %v4297_v11 = vld [vmem:[#allocation5 + $0xd8] sm:$0xff] }
 0x19f   : > { %v4243_v31 = vadd.f32 %v1037_v3, %v925_v50  ;;  %v4245_v35 = vpop.f32.mrf.mxu1  ;;  %v3014_v50 = vpop.eup %3013  ;;  %2265 = vmatpush.msrb.mxu0 %v4297_v11 }
 0x1a0   : > { %v4247_v5 = vpop.f32.mrf.mxu0  ;;  %v3016_v4 = vpop.eup %3015 }
 0x1a1   : > { %974 = vmatmul.f32.gmra.mxu2 %v3008_v45 }
 0x1a2   : > { %1087 = vmatmul.f32.gmra.mxu3 %v3010_v34  ;;  %1313 = vmatmul.f32.gmra.mxu1 %v3010_v34 }
 0x1a3   : > { %1200 = vmatmul.f32.gmra.mxu0 %v3008_v45  ;;  %v1228_v45 = vadd.f32 %v4100_v44, %v1115_v24 }
 0x1a4   : > { %v927_v37 = vpop.f32.mrf.mxu2 }
 0x1a5   : > { %v928_v60 = vadd.f32 %v927_v37, %v4080_v7  ;;  %v1040_v48 = vpop.f32.mrf.mxu3  ;;  %3021 = vtanh.f32 %v1228_v45  ;;  %v2026_v45 = vld [vmem:[#allocation5 + $0x1d8] sm:$0xff] }
 0x1a6   : > { %3023 = vtanh.f32 %v4120_v23  ;;  %2378 = vmatpush.msrb.mxu1 %v2026_v45  ;;  %v1989_v45 = vld [vmem:[#allocation5 + $0xb0] sm:$0xff] }
 0x1a7   : > { %v4254_v55 = vadd.f32 %v1040_v48, %v928_v60  ;;  %v4256_v18 = vpop.f32.mrf.mxu1  ;;  %v3018_v60 = vpop.eup %3017  ;;  %2041 = vmatpush.msrb.mxu2 %v1989_v45 }
 0x1a8   : > { %v4258_v41 = vpop.f32.mrf.mxu0  ;;  %v3020_v24 = vpop.eup %3019 }
 0x1a9   : > { %1467 = vmatmul.f32.vlgmr.msra.gmra.mxu2 %v3012_v40 }
 0x1aa   : > { %1580 = vmatmul.f32.vlgmr.msra.gmra.mxu3 %v3014_v50  ;;  %1806 = vmatmul.f32.vlgmr.msra.gmra.mxu1 %v3014_v50 }
 0x1ab   : > { %1693 = vmatmul.f32.vlgmr.msra.gmra.mxu0 %v3012_v40  ;;  %v1231_v40 = vadd.f32 %v4111_v61, %v1118_v46 }
 0x1ac   : > { %v930_v3 = vpop.f32.mrf.mxu2 }
 0x1ad   : > { %v931_v22 = vadd.f32 %v930_v3, %v4080_v7  ;;  %v1043_v2 = vpop.f32.mrf.mxu3  ;;  %3025 = vtanh.f32 %v1231_v40  ;;  %v2023_v40 = vld [vmem:[#allocation5 + $0x1c0] sm:$0xff] }
 0x1ae   : > { %3027 = vtanh.f32 %v4131_v47  ;;  %2153 = vmatpush.msrb.mxu3 %v2023_v40 }
 0x1af   : > { %v4265_v34 = vadd.f32 %v1043_v2, %v931_v22  ;;  %v4267_v38 = vpop.f32.mrf.mxu1  ;;  %v3022_v22 = vpop.eup %3021 }
 0x1b0   : > { %v4269_v37 = vpop.f32.mrf.mxu0  ;;  %v3024_v46 = vpop.eup %3023 }
 0x1b1   : > { %1470 = vmatmul.f32.gmra.mxu2 %v3016_v4 }
 0x1b2   : > { %1583 = vmatmul.f32.gmra.mxu3 %v3018_v60  ;;  %1809 = vmatmul.f32.gmra.mxu1 %v3018_v60 }
 0x1b3   : > { %1696 = vmatmul.f32.gmra.mxu0 %v3016_v4  ;;  %v1234_v4 = vadd.f32 %v4122_v27, %v1121_v54 }
 0x1b4   : > { %v933_v48 = vpop.f32.mrf.mxu2 }
 0x1b5   : > { %v934_v44 = vadd.f32 %v933_v48, %v4080_v7  ;;  %v1046_v36 = vpop.f32.mrf.mxu3  ;;  %3029 = vtanh.f32 %v1234_v4  ;;  %v2024_v4 = vld [vmem:[#allocation5 + $0x1c8] sm:$0xff] }
 0x1b6   : > { %3031 = vtanh.f32 %v4142_v20  ;;  %2379 = vmatpush.msrb.mxu1 %v2024_v4 }
 0x1b7   : > { %v4276_v50 = vadd.f32 %v1046_v36, %v934_v44  ;;  %v4278_v59 = vpop.f32.mrf.mxu1  ;;  %v3026_v44 = vpop.eup %3025 }
 0x1b8   : > { %v4280_v3 = vpop.f32.mrf.mxu0  ;;  %v3028_v54 = vpop.eup %3027 }
 0x1b9   : > { %1473 = vmatmul.f32.gmra.mxu2 %v3020_v24 }
 0x1ba   : > { %1586 = vmatmul.f32.gmra.mxu3 %v3022_v22  ;;  %1812 = vmatmul.f32.gmra.mxu1 %v3022_v22 }
 0x1bb   : > { %1699 = vmatmul.f32.gmra.mxu0 %v3020_v24  ;;  %v1237_v24 = vadd.f32 %v4133_v10, %v1124_v28  ;;  %v3030_v49 = vpop.eup %3029 }
 0x1bc   : > { %v936_v2 = vpop.f32.mrf.mxu2  ;;  %v3032_v28 = vpop.eup %3031 }
 0x1bd   : > { %v937_v61 = vadd.f32 %v936_v2, %v4080_v7  ;;  %v1049_v52 = vpop.f32.mrf.mxu3  ;;  %3033 = vtanh.f32 %v1237_v24  ;;  %v4322_v24 = vld [vmem:[#allocation5 + $0xc8] sm:$0xff] }
 0x1be   : > { %3035 = vtanh.f32 %v4153_v32  ;;  %2266 = vmatpush.msrb.mxu0 %v4322_v24 }
 0x1bf   : > { %v4287_v60 = vadd.f32 %v1049_v52, %v937_v61  ;;  %v4289_v23 = vpop.f32.mrf.mxu1  ;;  %v1127_v61 = vadd.f32 %v4146_v15, %v4231_v14  ;;  %v1130_v15 = vadd.f32 %v4157_v39, %v4231_v14 }
 0x1c0   : > { %v4291_v48 = vpop.f32.mrf.mxu0 }
 0x1c1   : > { %1476 = vmatmul.f32.gmra.mxu2 %v3024_v46 }
 0x1c2   : > { %1589 = vmatmul.f32.gmra.mxu3 %v3026_v44  ;;  %1815 = vmatmul.f32.gmra.mxu1 %v3026_v44 }
 0x1c3   : > { %1702 = vmatmul.f32.gmra.mxu0 %v3024_v46  ;;  %v1240_v46 = vadd.f32 %v4144_v8, %v1127_v61 }
 0x1c4   : > { %v939_v36 = vpop.f32.mrf.mxu2 }
 0x1c5   : > { %v940_v27 = vadd.f32 %v939_v36, %v4080_v7  ;;  %v1052_v62 = vpop.f32.mrf.mxu3  ;;  %3037 = vtanh.f32 %v1240_v46  ;;  %v1987_v46 = vld [vmem:[#allocation5 + $0xa0] sm:$0xff] }
 0x1c6   : > { %3039 = vtanh.f32 %v4164_v57  ;;  %2042 = vmatpush.msrb.mxu2 %v1987_v46  ;;  %v1139_v46 = vadd.f32 %v4190_v51, %v4231_v14  ;;  %v1142_v51 = vadd.f32 %v4201_v33, %v4231_v14 }
 0x1c7   : > { %v4301_v47 = vadd.f32 %v1052_v62, %v940_v27  ;;  %v4303_v22 = vpop.f32.mrf.mxu1  ;;  %v3034_v27 = vpop.eup %3033 }
 0x1c8   : > { %v4305_v2 = vpop.f32.mrf.mxu0 }
 0x1c9   : > { %1479 = vmatmul.f32.gmra.mxu2 %v3028_v54 }
 0x1ca   : > { %1592 = vmatmul.f32.gmra.mxu3 %v3030_v49  ;;  %1818 = vmatmul.f32.gmra.mxu1 %v3030_v49  ;;  %v1243_v49 = vadd.f32 %v4155_v9, %v1130_v15 }
 0x1cb   : > { %1705 = vmatmul.f32.gmra.mxu0 %v3028_v54  ;;  %v2021_v54 = vld [vmem:[#allocation5 + $0x1b0] sm:$0xff] }
 0x1cc   : > { %v942_v52 = vpop.f32.mrf.mxu2  ;;  %2154 = vmatpush.msrb.mxu3 %v2021_v54  ;;  %3041 = vtanh.f32 %v1243_v49 }
 0x1cd   : > { %v943_v10 = vadd.f32 %v942_v52, %v4080_v7  ;;  %v1055_v25 = vpop.f32.mrf.mxu3  ;;  %v3036_v52 = vpop.eup %3035  ;;  %3043 = vtanh.f32 %v4175_v63 }
 0x1ce   : > { %v3038_v39 = vpop.eup %3037 }
 0x1cf   : > { %v4312_v44 = vadd.f32 %v1055_v25, %v943_v10  ;;  %v4314_v20 = vpop.f32.mrf.mxu1  ;;  %v1133_v25 = vadd.f32 %v4168_v6, %v4231_v14  ;;  %v1136_v6 = vadd.f32 %v4179_v30, %v4231_v14 }
 0x1d0   : > { %v4316_v36 = vpop.f32.mrf.mxu0 }
 0x1d1   : > { %1482 = vmatmul.f32.gmra.mxu2 %v3032_v28 }
 0x1d2   : > { %1595 = vmatmul.f32.gmra.mxu3 %v3034_v27  ;;  %1821 = vmatmul.f32.gmra.mxu1 %v3034_v27  ;;  %v1246_v27 = vadd.f32 %v4166_v53, %v1133_v25  ;;  %v1249_v25 = vadd.f32 %v4177_v0, %v1136_v6  ;;  %v1252_v6 = vadd.f32 %v4188_v42, %v1139_v46  ;;  %v2017_v46 = vld [vmem:[#allocation5 + $0x190] sm:$0xff] }
 0x1d3   : > { %1708 = vmatmul.f32.gmra.mxu0 %v3032_v28  ;;  %v2022_v28 = vld [vmem:[#allocation5 + $0x1b8] sm:$0xff] }
 0x1d4   : > { %v945_v62 = vpop.f32.mrf.mxu2  ;;  %2380 = vmatpush.msrb.mxu1 %v2022_v28  ;;  %3045 = vtanh.f32 %v1246_v27 }
 0x1d5   : > { %v946_v8 = vadd.f32 %v945_v62, %v4080_v7  ;;  %v1058_v40 = vpop.f32.mrf.mxu3  ;;  %v3040_v62 = vpop.eup %3039  ;;  %3047 = vtanh.f32 %v4186_v13 }
 0x1d6   : > { %3049 = vtanh.f32 %v1249_v25 }
 0x1d7   : > { %v4326_v32 = vadd.f32 %v1058_v40, %v946_v8  ;;  %v4328_v61 = vpop.f32.mrf.mxu1  ;;  %v3042_v40 = vpop.eup %3041  ;;  %3051 = vtanh.f32 %v4197_v16 }
 0x1d8   : > { %v4330_v10 = vpop.f32.mrf.mxu0  ;;  %3053 = vtanh.f32 %v1252_v6 }
 0x1d9   : > { %1485 = vmatmul.f32.gmra.mxu2 %v3036_v52  ;;  %3055 = vtanh.f32 %v4208_v56 }
 0x1da   : > { %1598 = vmatmul.f32.gmra.mxu3 %v3038_v39  ;;  %1824 = vmatmul.f32.gmra.mxu1 %v3038_v39  ;;  %v2019_v39 = vld [vmem:[#allocation5 + $0x1a0] sm:$0xff] }
 0x1db   : > { %1711 = vmatmul.f32.gmra.mxu0 %v3036_v52  ;;  %v4347_v52 = vld [vmem:[#allocation5 + $0xb8] sm:$0xff]  ;;  %2155 = vmatpush.msrb.mxu3 %v2019_v39 }
 0x1dc   : > { %v948_v45 = vpop.f32.mrf.mxu2  ;;  %2267 = vmatpush.msrb.mxu0 %v4347_v52 }
 0x1dd   : > { %v949_v9 = vadd.f32 %v948_v45, %v4080_v7  ;;  %v1061_v4 = vpop.f32.mrf.mxu3  ;;  %2156 = vmatpush.msrb.mxu3 %v2017_v46 }
 0x1df   : > { %v4337_v15 = vadd.f32 %v1061_v4, %v949_v9  ;;  %v4339_v57 = vpop.f32.mrf.mxu1  ;;  %v3044_v9 = vpop.eup %3043 }
 0x1e0   : > { %v4341_v8 = vpop.f32.mrf.mxu0  ;;  %v3046_v30 = vpop.eup %3045 }
 0x1e1   : > { %1488 = vmatmul.f32.gmra.mxu2 %v3040_v62 }
 0x1e2   : > { %1601 = vmatmul.f32.gmra.mxu3 %v3042_v40  ;;  %1827 = vmatmul.f32.gmra.mxu1 %v3042_v40  ;;  %v2020_v40 = vld [vmem:[#allocation5 + $0x1a8] sm:$0xff] }
 0x1e3   : > { %1714 = vmatmul.f32.gmra.mxu0 %v3040_v62  ;;  %v1985_v62 = vld [vmem:[#allocation5 + $0x90] sm:$0xff]  ;;  %2381 = vmatpush.msrb.mxu1 %v2020_v40  ;;  %v1145_v40 = vadd.f32 %v4212_v43, %v4231_v14  ;;  %v1148_v43 = vadd.f32 %v4223_v1, %v4231_v14 }
 0x1e4   : > { %v951_v54 = vpop.f32.mrf.mxu2  ;;  %2043 = vmatpush.msrb.mxu2 %v1985_v62 }
 0x1e5   : > { %v952_v53 = vadd.f32 %v951_v54, %v4080_v7  ;;  %v1064_v49 = vpop.f32.mrf.mxu3 }
 0x1e7   : > { %v4351_v63 = vadd.f32 %v1064_v49, %v952_v53  ;;  %v4353_v45 = vpop.f32.mrf.mxu1  ;;  %v3048_v53 = vpop.eup %3047 }
 0x1e8   : > { %v4355_v4 = vpop.f32.mrf.mxu0  ;;  %v3050_v39 = vpop.eup %3049 }
 0x1e9   : > { %1491 = vmatmul.f32.gmra.mxu2 %v3044_v9 }
 0x1ea   : > { %1604 = vmatmul.f32.gmra.mxu3 %v3046_v30  ;;  %1830 = vmatmul.f32.gmra.mxu1 %v3046_v30  ;;  %v4372_v30 = vld [vmem:[#allocation5 + $0xa8] sm:$0xff] }
 0x1eb   : > { %1717 = vmatmul.f32.gmra.mxu0 %v3044_v9 }
 0x1ec   : > { %v954_v28 = vpop.f32.mrf.mxu2  ;;  %2268 = vmatpush.msrb.mxu0 %v4372_v30 }
 0x1ed   : > { %v955_v0 = vadd.f32 %v954_v28, %v4080_v7  ;;  %v1067_v27 = vpop.f32.mrf.mxu3  ;;  %v1255_v28 = vadd.f32 %v4199_v17, %v1142_v51  ;;  %v2018_v51 = vld [vmem:[#allocation5 + $0x198] sm:$0xff] }
 0x1ee   : > { %2382 = vmatpush.msrb.mxu1 %v2018_v51 }
 0x1ef   : > { %v4362_v54 = vadd.f32 %v1067_v27, %v955_v0  ;;  %v4364_v13 = vpop.f32.mrf.mxu1  ;;  %v3052_v27 = vpop.eup %3051  ;;  %3057 = vtanh.f32 %v1255_v28 }
 0x1f0   : > { %v4366_v49 = vpop.f32.mrf.mxu0  ;;  %v3054_v33 = vpop.eup %3053  ;;  %3059 = vtanh.f32 %v4219_v26 }
 0x1f1   : > { %1494 = vmatmul.f32.gmra.mxu2 %v3048_v53 }
 0x1f2   : > { %1607 = vmatmul.f32.gmra.mxu3 %v3050_v39  ;;  %1833 = vmatmul.f32.gmra.mxu1 %v3050_v39  ;;  %v1983_v39 = vld [vmem:[#allocation5 + $0x80] sm:$0xff] }
 0x1f3   : > { %1720 = vmatmul.f32.gmra.mxu0 %v3048_v53  ;;  %2044 = vmatpush.msrb.mxu2 %v1983_v39 }
 0x1f4   : > { %v957_v25 = vpop.f32.mrf.mxu2 }
 0x1f5   : > { %v958_v42 = vadd.f32 %v957_v25, %v4080_v7  ;;  %v1070_v9 = vpop.f32.mrf.mxu3  ;;  %v1258_v25 = vadd.f32 %v4210_v19, %v1145_v40  ;;  %v4397_v40 = vld [vmem:[#allocation5 + $0x98] sm:$0xff] }
 0x1f6   : > { %2269 = vmatpush.msrb.mxu0 %v4397_v40 }
 0x1f7   : > { %v4376_v16 = vadd.f32 %v1070_v9, %v958_v42  ;;  %v4378_v0 = vpop.f32.mrf.mxu1  ;;  %v3056_v9 = vpop.eup %3055  ;;  %3061 = vtanh.f32 %v1258_v25  ;;  %v1151_v25 = vadd.f32 %v4237_v21, %v4231_v14  ;;  %v1154_v21 = vadd.f32 %v4247_v5, %v4231_v14 }
 0x1f8   : > { %v4380_v62 = vpop.f32.mrf.mxu0  ;;  %v3058_v28 = vpop.eup %3057  ;;  %3063 = vtanh.f32 %v4233_v12 }
 0x1f9   : > { %1497 = vmatmul.f32.gmra.mxu2 %v3052_v27  ;;  %v3060_v39 = vpop.eup %3059 }
 0x1fa   : > { %1610 = vmatmul.f32.gmra.mxu3 %v3054_v33  ;;  %1836 = vmatmul.f32.gmra.mxu1 %v3054_v33 }
 0x1fb   : > { %1723 = vmatmul.f32.gmra.mxu0 %v3052_v27 }
 0x1fc   : > { %v960_v6 = vpop.f32.mrf.mxu2 }
 0x1fd   : > { %v961_v17 = vadd.f32 %v960_v6, %v4080_v7  ;;  %v1073_v53 = vpop.f32.mrf.mxu3  ;;  %v2015_v6 = vld [vmem:[#allocation5 + $0x180] sm:$0xff]  ;;  %v3062_v1 = vpop.eup %3061 }
 0x1fe   : > { %2157 = vmatpush.msrb.mxu3 %v2015_v6  ;;  %v3064_v6 = vpop.eup %3063 }
 0x1ff   : > { %v4387_v42 = vadd.f32 %v1073_v53, %v961_v17  ;;  %v4389_v56 = vpop.f32.mrf.mxu1  ;;  %v1261_v17 = vadd.f32 %v4221_v58, %v1148_v43  ;;  %v1981_v43 = vld [vmem:[#allocation5 + $0x70] sm:$0xff] }
 0x200   : > { %v4391_v46 = vpop.f32.mrf.mxu0  ;;  %2045 = vmatpush.msrb.mxu2 %v1981_v43 }
 0x201   : > { %1500 = vmatmul.f32.gmra.mxu2 %v3056_v9  ;;  %3065 = vtanh.f32 %v1261_v17 }
 0x202   : > { %1613 = vmatmul.f32.gmra.mxu3 %v3058_v28  ;;  %1839 = vmatmul.f32.gmra.mxu1 %v3058_v28  ;;  %3067 = vtanh.f32 %v4243_v31 }
 0x203   : > { %1726 = vmatmul.f32.gmra.mxu0 %v3056_v9 }
 0x204   : > { %v963_v27 = vpop.f32.mrf.mxu2 }
 0x205   : > { %v964_v19 = vadd.f32 %v963_v27, %v4080_v7  ;;  %v1076_v33 = vpop.f32.mrf.mxu3  ;;  %v2016_v27 = vld [vmem:[#allocation5 + $0x188] sm:$0xff] }
 0x206   : > { %2383 = vmatpush.msrb.mxu1 %v2016_v27 }
 0x207   : > { %v4401_v26 = vadd.f32 %v1076_v33, %v964_v19  ;;  %v4403_v53 = vpop.f32.mrf.mxu1  ;;  %v1264_v19 = vadd.f32 %v4235_v29, %v1151_v25 }
 0x208   : > { %v4405_v51 = vpop.f32.mrf.mxu0 }
 0x209   : > { %1503 = vmatmul.f32.gmra.mxu2 %v3060_v39  ;;  %3069 = vtanh.f32 %v1264_v19 }
 0x20a   : > { %1616 = vmatmul.f32.gmra.mxu3 %v3062_v1  ;;  %1842 = vmatmul.f32.gmra.mxu1 %v3062_v1  ;;  %v3066_v1 = vpop.eup %3065  ;;  %3071 = vtanh.f32 %v4254_v55 }
 0x20b   : > { %1729 = vmatmul.f32.gmra.mxu0 %v3060_v39  ;;  %v3068_v27 = vpop.eup %3067 }
 0x20c   : > { %v966_v9 = vpop.f32.mrf.mxu2 }
 0x20d   : > { %v967_v58 = vadd.f32 %v966_v9, %v4080_v7  ;;  %v1079_v28 = vpop.f32.mrf.mxu3  ;;  %v4422_v9 = vld [vmem:[#allocation5 + $0x88] sm:$0xff] }
 0x20e   : > { %5096 = vst [vmem:[#allocation11_spill] sm:$0xff] %v4422_v9  ;;  %2270 = vmatpush.msrb.mxu0 %v4422_v9 }
 0x20f   : > { %v4412_v33 = vadd.f32 %v1079_v28, %v967_v58  ;;  %v4414_v12 = vpop.f32.mrf.mxu1  ;;  %v2013_v58 = vld [vmem:[#allocation5 + $0x170] sm:$0xff]  ;;  %v1267_v28 = vadd.f32 %v4245_v35, %v1154_v21  ;;  %v3070_v5 = vpop.eup %3069 }
 0x210   : > { %v4416_v17 = vpop.f32.mrf.mxu0  ;;  %2158 = vmatpush.msrb.mxu3 %v2013_v58 }
 0x211   : > { %1506 = vmatmul.f32.gmra.mxu2 %v3064_v6  ;;  %3073 = vtanh.f32 %v1267_v28 }
 0x212   : > { %1619 = vmatmul.f32.gmra.mxu3 %v3066_v1  ;;  %1845 = vmatmul.f32.gmra.mxu1 %v3066_v1  ;;  %3075 = vtanh.f32 %v4265_v34 }
 0x213   : > { %1732 = vmatmul.f32.gmra.mxu0 %v3064_v6  ;;  %v1157_v6 = vadd.f32 %v4258_v41, %v4231_v14  ;;  %v1160_v41 = vadd.f32 %v4269_v37, %v4231_v14  ;;  %v4458_v37 = vld [vmem:[%s5088_s6] sm:$0x3] }
 0x214   : > { %v969_v39 = vpop.f32.mrf.mxu2 }
 0x215   : > { %v970_v29 = vadd.f32 %v969_v39, %v4080_v7  ;;  %v1082_v25 = vpop.f32.mrf.mxu3  ;;  %v1979_v39 = vld [vmem:[#allocation5 + $0x60] sm:$0xff] }
 0x216   : > { %2046 = vmatpush.msrb.mxu2 %v1979_v39 }
 0x217   : > { %v4426_v31 = vadd.f32 %v1082_v25, %v970_v29  ;;  %v4428_v43 = vpop.f32.mrf.mxu1  ;;  %v2014_v29 = vld [vmem:[#allocation5 + $0x178] sm:$0xff]  ;;  %v1270_v25 = vadd.f32 %v4256_v18, %v1157_v6 }
 0x218   : > { %v4430_v19 = vpop.f32.mrf.mxu0  ;;  %2384 = vmatpush.msrb.mxu1 %v2014_v29 }
 0x219   : > { %1509 = vmatmul.f32.gmra.mxu2 %v3068_v27  ;;  %3077 = vtanh.f32 %v1270_v25  ;;  %v4463_v25 = vperm.slane %v4458_v37, 0 }
 0x21a   : > { %1622 = vmatmul.f32.gmra.mxu3 %v3070_v5  ;;  %1848 = vmatmul.f32.gmra.mxu1 %v3070_v5  ;;  %v3072_v5 = vpop.eup %3071  ;;  %3079 = vtanh.f32 %v4276_v50 }
 0x21b   : > { %1735 = vmatmul.f32.gmra.mxu0 %v3068_v27  ;;  %v3074_v9 = vpop.eup %3073 }
 0x21c   : > { %v972_v1 = vpop.f32.mrf.mxu2  ;;  %v3076_v39 = vpop.eup %3075 }
 0x21d   : > { %v973_v35 = vadd.f32 %v972_v1, %v4080_v7  ;;  %v1085_v21 = vpop.f32.mrf.mxu3  ;;  %v4447_v1 = vld [vmem:[#allocation5 + $0x78] sm:$0xff] }
 0x21e   : > { %2271 = vmatpush.msrb.mxu0 %v4447_v1 }
 0x21f   : > { %v4437_v58 = vadd.f32 %v1085_v21, %v973_v35  ;;  %v4439_v55 = vpop.f32.mrf.mxu1  ;;  %v2011_v35 = vld [vmem:[#allocation5 + $0x160] sm:$0xff]  ;;  %v1273_v21 = vadd.f32 %v4267_v38, %v1160_v41  ;;  %v3078_v29 = vpop.eup %3077  ;;  %v1163_v38 = vadd.f32 %v4280_v3, %v4231_v14  ;;  %v1166_v3 = vadd.f32 %v4291_v48, %v4231_v14 }
 0x220   : > { %v4441_v28 = vpop.f32.mrf.mxu0  ;;  %2159 = vmatpush.msrb.mxu3 %v2011_v35 }
 0x221   : > { %1512 = vmatmul.f32.gmra.mxu2 %v3072_v5  ;;  %3081 = vtanh.f32 %v1273_v21  ;;  %v1276_v35 = vadd.f32 %v4278_v59, %v1163_v38 }
 0x222   : > { %1625 = vmatmul.f32.gmra.mxu3 %v3074_v9  ;;  %1851 = vmatmul.f32.gmra.mxu1 %v3074_v9  ;;  %3083 = vtanh.f32 %v4287_v60 }
 0x223   : > { %1738 = vmatmul.f32.gmra.mxu0 %v3072_v5  ;;  %3085 = vtanh.f32 %v1276_v35  ;;  %v1169_v35 = vadd.f32 %v4305_v2, %v4231_v14  ;;  %v1172_v2 = vadd.f32 %v4316_v36, %v4231_v14 }
 0x224   : > { %v975_v27 = vpop.f32.mrf.mxu2  ;;  %3087 = vtanh.f32 %v4301_v47 }
 0x225   : > { %v976_v18 = vadd.f32 %v975_v27, %v4080_v7  ;;  %v1088_v6 = vpop.f32.mrf.mxu3 }
 0x227   : > { %v4451_v34 = vadd.f32 %v1088_v6, %v976_v18  ;;  %v4453_v9 = vpop.f32.mrf.mxu1  ;;  %v1977_v18 = vld [vmem:[#allocation5 + $0x50] sm:$0xff]  ;;  %v2012_v6 = vld [vmem:[#allocation5 + $0x168] sm:$0xff] }
 0x228   : > { %5097 = vst [vmem:[#allocation12_spill] sm:$0xff] %v4453_v9  ;;  %v4460_v7 = vpop.f32.mrf.mxu0  ;;  %2047 = vmatpush.msrb.mxu2 %v1977_v18  ;;  %2385 = vmatpush.msrb.mxu1 %v2012_v6 }
 0x229   : > { %5098 = vst [vmem:[#allocation13_spill] sm:$0xff] %v4460_v7  ;;  %1515 = vmatmul.f32.gmra.mxu2 %v3076_v39 }
 0x22a   : > { %1628 = vmatmul.f32.gmra.mxu3 %v3078_v29  ;;  %1854 = vmatmul.f32.gmra.mxu1 %v3078_v29  ;;  %v3080_v29 = vpop.eup %3079 }
 0x22b   : > { %1741 = vmatmul.f32.gmra.mxu0 %v3076_v39  ;;  %v3082_v7 = vpop.eup %3081 }
 0x22c   : > { %v1468_v5 = vpop.f32.mrf.mxu2  ;;  %v3084_v18 = vpop.eup %3083 }
 0x22d   : > { %v1469_v41 = vadd.f32 %v1468_v5, %v4463_v25  ;;  %v1581_v27 = vpop.f32.mrf.mxu3  ;;  %v4480_v5 = vld [vmem:[#allocation5 + $0x68] sm:$0xff]  ;;  %v3086_v48 = vpop.eup %3085 }
 0x22e   : > { %2272 = vmatpush.msrb.mxu0 %v4480_v5 }
 0x22f   : > { %v4470_v9 = vadd.f32 %v1581_v27, %v1469_v41  ;;  %v4472_v50 = vpop.f32.mrf.mxu1  ;;  %v2009_v41 = vld [vmem:[#allocation5 + $0x150] sm:$0xff]  ;;  %v1279_v27 = vadd.f32 %v4289_v23, %v1166_v3 }
 0x230   : > { %v4474_v21 = vpop.f32.mrf.mxu0  ;;  %2160 = vmatpush.msrb.mxu3 %v2009_v41 }
 0x231   : > { %1518 = vmatmul.f32.gmra.mxu2 %v3080_v29  ;;  %3089 = vtanh.f32 %v1279_v27 }
 0x232   : > { %1631 = vmatmul.f32.gmra.mxu3 %v3082_v7  ;;  %1857 = vmatmul.f32.gmra.mxu1 %v3082_v7  ;;  %3091 = vtanh.f32 %v4312_v44 }
 0x233   : > { %1744 = vmatmul.f32.gmra.mxu0 %v3080_v29 }
 0x234   : > { %v1471_v39 = vpop.f32.mrf.mxu2 }
 0x235   : > { %v1472_v59 = vadd.f32 %v1471_v39, %v4463_v25  ;;  %v1584_v38 = vpop.f32.mrf.mxu3  ;;  %v1975_v39 = vld [vmem:[#allocation5 + $0x40] sm:$0xff] }
 0x236   : > { %2048 = vmatpush.msrb.mxu2 %v1975_v39 }
 0x237   : > { %v4484_v60 = vadd.f32 %v1584_v38, %v1472_v59  ;;  %v4486_v7 = vpop.f32.mrf.mxu1  ;;  %v2010_v59 = vld [vmem:[#allocation5 + $0x158] sm:$0xff]  ;;  %v1282_v38 = vadd.f32 %v4303_v22, %v1169_v35 }
 0x238   : > { %5099 = vst [vmem:[#allocation14_spill] sm:$0xff] %v4486_v7  ;;  %v4488_v6 = vpop.f32.mrf.mxu0  ;;  %2386 = vmatpush.msrb.mxu1 %v2010_v59 }
 0x239   : > { %1521 = vmatmul.f32.gmra.mxu2 %v3084_v18  ;;  %3093 = vtanh.f32 %v1282_v38  ;;  %v1175_v38 = vadd.f32 %v4330_v10, %v4231_v14  ;;  %v1178_v10 = vadd.f32 %v4341_v8, %v4231_v14 }
 0x23a   : > { %1634 = vmatmul.f32.gmra.mxu3 %v3086_v48  ;;  %1860 = vmatmul.f32.gmra.mxu1 %v3086_v48  ;;  %v3088_v48 = vpop.eup %3087  ;;  %3095 = vtanh.f32 %v4326_v32 }
 0x23b   : > { %1747 = vmatmul.f32.gmra.mxu0 %v3084_v18  ;;  %v3090_v7 = vpop.eup %3089 }
 0x23c   : > { %v1474_v29 = vpop.f32.mrf.mxu2  ;;  %v3092_v39 = vpop.eup %3091 }
 0x23d   : > { %v1475_v23 = vadd.f32 %v1474_v29, %v4463_v25  ;;  %v1587_v3 = vpop.f32.mrf.mxu3  ;;  %v4505_v29 = vld [vmem:[#allocation5 + $0x58] sm:$0xff] }
 0x23e   : > { %2273 = vmatpush.msrb.mxu0 %v4505_v29 }
 0x23f   : > { %v4495_v41 = vadd.f32 %v1587_v3, %v1475_v23  ;;  %v4497_v47 = vpop.f32.mrf.mxu1  ;;  %v2007_v23 = vld [vmem:[#allocation5 + $0x140] sm:$0xff]  ;;  %v1285_v3 = vadd.f32 %v4314_v20, %v1172_v2  ;;  %v3094_v36 = vpop.eup %3093 }
 0x240   : > { %v4499_v27 = vpop.f32.mrf.mxu0  ;;  %2161 = vmatpush.msrb.mxu3 %v2007_v23 }
 0x241   : > { %1524 = vmatmul.f32.gmra.mxu2 %v3088_v48  ;;  %3097 = vtanh.f32 %v1285_v3 }
 0x242   : > { %1637 = vmatmul.f32.gmra.mxu3 %v3090_v7  ;;  %1863 = vmatmul.f32.gmra.mxu1 %v3090_v7  ;;  %3099 = vtanh.f32 %v4337_v15 }
 0x243   : > { %1750 = vmatmul.f32.gmra.mxu0 %v3088_v48 }
 0x244   : > { %v1477_v18 = vpop.f32.mrf.mxu2 }
 0x245   : > { %v1478_v22 = vadd.f32 %v1477_v18, %v4463_v25  ;;  %v1590_v35 = vpop.f32.mrf.mxu3  ;;  %v1973_v18 = vld [vmem:[#allocation5 + $0x30] sm:$0xff] }
 0x246   : > { %2049 = vmatpush.msrb.mxu2 %v1973_v18 }
 0x247   : > { %v4509_v44 = vadd.f32 %v1590_v35, %v1478_v22  ;;  %v4511_v7 = vpop.f32.mrf.mxu1  ;;  %v2008_v22 = vld [vmem:[#allocation5 + $0x148] sm:$0xff]  ;;  %v1288_v35 = vadd.f32 %v4328_v61, %v1175_v38 }
 0x248   : > { %5100 = vst [vmem:[#allocation15_spill] sm:$0xff] %v4511_v7  ;;  %v4513_v59 = vpop.f32.mrf.mxu0  ;;  %2387 = vmatpush.msrb.mxu1 %v2008_v22 }
 0x249   : > { %1527 = vmatmul.f32.gmra.mxu2 %v3092_v39  ;;  %3101 = vtanh.f32 %v1288_v35  ;;  %v1181_v35 = vadd.f32 %v4355_v4, %v4231_v14  ;;  %v1184_v4 = vadd.f32 %v4366_v49, %v4231_v14 }
 0x24a   : > { %1640 = vmatmul.f32.gmra.mxu3 %v3094_v36  ;;  %1866 = vmatmul.f32.gmra.mxu1 %v3094_v36  ;;  %v3096_v36 = vpop.eup %3095  ;;  %3103 = vtanh.f32 %v4351_v63 }
 0x24b   : > { %1753 = vmatmul.f32.gmra.mxu0 %v3092_v39  ;;  %v3098_v7 = vpop.eup %3097 }
 0x24c   : > { %v1480_v48 = vpop.f32.mrf.mxu2  ;;  %v3100_v18 = vpop.eup %3099 }
 0x24d   : > { %v1481_v20 = vadd.f32 %v1480_v48, %v4463_v25  ;;  %v1593_v2 = vpop.f32.mrf.mxu3  ;;  %v4530_v48 = vld [vmem:[#allocation5 + $0x48] sm:$0xff] }
 0x24e   : > { %2274 = vmatpush.msrb.mxu0 %v4530_v48 }
 0x24f   : > { %v4520_v23 = vadd.f32 %v1593_v2, %v1481_v20  ;;  %v4522_v32 = vpop.f32.mrf.mxu1  ;;  %v2005_v20 = vld [vmem:[#allocation5 + $0x130] sm:$0xff]  ;;  %v1291_v2 = vadd.f32 %v4339_v57, %v1178_v10  ;;  %v3102_v8 = vpop.eup %3101 }
 0x250   : > { %v4524_v3 = vpop.f32.mrf.mxu0  ;;  %2162 = vmatpush.msrb.mxu3 %v2005_v20 }
 0x251   : > { %1530 = vmatmul.f32.gmra.mxu2 %v3096_v36  ;;  %3105 = vtanh.f32 %v1291_v2 }
 0x252   : > { %1643 = vmatmul.f32.gmra.mxu3 %v3098_v7  ;;  %1869 = vmatmul.f32.gmra.mxu1 %v3098_v7  ;;  %3107 = vtanh.f32 %v4362_v54 }
 0x253   : > { %1756 = vmatmul.f32.gmra.mxu0 %v3096_v36 }
 0x254   : > { %v1483_v39 = vpop.f32.mrf.mxu2 }
 0x255   : > { %v1484_v61 = vadd.f32 %v1483_v39, %v4463_v25  ;;  %v1596_v38 = vpop.f32.mrf.mxu3  ;;  %v1971_v39 = vld [vmem:[#allocation5 + $0x20] sm:$0xff] }
 0x256   : > { %2050 = vmatpush.msrb.mxu2 %v1971_v39 }
 0x257   : > { %v4534_v15 = vadd.f32 %v1596_v38, %v1484_v61  ;;  %v4536_v7 = vpop.f32.mrf.mxu1  ;;  %v2006_v61 = vld [vmem:[#allocation5 + $0x138] sm:$0xff]  ;;  %v1294_v38 = vadd.f32 %v4353_v45, %v1181_v35 }
 0x258   : > { %5101 = vst [vmem:[#allocation16_spill] sm:$0xff] %v4536_v7  ;;  %v4538_v22 = vpop.f32.mrf.mxu0  ;;  %2388 = vmatpush.msrb.mxu1 %v2006_v61 }
 0x259   : > { %1533 = vmatmul.f32.gmra.mxu2 %v3100_v18  ;;  %3109 = vtanh.f32 %v1294_v38  ;;  %v1187_v38 = vadd.f32 %v4380_v62, %v4231_v14  ;;  %v1190_v62 = vadd.f32 %v4391_v46, %v4231_v14 }
 0x25a   : > { %1646 = vmatmul.f32.gmra.mxu3 %v3102_v8  ;;  %1872 = vmatmul.f32.gmra.mxu1 %v3102_v8  ;;  %v3104_v8 = vpop.eup %3103  ;;  %3111 = vtanh.f32 %v4376_v16 }
 0x25b   : > { %1759 = vmatmul.f32.gmra.mxu0 %v3100_v18  ;;  %v3106_v7 = vpop.eup %3105 }
 0x25c   : > { %v1486_v36 = vpop.f32.mrf.mxu2  ;;  %v3108_v39 = vpop.eup %3107 }
 0x25d   : > { %v1487_v57 = vadd.f32 %v1486_v36, %v4463_v25  ;;  %v1599_v10 = vpop.f32.mrf.mxu3  ;;  %v4555_v36 = vld [vmem:[#allocation5 + $0x38] sm:$0xff] }
 0x25e   : > { %2275 = vmatpush.msrb.mxu0 %v4555_v36 }
 0x25f   : > { %v4545_v20 = vadd.f32 %v1599_v10, %v1487_v57  ;;  %v4547_v63 = vpop.f32.mrf.mxu1  ;;  %v2003_v57 = vld [vmem:[#allocation5 + $0x120] sm:$0xff]  ;;  %v1297_v10 = vadd.f32 %v4364_v13, %v1184_v4  ;;  %v3110_v49 = vpop.eup %3109 }
 0x260   : > { %v4549_v2 = vpop.f32.mrf.mxu0  ;;  %2163 = vmatpush.msrb.mxu3 %v2003_v57 }
 0x261   : > { %1536 = vmatmul.f32.gmra.mxu2 %v3104_v8  ;;  %3113 = vtanh.f32 %v1297_v10 }
 0x262   : > { %1649 = vmatmul.f32.gmra.mxu3 %v3106_v7  ;;  %1875 = vmatmul.f32.gmra.mxu1 %v3106_v7  ;;  %3115 = vtanh.f32 %v4387_v42 }
 0x263   : > { %1762 = vmatmul.f32.gmra.mxu0 %v3104_v8 }
 0x264   : > { %v1489_v18 = vpop.f32.mrf.mxu2 }
 0x265   : > { %v1490_v45 = vadd.f32 %v1489_v18, %v4463_v25  ;;  %v1602_v35 = vpop.f32.mrf.mxu3  ;;  %v1969_v18 = vld [vmem:[#allocation5 + $0x10] sm:$0xff] }
 0x266   : > { %2051 = vmatpush.msrb.mxu2 %v1969_v18 }
 0x267   : > { %v4559_v54 = vadd.f32 %v1602_v35, %v1490_v45  ;;  %v4561_v7 = vpop.f32.mrf.mxu1  ;;  %v2004_v45 = vld [vmem:[#allocation5 + $0x128] sm:$0xff]  ;;  %v1300_v35 = vadd.f32 %v4378_v0, %v1187_v38 }
 0x268   : > { %5102 = vst [vmem:[#allocation17_spill] sm:$0xff] %v4561_v7  ;;  %v4563_v61 = vpop.f32.mrf.mxu0  ;;  %2389 = vmatpush.msrb.mxu1 %v2004_v45 }
 0x269   : > { %1539 = vmatmul.f32.gmra.mxu2 %v3108_v39  ;;  %3117 = vtanh.f32 %v1300_v35  ;;  %v1193_v35 = vadd.f32 %v4405_v51, %v4231_v14 }
 0x26a   : > { %1652 = vmatmul.f32.gmra.mxu3 %v3110_v49  ;;  %1878 = vmatmul.f32.gmra.mxu1 %v3110_v49  ;;  %v3112_v49 = vpop.eup %3111  ;;  %3119 = vtanh.f32 %v4401_v26 }
 0x26b   : > { %1765 = vmatmul.f32.gmra.mxu0 %v3108_v39  ;;  %v3114_v7 = vpop.eup %3113 }
 0x26c   : > { %v1492_v8 = vpop.f32.mrf.mxu2  ;;  %v3116_v18 = vpop.eup %3115 }
 0x26d   : > { %v1493_v13 = vadd.f32 %v1492_v8, %v4463_v25  ;;  %v1605_v4 = vpop.f32.mrf.mxu3  ;;  %v4580_v8 = vld [vmem:[#allocation5 + $0x28] sm:$0xff] }
 0x26e   : > { %2276 = vmatpush.msrb.mxu0 %v4580_v8 }
 0x26f   : > { %v4570_v57 = vadd.f32 %v1605_v4, %v1493_v13  ;;  %v4572_v16 = vpop.f32.mrf.mxu1  ;;  %v2001_v13 = vld [vmem:[#allocation5 + $0x110] sm:$0xff]  ;;  %v1303_v4 = vadd.f32 %v4389_v56, %v1190_v62  ;;  %v3118_v46 = vpop.eup %3117 }
 0x270   : > { %v4574_v10 = vpop.f32.mrf.mxu0  ;;  %2164 = vmatpush.msrb.mxu3 %v2001_v13 }
 0x271   : > { %1542 = vmatmul.f32.gmra.mxu2 %v3112_v49  ;;  %3121 = vtanh.f32 %v1303_v4  ;;  %v3120_v4 = vpop.eup %3119 }
 0x272   : > { %1655 = vmatmul.f32.gmra.mxu3 %v3114_v7  ;;  %1881 = vmatmul.f32.gmra.mxu1 %v3114_v7  ;;  %3123 = vtanh.f32 %v4412_v33 }
 0x273   : > { %1768 = vmatmul.f32.gmra.mxu0 %v3112_v49 }
 0x274   : > { %v1495_v39 = vpop.f32.mrf.mxu2 }
 0x275   : > { %v1496_v0 = vadd.f32 %v1495_v39, %v4463_v25  ;;  %v1608_v38 = vpop.f32.mrf.mxu3  ;;  %v1967_v39 = vld [vmem:[#allocation5] sm:$0xff] }
 0x276   : > { %2052 = vmatpush.msrb.mxu2 %v1967_v39  ;;  %v1999_v39 = vld [vmem:[#allocation5 + $0x100] sm:$0xff] }
 0x277   : > { %v4584_v42 = vadd.f32 %v1608_v38, %v1496_v0  ;;  %v4586_v7 = vpop.f32.mrf.mxu1  ;;  %v2002_v0 = vld [vmem:[#allocation5 + $0x118] sm:$0xff]  ;;  %v1306_v38 = vadd.f32 %v4403_v53, %v1193_v35  ;;  %v3122_v51 = vpop.eup %3121  ;;  %v3396_v53 = vld [vmem:[#allocation5 + $0xe8] sm:$0xff]  ;;  %2165 = vmatpush.msrb.mxu3 %v1999_v39 }
 0x278   : > { %5103 = vst [vmem:[#allocation18_spill] sm:$0xff] %v4586_v7  ;;  %v4588_v45 = vpop.f32.mrf.mxu0  ;;  %2390 = vmatpush.msrb.mxu1 %v2002_v0 }
 0x279   : > { %1545 = vmatmul.f32.gmra.mxu2 %v3116_v18  ;;  %3125 = vtanh.f32 %v1306_v38  ;;  %v3124_v38 = vpop.eup %3123 }
 0x27a   : > { %1658 = vmatmul.f32.gmra.mxu3 %v3118_v46  ;;  %1884 = vmatmul.f32.gmra.mxu1 %v3118_v46  ;;  %v3395_v46 = vld [vmem:[#allocation5 + $0xf8] sm:$0xff]  ;;  %3127 = vtanh.f32 %v4426_v31 }
 0x27b   : > { %1771 = vmatmul.f32.gmra.mxu0 %v3116_v18  ;;  %2803 = vmatpush.msra.mxu2 %v3395_v46  ;;  %v1196_v18 = vadd.f32 %v4416_v17, %v4231_v14 }
 0x27c   : > { %v1498_v49 = vpop.f32.mrf.mxu2 }
 0x27d   : > { %v1499_v56 = vadd.f32 %v1498_v49, %v4463_v25  ;;  %v1611_v62 = vpop.f32.mrf.mxu3  ;;  %2804 = vmatpush.msra.mxu2 %v3396_v53  ;;  %v1309_v33 = vadd.f32 %v4414_v12, %v1196_v18  ;;  %v4617_v53 = vld [vmem:[#allocation5 + $0x8] sm:$0xff] }
 0x27f   : > { %v4595_v13 = vadd.f32 %v1611_v62, %v1499_v56  ;;  %v4597_v26 = vpop.f32.mrf.mxu1  ;;  %v4605_v62 = vld [vmem:[#allocation5 + $0x18] sm:$0xff]  ;;  %2805 = vmatpush.msra.mxu2 %v4297_v11  ;;  %3129 = vtanh.f32 %v1309_v33  ;;  %v1199_v11 = vadd.f32 %v4430_v19, %v4231_v14 }
 0x280   : > { %v4599_v7 = vpop.f32.mrf.mxu0  ;;  %2277 = vmatpush.msrb.mxu0 %v4605_v62  ;;  %3131 = vtanh.f32 %v4437_v58 }
 0x281   : > { %1548 = vmatmul.f32.gmra.mxu2 %v3120_v4 }
 0x282   : > { %1661 = vmatmul.f32.gmra.mxu3 %v3122_v51  ;;  %1887 = vmatmul.f32.gmra.mxu1 %v3122_v51  ;;  %v3126_v51 = vpop.eup %3125 }
 0x283   : > { %1774 = vmatmul.f32.gmra.mxu0 %v3120_v4  ;;  %2806 = vmatpush.msra.mxu2 %v4322_v24  ;;  %v2000_v4 = vld [vmem:[#allocation5 + $0x108] sm:$0xff]  ;;  %v3128_v19 = vpop.eup %3127 }
 0x284   : > { %v1501_v35 = vpop.f32.mrf.mxu2  ;;  %2391 = vmatpush.msrb.mxu1 %v2000_v4  ;;  %2278 = vmatpush.msrb.mxu0 %v4617_v53  ;;  %v4642_v4 = vperm.slane %v4458_v37, 1 }
 0x285   : > { %v1502_v49 = vadd.f32 %v1501_v35, %v4463_v25  ;;  %v1614_v56 = vpop.f32.mrf.mxu3  ;;  %2807 = vmatpush.msra.mxu2 %v4347_v52  ;;  %v1312_v35 = vadd.f32 %v4428_v43, %v1199_v11  ;;  %v3130_v52 = vpop.eup %3129  ;;  %v5104_v43 = vld [vmem:[#allocation11_spill] sm:$0xff] }
 0x287   : > { %v4610_v0 = vadd.f32 %v1614_v56, %v1502_v49  ;;  %v4612_v17 = vpop.f32.mrf.mxu1  ;;  %2808 = vmatpush.msra.mxu2 %v4372_v30  ;;  %3133 = vtanh.f32 %v1312_v35  ;;  %v1202_v30 = vadd.f32 %v4441_v28, %v4231_v14  ;;  %v3132_v14 = vpop.eup %3131 }
 0x288   : > { %v4615_v46 = vpop.f32.mrf.mxu0  ;;  %3135 = vtanh.f32 %v4451_v34 }
 0x289   : > { %1551 = vmatmul.f32.gmra.mxu2 %v3124_v38 }
 0x28a   : > { %1664 = vmatmul.f32.gmra.mxu3 %v3126_v51  ;;  %1890 = vmatmul.f32.gmra.mxu1 %v3126_v51 }
 0x28b   : > { %1777 = vmatmul.f32.gmra.mxu0 %v3124_v38  ;;  %2809 = vmatpush.msra.mxu2 %v4397_v40  ;;  %v1315_v38 = vadd.f32 %v4439_v55, %v1202_v30  ;;  %v5105_v55 = vld [vmem:[#allocation13_spill] sm:$0xff] }
 0x28c   : > { %v1504_v24 = vpop.f32.mrf.mxu2 }
 0x28d   : > { %v1505_v12 = vadd.f32 %v1504_v24, %v4463_v25  ;;  %v1617_v18 = vpop.f32.mrf.mxu3  ;;  %2810 = vmatpush.msra.mxu2 %v5104_v43  ;;  %v3134_v11 = vpop.eup %3133  ;;  %3137 = vtanh.f32 %v1315_v38 }
 0x28e   : > { %3139 = vtanh.f32 %v4470_v9 }
 0x28f   : > { %v4627_v31 = vadd.f32 %v1617_v18, %v1505_v12  ;;  %v4629_v49 = vpop.f32.mrf.mxu1  ;;  %2811 = vmatpush.msra.mxu2 %v4447_v1  ;;  %v1695_v1 = vadd.f32 %v5105_v55, %v4642_v4  ;;  %v5106_v12 = vld [vmem:[#allocation12_spill] sm:$0xff] }
 0x290   : > { %v4632_v56 = vpop.f32.mrf.mxu0 }
 0x291   : > { %1554 = vmatmul.f32.gmra.mxu2 %v3128_v19  ;;  %v1808_v18 = vadd.f32 %v5106_v12, %v1695_v1 }
 0x292   : > { %1667 = vmatmul.f32.gmra.mxu3 %v3130_v52  ;;  %1893 = vmatmul.f32.gmra.mxu1 %v3130_v52 }
 0x293   : > { %1780 = vmatmul.f32.gmra.mxu0 %v3128_v19  ;;  %2812 = vmatpush.msra.mxu2 %v4480_v5  ;;  %v3136_v19 = vpop.eup %3135  ;;  %3141 = vtanh.f32 %v1808_v18 }
 0x294   : > { %v1507_v39 = vpop.f32.mrf.mxu2  ;;  %v3138_v30 = vpop.eup %3137  ;;  %3143 = vtanh.f32 %v4484_v60 }
 0x295   : > { %v1508_v33 = vadd.f32 %v1507_v39, %v4463_v25  ;;  %v1620_v40 = vpop.f32.mrf.mxu3  ;;  %2813 = vmatpush.msra.mxu2 %v4505_v29  ;;  %v1698_v29 = vadd.f32 %v4474_v21, %v4642_v4 }
 0x297   : > { %v4644_v58 = vadd.f32 %v1620_v40, %v1508_v33  ;;  %v4646_v51 = vpop.f32.mrf.mxu1  ;;  %2814 = vmatpush.msra.mxu2 %v4530_v48  ;;  %v1811_v39 = vadd.f32 %v4472_v50, %v1698_v29  ;;  %v3140_v40 = vpop.eup %3139 }
 0x298   : > { %v4649_v28 = vpop.f32.mrf.mxu0 }
 0x299   : > { %1557 = vmatmul.f32.gmra.mxu2 %v3132_v14  ;;  %v3142_v21 = vpop.eup %3141  ;;  %3145 = vtanh.f32 %v1811_v39 }
 0x29a   : > { %1670 = vmatmul.f32.gmra.mxu3 %v3134_v11  ;;  %1896 = vmatmul.f32.gmra.mxu1 %v3134_v11  ;;  %v5107_v11 = vld [vmem:[#allocation14_spill] sm:$0xff]  ;;  %3147 = vtanh.f32 %v4495_v41 }
 0x29b   : > { %1783 = vmatmul.f32.gmra.mxu0 %v3132_v14  ;;  %2815 = vmatpush.msra.mxu2 %v4555_v36 }
 0x29c   : > { %v1510_v37 = vpop.f32.mrf.mxu2 }
 0x29d   : > { %v1511_v24 = vadd.f32 %v1510_v37, %v4463_v25  ;;  %v1623_v5 = vpop.f32.mrf.mxu3  ;;  %2816 = vmatpush.msra.mxu2 %v4580_v8  ;;  %v1701_v8 = vadd.f32 %v4488_v6, %v4642_v4  ;;  %v3144_v37 = vpop.eup %3143  ;;  %v1704_v6 = vadd.f32 %v4499_v27, %v4642_v4  ;;  %v1707_v27 = vadd.f32 %v4513_v59, %v4642_v4 }
 0x29e   : > { %v1710_v59 = vadd.f32 %v4524_v3, %v4642_v4  ;;  %v1713_v3 = vadd.f32 %v4538_v22, %v4642_v4  ;;  %v1716_v22 = vadd.f32 %v4549_v2, %v4642_v4  ;;  %v1719_v2 = vadd.f32 %v4563_v61, %v4642_v4 }
 0x29f   : > { %v4658_v35 = vadd.f32 %v1623_v5, %v1511_v24  ;;  %v4660_v34 = vpop.f32.mrf.mxu1  ;;  %2817 = vmatpush.msra.mxu2 %v4605_v62  ;;  %v3146_v60 = vpop.eup %3145  ;;  %v1722_v61 = vadd.f32 %v4574_v10, %v4642_v4  ;;  %v1725_v10 = vadd.f32 %v4588_v45, %v4642_v4  ;;  %v1728_v45 = vadd.f32 %v4599_v7, %v4642_v4 }
 0x2a0   : > { %v4663_v52 = vpop.f32.mrf.mxu0  ;;  %v1731_v7 = vadd.f32 %v4615_v46, %v4642_v4  ;;  %v1734_v46 = vadd.f32 %v4632_v56, %v4642_v4  ;;  %v1737_v56 = vadd.f32 %v4649_v28, %v4642_v4 }
 0x2a1   : > { %1560 = vmatmul.f32.gmra.mxu2 %v3136_v19  ;;  %v1740_v28 = vadd.f32 %v4663_v52, %v4642_v4 }
 0x2a2   : > { %1673 = vmatmul.f32.gmra.mxu3 %v3138_v30  ;;  %1899 = vmatmul.f32.gmra.mxu1 %v3138_v30 }
 0x2a3   : > { %1786 = vmatmul.f32.gmra.mxu0 %v3136_v19  ;;  %2818 = vmatpush.msra.mxu2 %v4617_v53  ;;  %v1814_v53 = vadd.f32 %v5107_v11, %v1701_v8  ;;  %v1817_v19 = vadd.f32 %v4497_v47, %v1704_v6 }
 0x2a4   : > { %v1513_v48 = vpop.f32.mrf.mxu2 }
 0x2a5   : > { %v1514_v43 = vadd.f32 %v1513_v48, %v4463_v25  ;;  %v1626_v36 = vpop.f32.mrf.mxu3  ;;  %3149 = vtanh.f32 %v1814_v53  ;;  %v3148_v48 = vpop.eup %3147 }
 0x2a6   : > { %3151 = vtanh.f32 %v4509_v44 }
 0x2a7   : > { %v4672_v33 = vadd.f32 %v1626_v36, %v1514_v43  ;;  %v4674_v9 = vpop.f32.mrf.mxu1  ;;  %3153 = vtanh.f32 %v1817_v19 }
 0x2a8   : > { %v4677_v38 = vpop.f32.mrf.mxu0  ;;  %3155 = vtanh.f32 %v4520_v23 }
 0x2a9   : > { %2053 = vmatmul.f32.vlgmr.msrb.gmra.mxu2 %v3140_v40  ;;  %v1743_v52 = vadd.f32 %v4677_v38, %v4642_v4  ;;  %v2031_v38 = vld [vmem:[%s5090_s8] sm:$0x3] }
 0x2aa   : > { %2166 = vmatmul.f32.vlgmr.msrb.gmra.mxu3 %v3142_v21  ;;  %2392 = vmatmul.f32.vlgmr.msrb.gmra.mxu1 %v3142_v21 }
 0x2ab   : > { %2279 = vmatmul.f32.vlgmr.msrb.gmra.mxu0 %v3140_v40  ;;  %v3150_v41 = vpop.eup %3149  ;;  %v5108_v40 = vld [vmem:[#allocation15_spill] sm:$0xff] }
 0x2ac   : > { %v1516_v50 = vpop.f32.mrf.mxu2  ;;  %v1820_v21 = vadd.f32 %v5108_v40, %v1707_v27 }
 0x2ad   : > { %v1517_v62 = vadd.f32 %v1516_v50, %v4463_v25  ;;  %v1629_v14 = vpop.f32.mrf.mxu3 }
 0x2ae   : > { %3157 = vtanh.f32 %v1820_v21 }
 0x2af   : > { %v4684_v55 = vadd.f32 %v1629_v14, %v1517_v62  ;;  %v4686_v1 = vpop.f32.mrf.mxu1  ;;  %v3152_v62 = vpop.eup %3151  ;;  %3159 = vtanh.f32 %v4534_v15 }
 0x2b0   : > { %v4688_v24 = vpop.f32.mrf.mxu0  ;;  %v3154_v44 = vpop.eup %3153 }
 0x2b1   : > { %2056 = vmatmul.f32.gmra.mxu2 %v3144_v37 }
 0x2b2   : > { %2169 = vmatmul.f32.gmra.mxu3 %v3146_v60  ;;  %2395 = vmatmul.f32.gmra.mxu1 %v3146_v60  ;;  %v1823_v60 = vadd.f32 %v4522_v32, %v1710_v59  ;;  %v1829_v59 = vadd.f32 %v4547_v63, %v1716_v22 }
 0x2b3   : > { %2282 = vmatmul.f32.gmra.mxu0 %v3144_v37 }
 0x2b4   : > { %v1519_v5 = vpop.f32.mrf.mxu2  ;;  %3161 = vtanh.f32 %v1823_v60 }
 0x2b5   : > { %v1520_v12 = vadd.f32 %v1519_v5, %v4463_v25  ;;  %v1632_v18 = vpop.f32.mrf.mxu3  ;;  %3163 = vtanh.f32 %v4545_v20 }
 0x2b7   : > { %v4695_v30 = vadd.f32 %v1632_v18, %v1520_v12  ;;  %v4697_v29 = vpop.f32.mrf.mxu1  ;;  %v3156_v12 = vpop.eup %3155 }
 0x2b8   : > { %v4699_v43 = vpop.f32.mrf.mxu0  ;;  %v3158_v23 = vpop.eup %3157 }
 0x2b9   : > { %2059 = vmatmul.f32.gmra.mxu2 %v3148_v48 }
 0x2ba   : > { %2172 = vmatmul.f32.gmra.mxu3 %v3150_v41  ;;  %2398 = vmatmul.f32.gmra.mxu1 %v3150_v41  ;;  %v5109_v41 = vld [vmem:[#allocation16_spill] sm:$0xff] }
 0x2bb   : > { %2285 = vmatmul.f32.gmra.mxu0 %v3148_v48  ;;  %v1826_v27 = vadd.f32 %v5109_v41, %v1713_v3  ;;  %v5110_v3 = vld [vmem:[#allocation17_spill] sm:$0xff] }
 0x2bc   : > { %v1522_v36 = vpop.f32.mrf.mxu2 }
 0x2bd   : > { %v1523_v47 = vadd.f32 %v1522_v36, %v4463_v25  ;;  %v1635_v39 = vpop.f32.mrf.mxu3  ;;  %3165 = vtanh.f32 %v1826_v27 }
 0x2be   : > { %3167 = vtanh.f32 %v4559_v54 }
 0x2bf   : > { %v4706_v8 = vadd.f32 %v1635_v39, %v1523_v47  ;;  %v4708_v50 = vpop.f32.mrf.mxu1  ;;  %v3160_v39 = vpop.eup %3159  ;;  %3169 = vtanh.f32 %v1829_v59 }
 0x2c0   : > { %v4710_v14 = vpop.f32.mrf.mxu0  ;;  %v3162_v15 = vpop.eup %3161  ;;  %3171 = vtanh.f32 %v4570_v57 }
 0x2c1   : > { %2062 = vmatmul.f32.gmra.mxu2 %v3152_v62 }
 0x2c2   : > { %2175 = vmatmul.f32.gmra.mxu3 %v3154_v44  ;;  %2401 = vmatmul.f32.gmra.mxu1 %v3154_v44 }
 0x2c3   : > { %2288 = vmatmul.f32.gmra.mxu0 %v3152_v62 }
 0x2c4   : > { %v1525_v11 = vpop.f32.mrf.mxu2 }
 0x2c5   : > { %v1526_v53 = vadd.f32 %v1525_v11, %v4463_v25  ;;  %v1638_v37 = vpop.f32.mrf.mxu3 }
 0x2c7   : > { %v4717_v6 = vadd.f32 %v1638_v37, %v1526_v53  ;;  %v4719_v5 = vpop.f32.mrf.mxu1  ;;  %v3164_v37 = vpop.eup %3163 }
 0x2c8   : > { %v4721_v18 = vpop.f32.mrf.mxu0  ;;  %v3166_v20 = vpop.eup %3165 }
 0x2c9   : > { %2065 = vmatmul.f32.gmra.mxu2 %v3156_v12  ;;  %v3168_v41 = vpop.eup %3167 }
 0x2ca   : > { %2178 = vmatmul.f32.gmra.mxu3 %v3158_v23  ;;  %2404 = vmatmul.f32.gmra.mxu1 %v3158_v23  ;;  %v3170_v54 = vpop.eup %3169 }
 0x2cb   : > { %2291 = vmatmul.f32.gmra.mxu0 %v3156_v12  ;;  %v3172_v59 = vpop.eup %3171 }
 0x2cc   : > { %v1528_v19 = vpop.f32.mrf.mxu2 }
 0x2cd   : > { %v1529_v32 = vadd.f32 %v1528_v19, %v4463_v25  ;;  %v1641_v48 = vpop.f32.mrf.mxu3  ;;  %v1832_v19 = vadd.f32 %v5110_v3, %v1719_v2 }
 0x2cf   : > { %v4728_v36 = vadd.f32 %v1641_v48, %v1529_v32  ;;  %v4730_v47 = vpop.f32.mrf.mxu1  ;;  %3173 = vtanh.f32 %v1832_v19 }
 0x2d0   : > { %v4732_v40 = vpop.f32.mrf.mxu0  ;;  %3175 = vtanh.f32 %v4584_v42 }
 0x2d1   : > { %2068 = vmatmul.f32.gmra.mxu2 %v3160_v39 }
 0x2d2   : > { %2181 = vmatmul.f32.gmra.mxu3 %v3162_v15  ;;  %2407 = vmatmul.f32.gmra.mxu1 %v3162_v15 }
 0x2d3   : > { %2294 = vmatmul.f32.gmra.mxu0 %v3160_v39 }
 0x2d4   : > { %v1531_v21 = vpop.f32.mrf.mxu2 }
 0x2d5   : > { %v1532_v62 = vadd.f32 %v1531_v21, %v4463_v25  ;;  %v1644_v44 = vpop.f32.mrf.mxu3  ;;  %v1835_v21 = vadd.f32 %v4572_v16, %v1722_v61  ;;  %v3174_v57 = vpop.eup %3173 }
 0x2d6   : > { %v3176_v19 = vpop.eup %3175 }
 0x2d7   : > { %v4739_v11 = vadd.f32 %v1644_v44, %v1532_v62  ;;  %v4741_v53 = vpop.f32.mrf.mxu1  ;;  %3177 = vtanh.f32 %v1835_v21 }
 0x2d8   : > { %v4743_v60 = vpop.f32.mrf.mxu0  ;;  %3179 = vtanh.f32 %v4595_v13 }
 0x2d9   : > { %2071 = vmatmul.f32.gmra.mxu2 %v3164_v37 }
 0x2da   : > { %2184 = vmatmul.f32.gmra.mxu3 %v3166_v20  ;;  %2410 = vmatmul.f32.gmra.mxu1 %v3166_v20 }
 0x2db   : > { %2297 = vmatmul.f32.gmra.mxu0 %v3164_v37 }
 0x2dc   : > { %v1534_v12 = vpop.f32.mrf.mxu2 }
 0x2dd   : > { %v1535_v63 = vadd.f32 %v1534_v12, %v4463_v25  ;;  %v1647_v23 = vpop.f32.mrf.mxu3  ;;  %v5111_v12 = vld [vmem:[#allocation18_spill] sm:$0xff]  ;;  %v3178_v42 = vpop.eup %3177 }
 0x2df   : > { %v4750_v32 = vadd.f32 %v1647_v23, %v1535_v63  ;;  %v4752_v48 = vpop.f32.mrf.mxu1  ;;  %v1838_v63 = vadd.f32 %v5111_v12, %v1725_v10 }
 0x2e0   : > { %v4754_v27 = vpop.f32.mrf.mxu0 }
 0x2e1   : > { %2074 = vmatmul.f32.gmra.mxu2 %v3168_v41  ;;  %3181 = vtanh.f32 %v1838_v63 }
 0x2e2   : > { %2187 = vmatmul.f32.gmra.mxu3 %v3170_v54  ;;  %2413 = vmatmul.f32.gmra.mxu1 %v3170_v54  ;;  %3183 = vtanh.f32 %v4610_v0 }
 0x2e3   : > { %2300 = vmatmul.f32.gmra.mxu0 %v3168_v41 }
 0x2e4   : > { %v1537_v39 = vpop.f32.mrf.mxu2 }
 0x2e5   : > { %v1538_v15 = vadd.f32 %v1537_v39, %v4463_v25  ;;  %v1650_v22 = vpop.f32.mrf.mxu3 }
 0x2e7   : > { %v4761_v62 = vadd.f32 %v1650_v22, %v1538_v15  ;;  %v4763_v44 = vpop.f32.mrf.mxu1  ;;  %v1841_v15 = vadd.f32 %v4597_v26, %v1728_v45 }
 0x2e8   : > { %v4765_v37 = vpop.f32.mrf.mxu0 }
 0x2e9   : > { %2077 = vmatmul.f32.gmra.mxu2 %v3172_v59  ;;  %3185 = vtanh.f32 %v1841_v15 }
 0x2ea   : > { %2190 = vmatmul.f32.gmra.mxu3 %v3174_v57  ;;  %2416 = vmatmul.f32.gmra.mxu1 %v3174_v57  ;;  %3187 = vtanh.f32 %v4627_v31 }
 0x2eb   : > { %2303 = vmatmul.f32.gmra.mxu0 %v3172_v59  ;;  %v3180_v59 = vpop.eup %3179 }
 0x2ec   : > { %v1540_v20 = vpop.f32.mrf.mxu2  ;;  %v3182_v13 = vpop.eup %3181 }
 0x2ed   : > { %v1541_v16 = vadd.f32 %v1540_v20, %v4463_v25  ;;  %v1653_v2 = vpop.f32.mrf.mxu3  ;;  %v3184_v63 = vpop.eup %3183 }
 0x2ef   : > { %v4772_v23 = vadd.f32 %v1653_v2, %v1541_v16  ;;  %v4774_v3 = vpop.f32.mrf.mxu1  ;;  %v1844_v16 = vadd.f32 %v4612_v17, %v1731_v7  ;;  %v3186_v0 = vpop.eup %3185 }
 0x2f0   : > { %v4776_v41 = vpop.f32.mrf.mxu0  ;;  %v3188_v15 = vpop.eup %3187 }
 0x2f1   : > { %2080 = vmatmul.f32.gmra.mxu2 %v3176_v19  ;;  %3189 = vtanh.f32 %v1844_v16 }
 0x2f2   : > { %2193 = vmatmul.f32.gmra.mxu3 %v3178_v42  ;;  %2419 = vmatmul.f32.gmra.mxu1 %v3178_v42  ;;  %3191 = vtanh.f32 %v4644_v58 }
 0x2f3   : > { %2306 = vmatmul.f32.gmra.mxu0 %v3176_v19 }
 0x2f4   : > { %v1543_v54 = vpop.f32.mrf.mxu2 }
 0x2f5   : > { %v1544_v61 = vadd.f32 %v1543_v54, %v4463_v25  ;;  %v1656_v39 = vpop.f32.mrf.mxu3  ;;  %v1847_v54 = vadd.f32 %v4629_v49, %v1734_v46 }
 0x2f7   : > { %v4783_v22 = vadd.f32 %v1656_v39, %v1544_v61  ;;  %v4785_v21 = vpop.f32.mrf.mxu1  ;;  %v3190_v31 = vpop.eup %3189  ;;  %3193 = vtanh.f32 %v1847_v54 }
 0x2f8   : > { %v4787_v57 = vpop.f32.mrf.mxu0  ;;  %v3192_v16 = vpop.eup %3191  ;;  %3195 = vtanh.f32 %v4658_v35 }
 0x2f9   : > { %2083 = vmatmul.f32.gmra.mxu2 %v3180_v59 }
 0x2fa   : > { %2196 = vmatmul.f32.gmra.mxu3 %v3182_v13  ;;  %2422 = vmatmul.f32.gmra.mxu1 %v3182_v13 }
 0x2fb   : > { %2309 = vmatmul.f32.gmra.mxu0 %v3180_v59 }
 0x2fc   : > { %v1546_v10 = vpop.f32.mrf.mxu2 }
 0x2fd   : > { %v1547_v26 = vadd.f32 %v1546_v10, %v4463_v25  ;;  %v1659_v20 = vpop.f32.mrf.mxu3  ;;  %v1850_v10 = vadd.f32 %v4646_v51, %v1737_v56  ;;  %v3194_v58 = vpop.eup %3193 }
 0x2fe   : > { %v3196_v54 = vpop.eup %3195 }
 0x2ff   : > { %v4794_v2 = vadd.f32 %v1659_v20, %v1547_v26  ;;  %v4796_v12 = vpop.f32.mrf.mxu1  ;;  %3197 = vtanh.f32 %v1850_v10 }
 0x300   : > { %v4798_v19 = vpop.f32.mrf.mxu0  ;;  %3199 = vtanh.f32 %v4672_v33 }
 0x301   : > { %2086 = vmatmul.f32.gmra.mxu2 %v3184_v63 }
 0x302   : > { %2199 = vmatmul.f32.gmra.mxu3 %v3186_v0  ;;  %2425 = vmatmul.f32.gmra.mxu1 %v3186_v0 }
 0x303   : > { %2312 = vmatmul.f32.gmra.mxu0 %v3184_v63 }
 0x304   : > { %v1549_v42 = vpop.f32.mrf.mxu2 }
 0x305   : > { %v1550_v17 = vadd.f32 %v1549_v42, %v4463_v25  ;;  %v1662_v45 = vpop.f32.mrf.mxu3  ;;  %v1853_v42 = vadd.f32 %v4660_v34, %v1740_v28  ;;  %v3198_v35 = vpop.eup %3197 }
 0x306   : > { %v3200_v10 = vpop.eup %3199 }
 0x307   : > { %v4805_v61 = vadd.f32 %v1662_v45, %v1550_v17  ;;  %v4807_v39 = vpop.f32.mrf.mxu1  ;;  %3201 = vtanh.f32 %v1853_v42 }
 0x308   : > { %v4809_v59 = vpop.f32.mrf.mxu0  ;;  %3203 = vtanh.f32 %v4684_v55 }
 0x309   : > { %2089 = vmatmul.f32.gmra.mxu2 %v3188_v15 }
 0x30a   : > { %2202 = vmatmul.f32.gmra.mxu3 %v3190_v31  ;;  %2428 = vmatmul.f32.gmra.mxu1 %v3190_v31 }
 0x30b   : > { %2315 = vmatmul.f32.gmra.mxu0 %v3188_v15 }
 0x30c   : > { %v1552_v13 = vpop.f32.mrf.mxu2 }
 0x30d   : > { %v1553_v49 = vadd.f32 %v1552_v13, %v4463_v25  ;;  %v1665_v7 = vpop.f32.mrf.mxu3  ;;  %v1856_v13 = vadd.f32 %v4674_v9, %v1743_v52  ;;  %v3202_v33 = vpop.eup %3201  ;;  %v1746_v9 = vadd.f32 %v4688_v24, %v4642_v4  ;;  %v4857_v24 = vperm.slane %v2031_v38, 0 }
 0x30f   : > { %v4816_v26 = vadd.f32 %v1665_v7, %v1553_v49  ;;  %v4818_v20 = vpop.f32.mrf.mxu1  ;;  %3205 = vtanh.f32 %v1856_v13  ;;  %v1859_v55 = vadd.f32 %v4686_v1, %v1746_v9 }
 0x310   : > { %v4820_v63 = vpop.f32.mrf.mxu0  ;;  %3207 = vtanh.f32 %v4695_v30 }
 0x311   : > { %2092 = vmatmul.f32.gmra.mxu2 %v3192_v16  ;;  %3209 = vtanh.f32 %v1859_v55 }
 0x312   : > { %2205 = vmatmul.f32.gmra.mxu3 %v3194_v58  ;;  %2431 = vmatmul.f32.gmra.mxu1 %v3194_v58 }
 0x313   : > { %2318 = vmatmul.f32.gmra.mxu0 %v3192_v16 }
 0x314   : > { %v1555_v0 = vpop.f32.mrf.mxu2 }
 0x315   : > { %v1556_v51 = vadd.f32 %v1555_v0, %v4463_v25  ;;  %v1668_v46 = vpop.f32.mrf.mxu3 }
 0x317   : > { %v4827_v17 = vadd.f32 %v1668_v46, %v1556_v51  ;;  %v4829_v45 = vpop.f32.mrf.mxu1  ;;  %v4851_v51 = vperm.slane %v2031_v38, 1 }
 0x318   : > { %v4831_v15 = vpop.f32.mrf.mxu0 }
 0x319   : > { %2095 = vmatmul.f32.gmra.mxu2 %v3196_v54 }
 0x31a   : > { %2208 = vmatmul.f32.gmra.mxu3 %v3198_v35  ;;  %2434 = vmatmul.f32.gmra.mxu1 %v3198_v35 }
 0x31b   : > { %2321 = vmatmul.f32.gmra.mxu0 %v3196_v54  ;;  %v3204_v54 = vpop.eup %3203 }
 0x31c   : > { %v1558_v31 = vpop.f32.mrf.mxu2  ;;  %v3206_v52 = vpop.eup %3205 }
 0x31d   : > { %v1559_v34 = vadd.f32 %v1558_v31, %v4463_v25  ;;  %v1671_v56 = vpop.f32.mrf.mxu3  ;;  %v3208_v38 = vpop.eup %3207 }
 0x31f   : > { %v4838_v49 = vadd.f32 %v1671_v56, %v1559_v34  ;;  %v4840_v7 = vpop.f32.mrf.mxu1 }
 0x320   : > { %v4842_v16 = vpop.f32.mrf.mxu0 }
 0x321   : > { %2098 = vmatmul.f32.gmra.mxu2 %v3200_v10 }
 0x322   : > { %2211 = vmatmul.f32.gmra.mxu3 %v3202_v33  ;;  %2437 = vmatmul.f32.gmra.mxu1 %v3202_v33 }
 0x323   : > { %2324 = vmatmul.f32.gmra.mxu0 %v3200_v10 }
 0x324   : > { %v1561_v58 = vpop.f32.mrf.mxu2 }
 0x325   : > { %v1562_v28 = vadd.f32 %v1561_v58, %v4463_v25  ;;  %v1674_v0 = vpop.f32.mrf.mxu3  ;;  %v1749_v25 = vadd.f32 %v4699_v43, %v4642_v4  ;;  %v3210_v58 = vpop.eup %3209 }
 0x327   : > { %v4854_v46 = vadd.f32 %v1674_v0, %v1562_v28  ;;  %v2393_v42 = vpop.f32.mrf.mxu1  ;;  %v1862_v10 = vadd.f32 %v4697_v29, %v1749_v25  ;;  %v1752_v0 = vadd.f32 %v4710_v14, %v4642_v4 }
 0x328   : > { %v2280_v35 = vpop.f32.mrf.mxu0 }
 0x329   : > { %v2281_v31 = vadd.f32 %v2280_v35, %v4851_v51  ;;  %2101 = vmatmul.f32.gmra.mxu2 %v3204_v54  ;;  %v1865_v35 = vadd.f32 %v4708_v50, %v1752_v0  ;;  %v1755_v50 = vadd.f32 %v4721_v18, %v4642_v4 }
 0x32a   : > { %2214 = vmatmul.f32.gmra.mxu3 %v3206_v52  ;;  %2440 = vmatmul.f32.gmra.mxu1 %v3206_v52 }
 0x32b   : > { %v2394_v1 = vadd.f32 %v2393_v42, %v2281_v31  ;;  %2327 = vmatmul.f32.gmra.mxu0 %v3204_v54 }
 0x32c   : > { %v2054_v34 = vpop.f32.mrf.mxu2 }
 0x32d   : > { %3211 = vtanh.f32 %v2394_v1  ;;  %v2055_v56 = vadd.f32 %v2054_v34, %v4857_v24  ;;  %v2167_v13 = vpop.f32.mrf.mxu3 }
 0x32f   : > { %v2168_v33 = vadd.f32 %v2167_v13, %v2055_v56  ;;  %v2396_v30 = vpop.f32.mrf.mxu1 }
 0x330   : > { %v2283_v9 = vpop.f32.mrf.mxu0 }
 0x331   : > { %3213 = vtanh.f32 %v2168_v33  ;;  %v2284_v43 = vadd.f32 %v2283_v9, %v4851_v51  ;;  %2104 = vmatmul.f32.gmra.mxu2 %v3208_v38  ;;  %v1868_v9 = vadd.f32 %v4719_v5, %v1755_v50  ;;  %v1758_v5 = vadd.f32 %v4732_v40, %v4642_v4 }
 0x332   : > { %3215 = vtanh.f32 %v4706_v8  ;;  %2217 = vmatmul.f32.gmra.mxu3 %v3210_v58  ;;  %2443 = vmatmul.f32.gmra.mxu1 %v3210_v58 }
 0x333   : > { %v3212_v28 = vpop.eup %3211  ;;  %3217 = vtanh.f32 %v1862_v10  ;;  %v2397_v55 = vadd.f32 %v2396_v30, %v2284_v43  ;;  %2330 = vmatmul.f32.gmra.mxu0 %v3208_v38 }
 0x334   : > { %2554 = vst [vmem:[%s4871_s25 + $0x8] sm:$0xff] %v3212_v28  ;;  %v2057_v29 = vpop.f32.mrf.mxu2 }
 0x335   : > { %3219 = vtanh.f32 %v2397_v55  ;;  %v2058_v42 = vadd.f32 %v2057_v29, %v4857_v24  ;;  %v2170_v54 = vpop.f32.mrf.mxu3 }
 0x337   : > { %v3214_v8 = vpop.eup %3213  ;;  %v2171_v52 = vadd.f32 %v2170_v54, %v2058_v42  ;;  %v2399_v31 = vpop.f32.mrf.mxu1 }
 0x338   : > { %v3216_v25 = vpop.eup %3215  ;;  %2553 = vst [vmem:[%s4871_s25] sm:$0xff] %v3214_v8  ;;  %v2286_v14 = vpop.f32.mrf.mxu0 }
 0x339   : > { %v3218_v1 = vpop.eup %3217  ;;  %3221 = vtanh.f32 %v2171_v52  ;;  %v2287_v34 = vadd.f32 %v2286_v14, %v4851_v51  ;;  %2107 = vmatmul.f32.gmra.mxu2 %v3216_v25  ;;  %v1871_v52 = vadd.f32 %v4730_v47, %v1758_v5  ;;  %v1761_v47 = vadd.f32 %v4743_v60, %v4642_v4 }
 0x33a   : > { %3223 = vtanh.f32 %v4717_v6  ;;  %2220 = vmatmul.f32.gmra.mxu3 %v3218_v1  ;;  %2446 = vmatmul.f32.gmra.mxu1 %v3218_v1 }
 0x33b   : > { %v3220_v56 = vpop.eup %3219  ;;  %3225 = vtanh.f32 %v1865_v35  ;;  %v2400_v13 = vadd.f32 %v2399_v31, %v2287_v34  ;;  %2333 = vmatmul.f32.gmra.mxu0 %v3216_v25 }
 0x33c   : > { %2556 = vst [vmem:[%s4871_s25 + $0x18] sm:$0xff] %v3220_v56  ;;  %v2060_v10 = vpop.f32.mrf.mxu2 }
 0x33d   : > { %3227 = vtanh.f32 %v2400_v13  ;;  %v2061_v33 = vadd.f32 %v2060_v10, %v4857_v24  ;;  %v2173_v30 = vpop.f32.mrf.mxu3 }
 0x33f   : > { %v3222_v38 = vpop.eup %3221  ;;  %v2174_v6 = vadd.f32 %v2173_v30, %v2061_v33  ;;  %v2402_v58 = vpop.f32.mrf.mxu1  ;;  %v1874_v30 = vadd.f32 %v4741_v53, %v1761_v47  ;;  %v1764_v53 = vadd.f32 %v4754_v27, %v4642_v4 }
 0x340   : > { %v3224_v43 = vpop.eup %3223  ;;  %2555 = vst [vmem:[%s4871_s25 + $0x10] sm:$0xff] %v3222_v38  ;;  %v2289_v28 = vpop.f32.mrf.mxu0 }
 0x341   : > { %v3226_v0 = vpop.eup %3225  ;;  %3229 = vtanh.f32 %v2174_v6  ;;  %v2290_v18 = vadd.f32 %v2289_v28, %v4851_v51  ;;  %2110 = vmatmul.f32.gmra.mxu2 %v3224_v43 }
 0x342   : > { %3231 = vtanh.f32 %v4728_v36  ;;  %2223 = vmatmul.f32.gmra.mxu3 %v3226_v0  ;;  %2449 = vmatmul.f32.gmra.mxu1 %v3226_v0 }
 0x343   : > { %v3228_v55 = vpop.eup %3227  ;;  %3233 = vtanh.f32 %v1868_v9  ;;  %v2403_v29 = vadd.f32 %v2402_v58, %v2290_v18  ;;  %2336 = vmatmul.f32.gmra.mxu0 %v3224_v43 }
 0x344   : > { %2558 = vst [vmem:[%s4871_s25 + $0x28] sm:$0xff] %v3228_v55  ;;  %v2063_v42 = vpop.f32.mrf.mxu2 }
 0x345   : > { %3235 = vtanh.f32 %v2403_v29  ;;  %v2064_v54 = vadd.f32 %v2063_v42, %v4857_v24  ;;  %v2176_v8 = vpop.f32.mrf.mxu3  ;;  %v1877_v29 = vadd.f32 %v4752_v48, %v1764_v53  ;;  %v1767_v48 = vadd.f32 %v4765_v37, %v4642_v4 }
 0x347   : > { %v3230_v35 = vpop.eup %3229  ;;  %v2177_v36 = vadd.f32 %v2176_v8, %v2064_v54  ;;  %v2405_v31 = vpop.f32.mrf.mxu1 }
 0x348   : > { %v3232_v25 = vpop.eup %3231  ;;  %2557 = vst [vmem:[%s4871_s25 + $0x20] sm:$0xff] %v3230_v35  ;;  %v2292_v14 = vpop.f32.mrf.mxu0 }
 0x349   : > { %v3234_v1 = vpop.eup %3233  ;;  %3237 = vtanh.f32 %v2177_v36  ;;  %v2293_v40 = vadd.f32 %v2292_v14, %v4851_v51  ;;  %2113 = vmatmul.f32.gmra.mxu2 %v3232_v25 }
 0x34a   : > { %3239 = vtanh.f32 %v4739_v11  ;;  %2226 = vmatmul.f32.gmra.mxu3 %v3234_v1  ;;  %2452 = vmatmul.f32.gmra.mxu1 %v3234_v1 }
 0x34b   : > { %v3236_v34 = vpop.eup %3235  ;;  %3241 = vtanh.f32 %v1871_v52  ;;  %v2406_v56 = vadd.f32 %v2405_v31, %v2293_v40  ;;  %2339 = vmatmul.f32.gmra.mxu0 %v3232_v25  ;;  %v1880_v40 = vadd.f32 %v4763_v44, %v1767_v48  ;;  %v1770_v44 = vadd.f32 %v4776_v41, %v4642_v4 }
 0x34c   : > { %2560 = vst [vmem:[%s4871_s25 + $0x38] sm:$0xff] %v3236_v34  ;;  %v2066_v50 = vpop.f32.mrf.mxu2 }
 0x34d   : > { %3243 = vtanh.f32 %v2406_v56  ;;  %v2067_v13 = vadd.f32 %v2066_v50, %v4857_v24  ;;  %v2179_v10 = vpop.f32.mrf.mxu3 }
 0x34f   : > { %v3238_v33 = vpop.eup %3237  ;;  %v2180_v11 = vadd.f32 %v2179_v10, %v2067_v13  ;;  %v2408_v38 = vpop.f32.mrf.mxu1 }
 0x350   : > { %v3240_v9 = vpop.eup %3239  ;;  %2559 = vst [vmem:[%s4871_s25 + $0x30] sm:$0xff] %v3238_v33  ;;  %v2295_v6 = vpop.f32.mrf.mxu0 }
 0x351   : > { %v3242_v58 = vpop.eup %3241  ;;  %3245 = vtanh.f32 %v2180_v11  ;;  %v2296_v60 = vadd.f32 %v2295_v6, %v4851_v51  ;;  %2116 = vmatmul.f32.gmra.mxu2 %v3240_v9 }
 0x352   : > { %3247 = vtanh.f32 %v4750_v32  ;;  %2229 = vmatmul.f32.gmra.mxu3 %v3242_v58  ;;  %2455 = vmatmul.f32.gmra.mxu1 %v3242_v58 }
 0x353   : > { %v3244_v43 = vpop.eup %3243  ;;  %3249 = vtanh.f32 %v1874_v30  ;;  %v2409_v28 = vadd.f32 %v2408_v38, %v2296_v60  ;;  %2342 = vmatmul.f32.gmra.mxu0 %v3240_v9  ;;  %v1883_v9 = vadd.f32 %v4774_v3, %v1770_v44  ;;  %v1773_v3 = vadd.f32 %v4787_v57, %v4642_v4 }
 0x354   : > { %2562 = vst [vmem:[%s4871_s25 + $0x48] sm:$0xff] %v3244_v43  ;;  %v2069_v0 = vpop.f32.mrf.mxu2 }
 0x355   : > { %3251 = vtanh.f32 %v2409_v28  ;;  %v2070_v18 = vadd.f32 %v2069_v0, %v4857_v24  ;;  %v2182_v55 = vpop.f32.mrf.mxu3 }
 0x357   : > { %v3246_v5 = vpop.eup %3245  ;;  %v2183_v32 = vadd.f32 %v2182_v55, %v2070_v18  ;;  %v2411_v42 = vpop.f32.mrf.mxu1 }
 0x358   : > { %v3248_v54 = vpop.eup %3247  ;;  %2561 = vst [vmem:[%s4871_s25 + $0x40] sm:$0xff] %v3246_v5  ;;  %v2298_v8 = vpop.f32.mrf.mxu0 }
 0x359   : > { %v3250_v35 = vpop.eup %3249  ;;  %3253 = vtanh.f32 %v2183_v32  ;;  %v2299_v27 = vadd.f32 %v2298_v8, %v4851_v51  ;;  %2119 = vmatmul.f32.gmra.mxu2 %v3248_v54 }
 0x35a   : > { %3255 = vtanh.f32 %v4761_v62  ;;  %2232 = vmatmul.f32.gmra.mxu3 %v3250_v35  ;;  %2458 = vmatmul.f32.gmra.mxu1 %v3250_v35 }
 0x35b   : > { %v3252_v52 = vpop.eup %3251  ;;  %3257 = vtanh.f32 %v1877_v29  ;;  %v2412_v36 = vadd.f32 %v2411_v42, %v2299_v27  ;;  %2345 = vmatmul.f32.gmra.mxu0 %v3248_v54  ;;  %v1886_v29 = vadd.f32 %v4785_v21, %v1773_v3  ;;  %v1776_v21 = vadd.f32 %v4798_v19, %v4642_v4 }
 0x35c   : > { %2564 = vst [vmem:[%s4871_s25 + $0x58] sm:$0xff] %v3252_v52  ;;  %v2072_v31 = vpop.f32.mrf.mxu2 }
 0x35d   : > { %3259 = vtanh.f32 %v2412_v36  ;;  %v2073_v25 = vadd.f32 %v2072_v31, %v4857_v24  ;;  %v2185_v14 = vpop.f32.mrf.mxu3 }
 0x35f   : > { %v3254_v1 = vpop.eup %3253  ;;  %v2186_v62 = vadd.f32 %v2185_v14, %v2073_v25  ;;  %v2414_v34 = vpop.f32.mrf.mxu1  ;;  %v1889_v25 = vadd.f32 %v4796_v12, %v1776_v21  ;;  %v1779_v12 = vadd.f32 %v4809_v59, %v4642_v4 }
 0x360   : > { %v3256_v47 = vpop.eup %3255  ;;  %2563 = vst [vmem:[%s4871_s25 + $0x50] sm:$0xff] %v3254_v1  ;;  %v2301_v56 = vpop.f32.mrf.mxu0 }
 0x361   : > { %v3258_v50 = vpop.eup %3257  ;;  %3261 = vtanh.f32 %v2186_v62  ;;  %v2302_v37 = vadd.f32 %v2301_v56, %v4851_v51  ;;  %2122 = vmatmul.f32.gmra.mxu2 %v3256_v47  ;;  %v1892_v44 = vadd.f32 %v4807_v39, %v1779_v12  ;;  %v1782_v39 = vadd.f32 %v4820_v63, %v4642_v4 }
 0x362   : > { %3263 = vtanh.f32 %v4772_v23  ;;  %2235 = vmatmul.f32.gmra.mxu3 %v3258_v50  ;;  %2461 = vmatmul.f32.gmra.mxu1 %v3258_v50 }
 0x363   : > { %v3260_v13 = vpop.eup %3259  ;;  %3265 = vtanh.f32 %v1880_v40  ;;  %v2415_v10 = vadd.f32 %v2414_v34, %v2302_v37  ;;  %2348 = vmatmul.f32.gmra.mxu0 %v3256_v47 }
 0x364   : > { %2566 = vst [vmem:[%s4871_s25 + $0x68] sm:$0xff] %v3260_v13  ;;  %v2075_v33 = vpop.f32.mrf.mxu2 }
 0x365   : > { %3267 = vtanh.f32 %v2415_v10  ;;  %v2076_v30 = vadd.f32 %v2075_v33, %v4857_v24  ;;  %v2188_v11 = vpop.f32.mrf.mxu3 }
 0x367   : > { %v3262_v38 = vpop.eup %3261  ;;  %v2189_v23 = vadd.f32 %v2188_v11, %v2076_v30  ;;  %v2417_v6 = vpop.f32.mrf.mxu1 }
 0x368   : > { %v3264_v58 = vpop.eup %3263  ;;  %2565 = vst [vmem:[%s4871_s25 + $0x60] sm:$0xff] %v3262_v38  ;;  %v2304_v60 = vpop.f32.mrf.mxu0 }
 0x369   : > { %v3266_v43 = vpop.eup %3265  ;;  %3269 = vtanh.f32 %v2189_v23  ;;  %v2305_v41 = vadd.f32 %v2304_v60, %v4851_v51  ;;  %2125 = vmatmul.f32.gmra.mxu2 %v3264_v58 }
 0x36a   : > { %3271 = vtanh.f32 %v4783_v22  ;;  %2238 = vmatmul.f32.gmra.mxu3 %v3266_v43  ;;  %2464 = vmatmul.f32.gmra.mxu1 %v3266_v43  ;;  %v1895_v43 = vadd.f32 %v4818_v20, %v1782_v39  ;;  %v1785_v20 = vadd.f32 %v4831_v15, %v4642_v4 }
 0x36b   : > { %v3268_v53 = vpop.eup %3267  ;;  %3273 = vtanh.f32 %v1883_v9  ;;  %v2418_v28 = vadd.f32 %v2417_v6, %v2305_v41  ;;  %2351 = vmatmul.f32.gmra.mxu0 %v3264_v58 }
 0x36c   : > { %2568 = vst [vmem:[%s4871_s25 + $0x78] sm:$0xff] %v3268_v53  ;;  %v2078_v0 = vpop.f32.mrf.mxu2 }
 0x36d   : > { %3275 = vtanh.f32 %v2418_v28  ;;  %v2079_v18 = vadd.f32 %v2078_v0, %v4857_v24  ;;  %v2191_v55 = vpop.f32.mrf.mxu3 }
 0x36f   : > { %v3270_v5 = vpop.eup %3269  ;;  %v2192_v22 = vadd.f32 %v2191_v55, %v2079_v18  ;;  %v2420_v32 = vpop.f32.mrf.mxu1 }
 0x370   : > { %v3272_v42 = vpop.eup %3271  ;;  %2567 = vst [vmem:[%s4871_s25 + $0x70] sm:$0xff] %v3270_v5  ;;  %v2307_v54 = vpop.f32.mrf.mxu0 }
 0x371   : > { %v3274_v8 = vpop.eup %3273  ;;  %3277 = vtanh.f32 %v2192_v22  ;;  %v2308_v57 = vadd.f32 %v2307_v54, %v4851_v51  ;;  %2128 = vmatmul.f32.gmra.mxu2 %v3272_v42 }
 0x372   : > { %3279 = vtanh.f32 %v4794_v2  ;;  %2241 = vmatmul.f32.gmra.mxu3 %v3274_v8  ;;  %2467 = vmatmul.f32.gmra.mxu1 %v3274_v8 }
 0x373   : > { %v3276_v35 = vpop.eup %3275  ;;  %3281 = vtanh.f32 %v1886_v29  ;;  %v2421_v27 = vadd.f32 %v2420_v32, %v2308_v57  ;;  %2354 = vmatmul.f32.gmra.mxu0 %v3272_v42  ;;  %v1898_v32 = vadd.f32 %v4829_v45, %v1785_v20  ;;  %v1788_v45 = vadd.f32 %v4842_v16, %v4642_v4 }
 0x374   : > { %2570 = vst [vmem:[%s4871_s25 + $0x88] sm:$0xff] %v3276_v35  ;;  %v2081_v52 = vpop.f32.mrf.mxu2 }
 0x375   : > { %3283 = vtanh.f32 %v2421_v27  ;;  %v2082_v48 = vadd.f32 %v2081_v52, %v4857_v24  ;;  %v2194_v36 = vpop.f32.mrf.mxu3 }
 0x377   : > { %v3278_v31 = vpop.eup %3277  ;;  %v2195_v2 = vadd.f32 %v2194_v36, %v2082_v48  ;;  %v2423_v14 = vpop.f32.mrf.mxu1 }
 0x378   : > { %v3280_v1 = vpop.eup %3279  ;;  %2569 = vst [vmem:[%s4871_s25 + $0x80] sm:$0xff] %v3278_v31  ;;  %v2310_v40 = vpop.f32.mrf.mxu0  ;;  %v1901_v31 = vadd.f32 %v4840_v7, %v1788_v45 }
 0x379   : > { %v3282_v62 = vpop.eup %3281  ;;  %3285 = vtanh.f32 %v2195_v2  ;;  %v2311_v19 = vadd.f32 %v2310_v40, %v4851_v51  ;;  %2131 = vmatmul.f32.gmra.mxu2 %v3280_v1 }
 0x37a   : > { %3287 = vtanh.f32 %v4805_v61  ;;  %2244 = vmatmul.f32.gmra.mxu3 %v3282_v62  ;;  %2470 = vmatmul.f32.gmra.mxu1 %v3282_v62 }
 0x37b   : > { %v3284_v34 = vpop.eup %3283  ;;  %3289 = vtanh.f32 %v1889_v25  ;;  %v2424_v47 = vadd.f32 %v2423_v14, %v2311_v19  ;;  %2357 = vmatmul.f32.gmra.mxu0 %v3280_v1 }
 0x37c   : > { %2572 = vst [vmem:[%s4871_s25 + $0x98] sm:$0xff] %v3284_v34  ;;  %v2084_v56 = vpop.f32.mrf.mxu2 }
 0x37d   : > { %3291 = vtanh.f32 %v2424_v47  ;;  %v2085_v50 = vadd.f32 %v2084_v56, %v4857_v24  ;;  %v2197_v37 = vpop.f32.mrf.mxu3 }
 0x37f   : > { %v3286_v13 = vpop.eup %3285  ;;  %v2198_v61 = vadd.f32 %v2197_v37, %v2085_v50  ;;  %v2426_v10 = vpop.f32.mrf.mxu1 }
 0x380   : > { %v3288_v33 = vpop.eup %3287  ;;  %2571 = vst [vmem:[%s4871_s25 + $0x90] sm:$0xff] %v3286_v13  ;;  %v2313_v30 = vpop.f32.mrf.mxu0 }
 0x381   : > { %v3290_v11 = vpop.eup %3289  ;;  %3293 = vtanh.f32 %v2198_v61  ;;  %v2314_v59 = vadd.f32 %v2313_v30, %v4851_v51  ;;  %2134 = vmatmul.f32.gmra.mxu2 %v3288_v33 }
 0x382   : > { %3295 = vtanh.f32 %v4816_v26  ;;  %2247 = vmatmul.f32.gmra.mxu3 %v3290_v11  ;;  %2473 = vmatmul.f32.gmra.mxu1 %v3290_v11 }
 0x383   : > { %v3292_v38 = vpop.eup %3291  ;;  %3297 = vtanh.f32 %v1892_v44  ;;  %v2427_v9 = vadd.f32 %v2426_v10, %v2314_v59  ;;  %2360 = vmatmul.f32.gmra.mxu0 %v3288_v33 }
 0x384   : > { %2574 = vst [vmem:[%s4871_s25 + $0xa8] sm:$0xff] %v3292_v38  ;;  %v2087_v23 = vpop.f32.mrf.mxu2 }
 0x385   : > { %3299 = vtanh.f32 %v2427_v9  ;;  %v2088_v6 = vadd.f32 %v2087_v23, %v4857_v24  ;;  %v2200_v58 = vpop.f32.mrf.mxu3 }
 0x387   : > { %v3294_v60 = vpop.eup %3293  ;;  %v2201_v26 = vadd.f32 %v2200_v58, %v2088_v6  ;;  %v2429_v41 = vpop.f32.mrf.mxu1 }
 0x388   : > { %v3296_v53 = vpop.eup %3295  ;;  %2573 = vst [vmem:[%s4871_s25 + $0xa0] sm:$0xff] %v3294_v60  ;;  %v2316_v3 = vpop.f32.mrf.mxu0 }
 0x389   : > { %v3298_v28 = vpop.eup %3297  ;;  %3301 = vtanh.f32 %v2201_v26  ;;  %v2317_v63 = vadd.f32 %v2316_v3, %v4851_v51  ;;  %2137 = vmatmul.f32.gmra.mxu2 %v3296_v53 }
 0x38a   : > { %3303 = vtanh.f32 %v4827_v17  ;;  %2250 = vmatmul.f32.gmra.mxu3 %v3298_v28  ;;  %2476 = vmatmul.f32.gmra.mxu1 %v3298_v28 }
 0x38b   : > { %v3300_v0 = vpop.eup %3299  ;;  %3305 = vtanh.f32 %v1895_v43  ;;  %v2430_v18 = vadd.f32 %v2429_v41, %v2317_v63  ;;  %2363 = vmatmul.f32.gmra.mxu0 %v3296_v53 }
 0x38c   : > { %2576 = vst [vmem:[%s4871_s25 + $0xb8] sm:$0xff] %v3300_v0  ;;  %v2090_v55 = vpop.f32.mrf.mxu2 }
 0x38d   : > { %3307 = vtanh.f32 %v2430_v18  ;;  %v2091_v5 = vadd.f32 %v2090_v55, %v4857_v24  ;;  %v2203_v29 = vpop.f32.mrf.mxu3 }
 0x38f   : > { %v3302_v22 = vpop.eup %3301  ;;  %v2204_v17 = vadd.f32 %v2203_v29, %v2091_v5  ;;  %v2432_v42 = vpop.f32.mrf.mxu1 }
 0x390   : > { %v3304_v54 = vpop.eup %3303  ;;  %2575 = vst [vmem:[%s4871_s25 + $0xb0] sm:$0xff] %v3302_v22  ;;  %v2319_v8 = vpop.f32.mrf.mxu0 }
 0x391   : > { %v3306_v57 = vpop.eup %3305  ;;  %3309 = vtanh.f32 %v2204_v17  ;;  %v2320_v15 = vadd.f32 %v2319_v8, %v4851_v51  ;;  %2140 = vmatmul.f32.gmra.mxu2 %v3304_v54 }
 0x392   : > { %3311 = vtanh.f32 %v4838_v49  ;;  %2253 = vmatmul.f32.gmra.mxu3 %v3306_v57  ;;  %2479 = vmatmul.f32.gmra.mxu1 %v3306_v57 }
 0x393   : > { %v3308_v35 = vpop.eup %3307  ;;  %3313 = vtanh.f32 %v1898_v32  ;;  %v2433_v21 = vadd.f32 %v2432_v42, %v2320_v15  ;;  %2366 = vmatmul.f32.gmra.mxu0 %v3304_v54 }
 0x394   : > { %2578 = vst [vmem:[%s4871_s25 + $0xc8] sm:$0xff] %v3308_v35  ;;  %v2093_v27 = vpop.f32.mrf.mxu2 }
 0x395   : > { %3315 = vtanh.f32 %v2433_v21  ;;  %v2094_v52 = vadd.f32 %v2093_v27, %v4857_v24  ;;  %v2206_v48 = vpop.f32.mrf.mxu3 }
 0x397   : > { %v3310_v36 = vpop.eup %3309  ;;  %v2207_v49 = vadd.f32 %v2206_v48, %v2094_v52  ;;  %v2435_v25 = vpop.f32.mrf.mxu1 }
 0x398   : > { %v3312_v2 = vpop.eup %3311  ;;  %2577 = vst [vmem:[%s4871_s25 + $0xc0] sm:$0xff] %v3310_v36  ;;  %v2322_v14 = vpop.f32.mrf.mxu0 }
 0x399   : > { %v3314_v1 = vpop.eup %3313  ;;  %3317 = vtanh.f32 %v2207_v49  ;;  %v2323_v4 = vadd.f32 %v2322_v14, %v4851_v51  ;;  %2143 = vmatmul.f32.gmra.mxu2 %v3312_v2 }
 0x39a   : > { %3319 = vtanh.f32 %v4854_v46  ;;  %2256 = vmatmul.f32.gmra.mxu3 %v3314_v1  ;;  %2482 = vmatmul.f32.gmra.mxu1 %v3314_v1 }
 0x39b   : > { %v3316_v16 = vpop.eup %3315  ;;  %3321 = vtanh.f32 %v1901_v31  ;;  %v2436_v40 = vadd.f32 %v2435_v25, %v2323_v4  ;;  %2369 = vmatmul.f32.gmra.mxu0 %v3312_v2 }
 0x39c   : > { %2580 = vst [vmem:[%s4871_s25 + $0xd8] sm:$0xff] %v3316_v16  ;;  %v2096_v7 = vpop.f32.mrf.mxu2 }
 0x39d   : > { %3323 = vtanh.f32 %v2436_v40  ;;  %v2097_v62 = vadd.f32 %v2096_v7, %v4857_v24  ;;  %v2209_v19 = vpop.f32.mrf.mxu3 }
 0x39f   : > { %v3318_v34 = vpop.eup %3317  ;;  %v2210_v12 = vadd.f32 %v2209_v19, %v2097_v62  ;;  %v2438_v47 = vpop.f32.mrf.mxu1 }
 0x3a0   : > { %v3320_v56 = vpop.eup %3319  ;;  %2579 = vst [vmem:[%s4871_s25 + $0xd0] sm:$0xff] %v3318_v34  ;;  %v2325_v46 = vpop.f32.mrf.mxu0 }
 0x3a1   : > { %v3322_v50 = vpop.eup %3321  ;;  %3325 = vtanh.f32 %v2210_v12  ;;  %v2326_v37 = vadd.f32 %v2325_v46, %v4851_v51  ;;  %2146 = vmatmul.f32.gmra.mxu2 %v3320_v56 }
 0x3a2   : > { %2259 = vmatmul.f32.gmra.mxu3 %v3322_v50  ;;  %2485 = vmatmul.f32.gmra.mxu1 %v3322_v50 }
 0x3a3   : > { %v3324_v13 = vpop.eup %3323  ;;  %v2439_v44 = vadd.f32 %v2438_v47, %v2326_v37 }
 0x3a4   : > { %2582 = vst [vmem:[%s4871_s25 + $0xe8] sm:$0xff] %v3324_v13  ;;  %v2099_v61 = vpop.f32.mrf.mxu2 }
 0x3a5   : > { %3327 = vtanh.f32 %v2439_v44  ;;  %v2100_v10 = vadd.f32 %v2099_v61, %v4857_v24  ;;  %v2212_v33 = vpop.f32.mrf.mxu3 }
 0x3a7   : > { %v3326_v30 = vpop.eup %3325  ;;  %v2213_v11 = vadd.f32 %v2212_v33, %v2100_v10  ;;  %v2441_v59 = vpop.f32.mrf.mxu1 }
 0x3a8   : > { %2581 = vst [vmem:[%s4871_s25 + $0xe0] sm:$0xff] %v3326_v30  ;;  %v2328_v38 = vpop.f32.mrf.mxu0 }
 0x3a9   : > { %3329 = vtanh.f32 %v2213_v11  ;;  %v2329_v39 = vadd.f32 %v2328_v38, %v4851_v51  ;;  %2372 = vmatmul.f32.vlgmr.msra.gmra.mxu2 %v3320_v56 }
 0x3ab   : > { %v3328_v9 = vpop.eup %3327  ;;  %v2442_v23 = vadd.f32 %v2441_v59, %v2329_v39 }
 0x3ac   : > { %2584 = vst [vmem:[%s4871_s25 + $0xf8] sm:$0xff] %v3328_v9  ;;  %v2102_v6 = vpop.f32.mrf.mxu2 }
 0x3ad   : > { %3331 = vtanh.f32 %v2442_v23  ;;  %v2103_v58 = vadd.f32 %v2102_v6, %v4857_v24  ;;  %v2215_v60 = vpop.f32.mrf.mxu3 }
 0x3af   : > { %v3330_v43 = vpop.eup %3329  ;;  %v2216_v26 = vadd.f32 %v2215_v60, %v2103_v58  ;;  %v2444_v41 = vpop.f32.mrf.mxu1 }
 0x3b0   : > { %2583 = vst [vmem:[%s4871_s25 + $0xf0] sm:$0xff] %v3330_v43  ;;  %v2331_v53 = vpop.f32.mrf.mxu0 }
 0x3b1   : > { %3333 = vtanh.f32 %v2216_v26  ;;  %v2332_v3 = vadd.f32 %v2331_v53, %v4851_v51 }
 0x3b3   : > { %v3332_v28 = vpop.eup %3331  ;;  %v2445_v63 = vadd.f32 %v2444_v41, %v2332_v3 }
 0x3b4   : > { %2586 = vst [vmem:[%s4871_s25 + $0x108] sm:$0xff] %v3332_v28  ;;  %v2105_v0 = vpop.f32.mrf.mxu2 }
 0x3b5   : > { %3335 = vtanh.f32 %v2445_v63  ;;  %v2106_v20 = vadd.f32 %v2105_v0, %v4857_v24  ;;  %v2218_v18 = vpop.f32.mrf.mxu3 }
 0x3b7   : > { %v3334_v55 = vpop.eup %3333  ;;  %v2219_v5 = vadd.f32 %v2218_v18, %v2106_v20  ;;  %v2447_v29 = vpop.f32.mrf.mxu1 }
 0x3b8   : > { %2585 = vst [vmem:[%s4871_s25 + $0x100] sm:$0xff] %v3334_v55  ;;  %v2334_v22 = vpop.f32.mrf.mxu0 }
 0x3b9   : > { %3337 = vtanh.f32 %v2219_v5  ;;  %v2335_v32 = vadd.f32 %v2334_v22, %v4851_v51 }
 0x3bb   : > { %v3336_v17 = vpop.eup %3335  ;;  %v2448_v42 = vadd.f32 %v2447_v29, %v2335_v32 }
 0x3bc   : > { %2588 = vst [vmem:[%s4871_s25 + $0x118] sm:$0xff] %v3336_v17  ;;  %v2108_v54 = vpop.f32.mrf.mxu2 }
 0x3bd   : > { %3339 = vtanh.f32 %v2448_v42  ;;  %v2109_v8 = vadd.f32 %v2108_v54, %v4857_v24  ;;  %v2221_v57 = vpop.f32.mrf.mxu3 }
 0x3bf   : > { %v3338_v15 = vpop.eup %3337  ;;  %v2222_v35 = vadd.f32 %v2221_v57, %v2109_v8  ;;  %v2450_v45 = vpop.f32.mrf.mxu1 }
 0x3c0   : > { %2587 = vst [vmem:[%s4871_s25 + $0x110] sm:$0xff] %v3338_v15  ;;  %v2337_v21 = vpop.f32.mrf.mxu0 }
 0x3c1   : > { %3341 = vtanh.f32 %v2222_v35  ;;  %v2338_v27 = vadd.f32 %v2337_v21, %v4851_v51 }
 0x3c3   : > { %v3340_v52 = vpop.eup %3339  ;;  %v2451_v48 = vadd.f32 %v2450_v45, %v2338_v27 }
 0x3c4   : > { %2590 = vst [vmem:[%s4871_s25 + $0x128] sm:$0xff] %v3340_v52  ;;  %v2111_v36 = vpop.f32.mrf.mxu2 }
 0x3c5   : > { %3343 = vtanh.f32 %v2451_v48  ;;  %v2112_v31 = vadd.f32 %v2111_v36, %v4857_v24  ;;  %v2224_v49 = vpop.f32.mrf.mxu3 }
 0x3c7   : > { %v3342_v25 = vpop.eup %3341  ;;  %v2225_v2 = vadd.f32 %v2224_v49, %v2112_v31  ;;  %v2453_v14 = vpop.f32.mrf.mxu1 }
 0x3c8   : > { %2589 = vst [vmem:[%s4871_s25 + $0x120] sm:$0xff] %v3342_v25  ;;  %v2340_v1 = vpop.f32.mrf.mxu0 }
 0x3c9   : > { %3345 = vtanh.f32 %v2225_v2  ;;  %v2341_v4 = vadd.f32 %v2340_v1, %v4851_v51 }
 0x3cb   : > { %v3344_v16 = vpop.eup %3343  ;;  %v2454_v40 = vadd.f32 %v2453_v14, %v2341_v4 }
 0x3cc   : > { %2592 = vst [vmem:[%s4871_s25 + $0x138] sm:$0xff] %v3344_v16  ;;  %v2114_v7 = vpop.f32.mrf.mxu2 }
 0x3cd   : > { %3347 = vtanh.f32 %v2454_v40  ;;  %v2115_v62 = vadd.f32 %v2114_v7, %v4857_v24  ;;  %v2227_v19 = vpop.f32.mrf.mxu3 }
 0x3cf   : > { %v3346_v34 = vpop.eup %3345  ;;  %v2228_v12 = vadd.f32 %v2227_v19, %v2115_v62  ;;  %v2456_v47 = vpop.f32.mrf.mxu1 }
 0x3d0   : > { %2591 = vst [vmem:[%s4871_s25 + $0x130] sm:$0xff] %v3346_v34  ;;  %v2343_v56 = vpop.f32.mrf.mxu0 }
 0x3d1   : > { %3349 = vtanh.f32 %v2228_v12  ;;  %v2344_v46 = vadd.f32 %v2343_v56, %v4851_v51 }
 0x3d3   : > { %v3348_v50 = vpop.eup %3347  ;;  %v2457_v37 = vadd.f32 %v2456_v47, %v2344_v46 }
 0x3d4   : > { %2594 = vst [vmem:[%s4871_s25 + $0x148] sm:$0xff] %v3348_v50  ;;  %v2117_v13 = vpop.f32.mrf.mxu2 }
 0x3d5   : > { %3351 = vtanh.f32 %v2457_v37  ;;  %v2118_v44 = vadd.f32 %v2117_v13, %v4857_v24  ;;  %v2230_v61 = vpop.f32.mrf.mxu3 }
 0x3d7   : > { %v3350_v10 = vpop.eup %3349  ;;  %v2231_v33 = vadd.f32 %v2230_v61, %v2118_v44  ;;  %v2459_v30 = vpop.f32.mrf.mxu1 }
 0x3d8   : > { %2593 = vst [vmem:[%s4871_s25 + $0x140] sm:$0xff] %v3350_v10  ;;  %v2346_v11 = vpop.f32.mrf.mxu0 }
 0x3d9   : > { %3353 = vtanh.f32 %v2231_v33  ;;  %v2347_v59 = vadd.f32 %v2346_v11, %v4851_v51 }
 0x3db   : > { %v3352_v38 = vpop.eup %3351  ;;  %v2460_v39 = vadd.f32 %v2459_v30, %v2347_v59 }
 0x3dc   : > { %2596 = vst [vmem:[%s4871_s25 + $0x158] sm:$0xff] %v3352_v38  ;;  %v2120_v9 = vpop.f32.mrf.mxu2 }
 0x3dd   : > { %3355 = vtanh.f32 %v2460_v39  ;;  %v2121_v23 = vadd.f32 %v2120_v9, %v4857_v24  ;;  %v2233_v6 = vpop.f32.mrf.mxu3 }
 0x3df   : > { %v3354_v58 = vpop.eup %3353  ;;  %v2234_v60 = vadd.f32 %v2233_v6, %v2121_v23  ;;  %v2462_v43 = vpop.f32.mrf.mxu1 }
 0x3e0   : > { %2595 = vst [vmem:[%s4871_s25 + $0x150] sm:$0xff] %v3354_v58  ;;  %v2349_v26 = vpop.f32.mrf.mxu0 }
 0x3e1   : > { %3357 = vtanh.f32 %v2234_v60  ;;  %v2350_v41 = vadd.f32 %v2349_v26, %v4851_v51 }
 0x3e3   : > { %v3356_v53 = vpop.eup %3355  ;;  %v2463_v3 = vadd.f32 %v2462_v43, %v2350_v41 }
 0x3e4   : > { %2598 = vst [vmem:[%s4871_s25 + $0x168] sm:$0xff] %v3356_v53  ;;  %v2123_v28 = vpop.f32.mrf.mxu2 }
 0x3e5   : > { %3359 = vtanh.f32 %v2463_v3  ;;  %v2124_v63 = vadd.f32 %v2123_v28, %v4857_v24  ;;  %v2236_v0 = vpop.f32.mrf.mxu3 }
 0x3e7   : > { %v3358_v20 = vpop.eup %3357  ;;  %v2237_v18 = vadd.f32 %v2236_v0, %v2124_v63  ;;  %v2465_v55 = vpop.f32.mrf.mxu1 }
 0x3e8   : > { %2597 = vst [vmem:[%s4871_s25 + $0x160] sm:$0xff] %v3358_v20  ;;  %v2352_v5 = vpop.f32.mrf.mxu0 }
 0x3e9   : > { %3361 = vtanh.f32 %v2237_v18  ;;  %v2353_v29 = vadd.f32 %v2352_v5, %v4851_v51 }
 0x3eb   : > { %v3360_v22 = vpop.eup %3359  ;;  %v2466_v32 = vadd.f32 %v2465_v55, %v2353_v29 }
 0x3ec   : > { %2600 = vst [vmem:[%s4871_s25 + $0x178] sm:$0xff] %v3360_v22  ;;  %v2126_v17 = vpop.f32.mrf.mxu2 }
 0x3ed   : > { %3363 = vtanh.f32 %v2466_v32  ;;  %v2127_v42 = vadd.f32 %v2126_v17, %v4857_v24  ;;  %v2239_v54 = vpop.f32.mrf.mxu3 }
 0x3ef   : > { %v3362_v8 = vpop.eup %3361  ;;  %v2240_v57 = vadd.f32 %v2239_v54, %v2127_v42  ;;  %v2468_v15 = vpop.f32.mrf.mxu1 }
 0x3f0   : > { %2599 = vst [vmem:[%s4871_s25 + $0x170] sm:$0xff] %v3362_v8  ;;  %v2355_v35 = vpop.f32.mrf.mxu0 }
 0x3f1   : > { %3365 = vtanh.f32 %v2240_v57  ;;  %v2356_v45 = vadd.f32 %v2355_v35, %v4851_v51 }
 0x3f3   : > { %v3364_v21 = vpop.eup %3363  ;;  %v2469_v27 = vadd.f32 %v2468_v15, %v2356_v45 }
 0x3f4   : > { %2602 = vst [vmem:[%s4871_s25 + $0x188] sm:$0xff] %v3364_v21  ;;  %v2129_v52 = vpop.f32.mrf.mxu2 }
 0x3f5   : > { %3367 = vtanh.f32 %v2469_v27  ;;  %v2130_v48 = vadd.f32 %v2129_v52, %v4857_v24  ;;  %v2242_v36 = vpop.f32.mrf.mxu3 }
 0x3f7   : > { %v3366_v31 = vpop.eup %3365  ;;  %v2243_v49 = vadd.f32 %v2242_v36, %v2130_v48  ;;  %v2471_v25 = vpop.f32.mrf.mxu1 }
 0x3f8   : > { %2601 = vst [vmem:[%s4871_s25 + $0x180] sm:$0xff] %v3366_v31  ;;  %v2358_v2 = vpop.f32.mrf.mxu0 }
 0x3f9   : > { %3369 = vtanh.f32 %v2243_v49  ;;  %v2359_v14 = vadd.f32 %v2358_v2, %v4851_v51 }
 0x3fb   : > { %v3368_v1 = vpop.eup %3367  ;;  %v2472_v4 = vadd.f32 %v2471_v25, %v2359_v14 }
 0x3fc   : > { %2604 = vst [vmem:[%s4871_s25 + $0x198] sm:$0xff] %v3368_v1  ;;  %v2132_v16 = vpop.f32.mrf.mxu2 }
 0x3fd   : > { %3371 = vtanh.f32 %v2472_v4  ;;  %v2133_v40 = vadd.f32 %v2132_v16, %v4857_v24  ;;  %v2245_v7 = vpop.f32.mrf.mxu3 }
 0x3ff   : > { %v3370_v62 = vpop.eup %3369  ;;  %v2246_v19 = vadd.f32 %v2245_v7, %v2133_v40  ;;  %v2474_v34 = vpop.f32.mrf.mxu1 }
 0x400   : > { %2603 = vst [vmem:[%s4871_s25 + $0x190] sm:$0xff] %v3370_v62  ;;  %v2361_v12 = vpop.f32.mrf.mxu0 }
 0x401   : > { %3373 = vtanh.f32 %v2246_v19  ;;  %v2362_v47 = vadd.f32 %v2361_v12, %v4851_v51 }
 0x403   : > { %v3372_v56 = vpop.eup %3371  ;;  %v2475_v46 = vadd.f32 %v2474_v34, %v2362_v47 }
 0x404   : > { %2606 = vst [vmem:[%s4871_s25 + $0x1a8] sm:$0xff] %v3372_v56  ;;  %v2135_v50 = vpop.f32.mrf.mxu2 }
 0x405   : > { %3375 = vtanh.f32 %v2475_v46  ;;  %v2136_v37 = vadd.f32 %v2135_v50, %v4857_v24  ;;  %v2248_v13 = vpop.f32.mrf.mxu3 }
 0x407   : > { %v3374_v44 = vpop.eup %3373  ;;  %v2249_v61 = vadd.f32 %v2248_v13, %v2136_v37  ;;  %v2477_v10 = vpop.f32.mrf.mxu1 }
 0x408   : > { %2605 = vst [vmem:[%s4871_s25 + $0x1a0] sm:$0xff] %v3374_v44  ;;  %v2364_v33 = vpop.f32.mrf.mxu0 }
 0x409   : > { %3377 = vtanh.f32 %v2249_v61  ;;  %v2365_v30 = vadd.f32 %v2364_v33, %v4851_v51 }
 0x40b   : > { %v3376_v11 = vpop.eup %3375  ;;  %v2478_v59 = vadd.f32 %v2477_v10, %v2365_v30 }
 0x40c   : > { %2608 = vst [vmem:[%s4871_s25 + $0x1b8] sm:$0xff] %v3376_v11  ;;  %v2138_v38 = vpop.f32.mrf.mxu2 }
 0x40d   : > { %3379 = vtanh.f32 %v2478_v59  ;;  %v2139_v39 = vadd.f32 %v2138_v38, %v4857_v24  ;;  %v2251_v9 = vpop.f32.mrf.mxu3 }
 0x40f   : > { %v3378_v23 = vpop.eup %3377  ;;  %v2252_v6 = vadd.f32 %v2251_v9, %v2139_v39  ;;  %v2480_v58 = vpop.f32.mrf.mxu1 }
 0x410   : > { %2607 = vst [vmem:[%s4871_s25 + $0x1b0] sm:$0xff] %v3378_v23  ;;  %v2367_v60 = vpop.f32.mrf.mxu0 }
 0x411   : > { %3381 = vtanh.f32 %v2252_v6  ;;  %v2368_v43 = vadd.f32 %v2367_v60, %v4851_v51 }
 0x413   : > { %v3380_v26 = vpop.eup %3379  ;;  %v2481_v41 = vadd.f32 %v2480_v58, %v2368_v43 }
 0x414   : > { %2610 = vst [vmem:[%s4871_s25 + $0x1c8] sm:$0xff] %v3380_v26  ;;  %v2141_v53 = vpop.f32.mrf.mxu2 }
 0x415   : > { %3383 = vtanh.f32 %v2481_v41  ;;  %v2142_v3 = vadd.f32 %v2141_v53, %v4857_v24  ;;  %v2254_v28 = vpop.f32.mrf.mxu3 }
 0x417   : > { %v3382_v63 = vpop.eup %3381  ;;  %v2255_v0 = vadd.f32 %v2254_v28, %v2142_v3  ;;  %v2483_v55 = vpop.f32.mrf.mxu1 }
 0x418   : > { %2609 = vst [vmem:[%s4871_s25 + $0x1c0] sm:$0xff] %v3382_v63  ;;  %v2370_v20 = vpop.f32.mrf.mxu0 }
 0x419   : > { %3385 = vtanh.f32 %v2255_v0  ;;  %v2371_v18 = vadd.f32 %v2370_v20, %v4851_v51 }
 0x41b   : > { %v3384_v5 = vpop.eup %3383  ;;  %v2484_v29 = vadd.f32 %v2483_v55, %v2371_v18 }
 0x41c   : > { %2612 = vst [vmem:[%s4871_s25 + $0x1d8] sm:$0xff] %v3384_v5  ;;  %v2144_v22 = vpop.f32.mrf.mxu2 }
 0x41d   : > { %3387 = vtanh.f32 %v2484_v29  ;;  %v2145_v32 = vadd.f32 %v2144_v22, %v4857_v24  ;;  %v2257_v17 = vpop.f32.mrf.mxu3 }
 0x41f   : > { %v3386_v42 = vpop.eup %3385  ;;  %v2258_v54 = vadd.f32 %v2257_v17, %v2145_v32  ;;  %v2486_v48 = vpop.f32.mrf.mxu1 }
 0x420   : > { %2611 = vst [vmem:[%s4871_s25 + $0x1d0] sm:$0xff] %v3386_v42 }
 0x421   : > { %3389 = vtanh.f32 %v2258_v54 }
 0x423   : > { %v3388_v8 = vpop.eup %3387 }
 0x424   : > { %2614 = vst [vmem:[%s4871_s25 + $0x1e8] sm:$0xff] %v3388_v8  ;;  %v2147_v57 = vpop.f32.mrf.mxu2 }
 0x425   : > { %v2148_v15 = vadd.f32 %v2147_v57, %v4857_v24  ;;  %v2260_v35 = vpop.f32.mrf.mxu3 }
 0x427   : > { %v3390_v45 = vpop.eup %3389  ;;  %v2261_v21 = vadd.f32 %v2260_v35, %v2148_v15 }
 0x428   : > { %2613 = vst [vmem:[%s4871_s25 + $0x1e0] sm:$0xff] %v3390_v45 }
 0x429   : > { %3391 = vtanh.f32 %v2261_v21 }
 0x42c   : > { %v2373_v27 = vpop.f32.mrf.mxu2 }
 0x42d   : > { %v2374_v52 = vadd.f32 %v2373_v27, %v4851_v51 }
 0x42f   : > { %v3392_v36 = vpop.eup %3391  ;;  %v2487_v31 = vadd.f32 %v2486_v48, %v2374_v52 }
 0x430   : > { %2615 = vst [vmem:[%s4871_s25 + $0x1f0] sm:$0xff] %v3392_v36 }
 0x431   : > { %3393 = vtanh.f32 %v2487_v31 }
 0x437   : > { %v3394_v24 = vpop.eup %3393 }
 0x438   : > { %2616 = vst [vmem:[%s4871_s25 + $0x1f8] sm:$0xff] %v3394_v24 }
 0x439   : > { %3484 = shalt.err (!%p3481_p8)
}
 0x43a   : > { %s3533_s23 = smov 256   ;;  %s3534_s25 = smov 16  }
 0x43b   : > { %2827 = dma.vmem_to_hbm [thread:$0]  (%p3623_p5), %s2632_s29, 8192, %s2634_s14, %s2618_s13, %s3533_s23, %s3533_s23, %s3534_s25  }
 0x43c PF: > { %p2844_p9 = scmp.ge.s32.totalorder %s3527_s12, 2  ;;  %s2648_s26 = sand.u32 1, %s3515_s30  }
 0x43d   : > { %s2649_s22 = scalar_lea.sflag [#allocation4], %s2648_s26 }
 0x43e   : > { %p2837_p10 = pnand %p2844_p9, %p3627_p6 }
 0x440   : > { %p2838_p11 = pneg %p2837_p10 }
 0x442   : > { %3510 = dma.done.wait (%p2838_p11), %s2649_s22, 8192  }
 0x443   : > { %3512 = vsyncadd (%p2838_p11), %s2649_s22, 4294959104  ;;  %p21_p12 = scmp.ge.s32.totalorder %s3610_s15, 4   ;;  %s5112_s30 = smov %s3519_s10 }
 0x444   : > { %s5113_s10 = smov %s3523_s11  ;;  %s5114_s11 = smov %s3621_s18 }
 0x445   : > { %s5115_s12 = smov %s3610_s15  ;;  %23 = sbr.rel (!%p21_p12) target bundleno = 5 (0x5), region = 100 }
 0x44a   :  { %2655 = vsyncpa [#allocation3], 1 }
 0x44b   :  { %2657 = vsyncpa [#allocation3 + $0x1], 1 }
 0x44c   :  { %2658 = vsyncpa [#allocation6], 1 }
 0x44d   :  { %2659 = vsyncpa [#allocation4], 1 }
 0x44e   :  { %2661 = vsyncpa [#allocation4 + $0x1], 1 }

</bundles_post_ra>
